<compile_context>
chip_gen: v7x
topology: tpu7x:2x2x1
jax: 0.10.0
libtpu: 0.0.40
codegen_flags: <defaults>
</compile_context>

<pallas_src>
import math

import numpy as np
import jax
import jax.numpy as jnp
from jax.experimental import pallas as pl
from jax.experimental.pallas import tpu as pltpu

IN_CH = 4
ASPP_DIM = 32
RATES = (6, 12, 18)
MAX_RATE = max(RATES)
BN_EPS = 1e-5
N_CONV_BRANCH = 1 + len(RATES)    # branches produced by the fused stacked dot
N_BRANCH = N_CONV_BRANCH + 1      # + image-level branch
LANE = 128


# --------------------------------------------------------------------------
# Pallas kernel: in-kernel im2col + two bf16->f32 MXU dots, fused epilogues
# --------------------------------------------------------------------------
def _make_kernel(C, D, tap_starts, wide, chunk):
    n_taps = len(tap_starts)

    def kernel(x_ref, bias_ref, wstk_ref, bstk_ref, wm_ref, out_ref, col_ref):
        # x_ref   : (1, C, L)         bf16  zero-padded, row-flattened input
        # bias_ref: (1, D, 1)         f32   merge bias + folded image-level branch
        # wstk_ref: (4D, n_taps*C)    bf16  block-stacked conv weights (dedup'd center)
        # bstk_ref: (4D, 1)           f32   stacked conv biases
        # wm_ref  : (D, 4D)           bf16  merge 1x1 weight (conv-branch part)
        # out_ref : (1, D, wide)      f32   lane-dense wide output
        # col_ref : (n_taps*C, wide)  bf16  in-kernel im2col scratch

        # In-kernel im2col: each dilated tap is ONE contiguous lane slice of the
        # row-flattened padded input (static offsets baked at trace time).
        for t in range(n_taps):
            s = tap_starts[t]
            col_ref[t * C:(t + 1) * C, :] = x_ref[0, :, s:s + wide]

        wstk = wstk_ref[...]
        bstk = bstk_ref[...]
        wm = wm_ref[...]
        bias = bias_ref[0]

        # Walk the spatial (lane) extent in 128-lane chunks so the (4D, chunk)
        # f32 branch intermediate stays comfortably inside the vreg file.
        for j in range(wide // chunk):
            colc = col_ref[:, j * chunk:(j + 1) * chunk]
            # One MXU dot yields all four conv branches, already "concatenated"
            # along the channel (sublane) dim; bias + ReLU fused in f32.
            branch = jnp.dot(wstk, colc, preferred_element_type=jnp.float32)
            branch = jnp.maximum(branch + bstk, 0.0)
            # Merge 1x1: image-level contribution + merge bias arrive pre-folded
            # in the per-batch bias column.
            out = jnp.dot(wm, branch.astype(jnp.bfloat16),
                          preferred_element_type=jnp.float32)
            out_ref[0, :, j * chunk:(j + 1) * chunk] = (
                jnp.maximum(out + bias, 0.0).astype(out_ref.dtype))

    return kernel


# --------------------------------------------------------------------------
# Wrapper
# --------------------------------------------------------------------------
def aspp_forward_nchw(x_nchw, params):
    w1, b1, w3, b3, wip, bip, wm, bm = params
    B, C, H, W = x_nchw.shape
    D = ASPP_DIM
    R = len(RATES)
    P = MAX_RATE

    # Geometry: pad width so the flattened wide output H*Wpad is lane-dense
    # (multiple of 128 -> unmasked stores); add a P guard band on the flat axis
    # so every tap slice is in-bounds.
    Hp = H + 2 * P
    Wp = W + 2 * P
    step = LANE // math.gcd(LANE, H)          # Wpad % step == 0  =>  H*Wpad % 128 == 0
    Wpad = ((Wp + step - 1) // step) * step
    WIDE = H * Wpad
    L = Hp * Wpad + 2 * P
    CHUNK = LANE

    # Tap table: shared center tap + 8 non-center taps per rate (dedup).
    tap_offsets = [(0, 0)]
    for rate in RATES:
        for ky in range(3):
            for kx in range(3):
                if ky == 1 and kx == 1:
                    continue
                tap_offsets.append(((ky - 1) * rate, (kx - 1) * rate))
    n_taps = len(tap_offsets)                 # 25
    K = n_taps * C
    # flat-slice start for tap (dy, dx): guard + (P+dy)*Wpad + dx  (always >= 0)
    tap_starts = tuple(P + (P + dy) * Wpad + dx for (dy, dx) in tap_offsets)

    # ---- cheap pure-XLA prep: pad/flatten input, stack weights, fold biases ----
    xpad = jnp.pad(x_nchw, ((0, 0), (0, 0), (P, P), (P, P + Wpad - Wp)))
    xflat = jnp.pad(xpad.reshape(B, C, Hp * Wpad), ((0, 0), (0, 0), (P, P)))
    xflat = xflat.astype(jnp.bfloat16)        # halves DMA of the dominant operand

    # Block-stacked conv weight: row block = branch, column block = tap.
    # Column block 0 (center tap) is shared by the 1x1 branch and the center
    # weight of every dilated 3x3 branch.
    wstk = jnp.zeros((N_CONV_BRANCH * D, K), jnp.float32)
    wstk = wstk.at[:D, :C].set(w1.T)
    for r in range(R):
        wstk = wstk.at[(r + 1) * D:(r + 2) * D, :C].set(w3[r * 9 + 4].T)  # center
        base = 1 + r * 8
        i = 0
        for k in range(9):
            if k == 4:
                continue
            wstk = wstk.at[(r + 1) * D:(r + 2) * D,
                           (base + i) * C:(base + i + 1) * C].set(w3[r * 9 + k].T)
            i += 1
    bstk = jnp.concatenate([b1.T] + [b3[r][:, None] for r in range(R)],
                           axis=0).astype(jnp.float32)                 # (4D, 1)

    # Merge weight: conv-branch part stays in the kernel; the spatially-constant
    # image-level branch plus merge bias fold into a per-batch bias column.
    wm_main = wm[:N_CONV_BRANCH * D, :].T                              # (D, 4D)
    pooled = jnp.mean(x_nchw, axis=(2, 3))                             # (B, C)
    ip = jnp.maximum(pooled @ wip + bip, 0.0)                          # (B, D)
    bias_col = (ip @ wm[N_CONV_BRANCH * D:, :] + bm).reshape(B, D, 1)
    bias_col = bias_col.astype(jnp.float32)

    wstk = wstk.astype(jnp.bfloat16)
    wm_main = wm_main.astype(jnp.bfloat16)

    kernel = _make_kernel(C, D, tap_starts, WIDE, CHUNK)

    def _const(shape):
        return pl.BlockSpec(shape, lambda b, _z=(0,) * len(shape): _z)

    grid_spec = pltpu.PrefetchScalarGridSpec(
        num_scalar_prefetch=0,
        grid=(B,),                            # B=2 -> both v7x TensorCores busy
        in_specs=[
            pl.BlockSpec((1, C, L), lambda b: (b, 0, 0)),     # flat padded input
            pl.BlockSpec((1, D, 1), lambda b: (b, 0, 0)),     # folded bias column
            _const(wstk.shape),
            _const(bstk.shape),
            _const(wm_main.shape),
        ],
        out_specs=pl.BlockSpec((1, D, WIDE), lambda b: (b, 0, 0)),
        scratch_shapes=[pltpu.VMEM((K, WIDE), jnp.bfloat16)],  # im2col scratch
    )
    out_wide = pl.pallas_call(
        kernel,
        out_shape=jax.ShapeDtypeStruct((B, D, WIDE), jnp.float32),
        grid_spec=grid_spec,
        compiler_params=pltpu.CompilerParams(
            dimension_semantics=("parallel",),
            # Per-batch blocks + scratch are < 1 MiB; explicit limit is safe on
            # v5e (16 MiB scoped default) through v7x (64 MiB physical).
            vmem_limit_bytes=32 * 1024 * 1024),
    )(xflat, bias_col, wstk, bstk, wm_main)

    # Valid columns of each wide row are [P, P+W); reshape is free and the
    # slice fuses into the consumer.
    return out_wide.reshape(B, D, H, Wpad)[:, :, :, P:P + W]


# --------------------------------------------------------------------------
# Parameters (PyTorch-like init, eval BatchNorm folded) and pure-JAX reference
# --------------------------------------------------------------------------
def init_params(key):
    """Deterministic synthetic params (PyTorch-like uniform init), with
    eval-mode BatchNorm2d folded into each conv's weight/bias."""
    C, D = IN_CH, ASPP_DIM
    ks = jax.random.split(key, 8)

    def u(k, shape, fan_in):
        bound = 1.0 / np.sqrt(fan_in)
        return jax.random.uniform(k, shape, jnp.float32, -bound, bound)

    w1 = u(ks[0], (C, D), C)                                # 1x1 conv
    b1 = u(ks[1], (1, D), C)
    w3 = u(ks[2], (len(RATES) * 9, C, D), 9 * C)            # (rate*ky*kx, C, D)
    b3 = u(ks[3], (len(RATES), D), 9 * C)
    wip = u(ks[4], (C, D), C)                               # image-pool 1x1
    bip = u(ks[5], (1, D), C)
    wm = u(ks[6], (N_BRANCH * D, D), N_BRANCH * D)          # merge 1x1
    bm = u(ks[7], (1, D), N_BRANCH * D)

    # fold eval BatchNorm2d (mean=0, var=1, gamma=1, beta=0): scale=1/sqrt(1+eps)
    # TODO(synk): with a real checkpoint, fold actual running_mean/var + affine.
    s = np.float32(1.0 / np.sqrt(1.0 + BN_EPS))
    fold = lambda w, b: (w * s, b * s)
    w1, b1 = fold(w1, b1)
    w3, b3 = fold(w3, b3)
    wip, bip = fold(wip, bip)
    wm, bm = fold(wm, bm)
    return w1, b1, w3, b3, wip, bip, wm, bm


def reference_nhwc(x_nhwc, params):
    """Pure-JAX f32 reference of the same forward (sanity check)."""
    w1, b1, w3, b3, wip, bip, wm, bm = params
    B, H, W, C = x_nhwc.shape
    D = ASPP_DIM
    relu = lambda v: jnp.maximum(v, 0.0)

    c1 = relu(jnp.einsum('bhwc,cd->bhwd', x_nhwc, w1) + b1[0])
    branches = [c1]
    dn = jax.lax.conv_dimension_numbers(x_nhwc.shape, (3, 3, C, D),
                                        ('NHWC', 'HWIO', 'NHWC'))
    for r_idx, rate in enumerate(RATES):
        w = w3[r_idx * 9:(r_idx + 1) * 9].reshape(3, 3, C, D)
        y = jax.lax.conv_general_dilated(
            x_nhwc, w, window_strides=(1, 1),
            padding=[(rate, rate), (rate, rate)],
            rhs_dilation=(rate, rate), dimension_numbers=dn)
        branches.append(relu(y + b3[r_idx]))
    pooled = jnp.mean(x_nhwc, axis=(1, 2))                   # (B, C)
    ip = relu(pooled @ wip + bip[0])                         # (B, D)
    branches.append(jnp.broadcast_to(ip[:, None, None, :], (B, H, W, D)))
    cat = jnp.concatenate(branches, axis=-1)
    return relu(jnp.einsum('bhwc,cd->bhwd', cat, wm) + bm[0])


if __name__ == "__main__":
    key = jax.random.PRNGKey(0)
    k_x, k_p = jax.random.split(key)

    B, C, H, W = 2, IN_CH, 16, 16
    x_nchw = jax.random.normal(k_x, (B, C, H, W), jnp.float32)   # PyTorch layout
    params = init_params(k_p)

    forward = jax.jit(aspp_forward_nchw)
    out = jax.block_until_ready(forward(x_nchw, params))
    assert out.shape == (B, ASPP_DIM, H, W)

    # Sanity check vs a pure-JAX f32 reference.  Tolerance is set for bf16
    # inputs / bf16 weights with f32 accumulation (observed error ~1e-3 rms).
    ref = reference_nhwc(jnp.transpose(x_nchw, (0, 2, 3, 1)), params)
    ref = jnp.transpose(ref, (0, 3, 1, 2))
    np.testing.assert_allclose(np.asarray(out), np.asarray(ref),
                               rtol=2e-2, atol=2e-2)

    print("KERNEL_OK")
</pallas_src>

<mosaic_0001>
module attributes {stable_mosaic.version = 11 : i64} {
  func.func @kernel(%arg0: i32, %arg1: memref<1x4x2948xbf16, #tpu.memory_space<vmem>>, %arg2: memref<1x32x1xf32, #tpu.memory_space<vmem>>, %arg3: memref<128x100xbf16, #tpu.memory_space<vmem>>, %arg4: memref<128x1xf32, #tpu.memory_space<vmem>>, %arg5: memref<32x128xbf16, #tpu.memory_space<vmem>>, %arg6: memref<1x32x896xf32, #tpu.memory_space<vmem>>, %arg7: memref<100x896xbf16, #tpu.memory_space<vmem>>) attributes {dimension_semantics = [#tpu.dimension_semantics<parallel>], iteration_bounds = array<i64: 2>, scalar_prefetch = 0 : i64, scratch_operands = 1 : i64, tpu.core_type = #tpu.core_type<tc>, window_params = [{transform_indices = @transform_0, window_bounds = array<i64: 1, 4, 2948>}, {transform_indices = @transform_1, window_bounds = array<i64: 1, 32, 1>}, {pipeline_mode = #tpu.pipeline_mode<synchronous>, transform_indices = @transform_2, window_bounds = array<i64: 128, 100>}, {pipeline_mode = #tpu.pipeline_mode<synchronous>, transform_indices = @transform_3, window_bounds = array<i64: 128, 1>}, {pipeline_mode = #tpu.pipeline_mode<synchronous>, transform_indices = @transform_4, window_bounds = array<i64: 32, 128>}, {transform_indices = @transform_5, window_bounds = array<i64: 1, 32, 896>}]} {
    %c0 = arith.constant 0 : index
    %c0_0 = arith.constant 0 : index
    %c1026 = arith.constant 1026 : index
    %0 = vector.load %arg1[%c0, %c0_0, %c1026] : memref<1x4x2948xbf16, #tpu.memory_space<vmem>>, vector<1x4x896xbf16>
    %1 = vector.shape_cast %0 : vector<1x4x896xbf16> to vector<4x896xbf16>
    %c0_1 = arith.constant 0 : index
    %c0_2 = arith.constant 0 : index
    %2 = vector.load %arg7[%c0_1, %c0_2] : memref<100x896xbf16, #tpu.memory_space<vmem>>, vector<4x896xbf16>
    tpu.vector_store %arg7[%c0_1, %c0_2], %1 {strides = array<i32>} : memref<100x896xbf16, #tpu.memory_space<vmem>>, vector<4x896xbf16>,
    %c0_3 = arith.constant 0 : index
    %c0_4 = arith.constant 0 : index
    %c684 = arith.constant 684 : index
    %3 = vector.load %arg1[%c0_3, %c0_4, %c684] : memref<1x4x2948xbf16, #tpu.memory_space<vmem>>, vector<1x4x896xbf16>
    %4 = vector.shape_cast %3 : vector<1x4x896xbf16> to vector<4x896xbf16>
    %c4 = arith.constant 4 : index
    %c0_5 = arith.constant 0 : index
    %5 = vector.load %arg7[%c4, %c0_5] : memref<100x896xbf16, #tpu.memory_space<vmem>>, vector<4x896xbf16>
    tpu.vector_store %arg7[%c4, %c0_5], %4 {strides = array<i32>} : memref<100x896xbf16, #tpu.memory_space<vmem>>, vector<4x896xbf16>,
    %c0_6 = arith.constant 0 : index
    %c0_7 = arith.constant 0 : index
    %c690 = arith.constant 690 : index
    %6 = vector.load %arg1[%c0_6, %c0_7, %c690] : memref<1x4x2948xbf16, #tpu.memory_space<vmem>>, vector<1x4x896xbf16>
    %7 = vector.shape_cast %6 : vector<1x4x896xbf16> to vector<4x896xbf16>
    %c8 = arith.constant 8 : index
    %c0_8 = arith.constant 0 : index
    %8 = vector.load %arg7[%c8, %c0_8] : memref<100x896xbf16, #tpu.memory_space<vmem>>, vector<4x896xbf16>
    tpu.vector_store %arg7[%c8, %c0_8], %7 {strides = array<i32>} : memref<100x896xbf16, #tpu.memory_space<vmem>>, vector<4x896xbf16>,
    %c0_9 = arith.constant 0 : index
    %c0_10 = arith.constant 0 : index
    %c696 = arith.constant 696 : index
    %9 = vector.load %arg1[%c0_9, %c0_10, %c696] : memref<1x4x2948xbf16, #tpu.memory_space<vmem>>, vector<1x4x896xbf16>
    %10 = vector.shape_cast %9 : vector<1x4x896xbf16> to vector<4x896xbf16>
    %c12 = arith.constant 12 : index
    %c0_11 = arith.constant 0 : index
    %11 = vector.load %arg7[%c12, %c0_11] : memref<100x896xbf16, #tpu.memory_space<vmem>>, vector<4x896xbf16>
    tpu.vector_store %arg7[%c12, %c0_11], %10 {strides = array<i32>} : memref<100x896xbf16, #tpu.memory_space<vmem>>, vector<4x896xbf16>,
    %c0_12 = arith.constant 0 : index
    %c0_13 = arith.constant 0 : index
    %c1020 = arith.constant 1020 : index
    %12 = vector.load %arg1[%c0_12, %c0_13, %c1020] : memref<1x4x2948xbf16, #tpu.memory_space<vmem>>, vector<1x4x896xbf16>
    %13 = vector.shape_cast %12 : vector<1x4x896xbf16> to vector<4x896xbf16>
    %c16 = arith.constant 16 : index
    %c0_14 = arith.constant 0 : index
    %14 = vector.load %arg7[%c16, %c0_14] : memref<100x896xbf16, #tpu.memory_space<vmem>>, vector<4x896xbf16>
    tpu.vector_store %arg7[%c16, %c0_14], %13 {strides = array<i32>} : memref<100x896xbf16, #tpu.memory_space<vmem>>, vector<4x896xbf16>,
    %c0_15 = arith.constant 0 : index
    %c0_16 = arith.constant 0 : index
    %c1032 = arith.constant 1032 : index
    %15 = vector.load %arg1[%c0_15, %c0_16, %c1032] : memref<1x4x2948xbf16, #tpu.memory_space<vmem>>, vector<1x4x896xbf16>
    %16 = vector.shape_cast %15 : vector<1x4x896xbf16> to vector<4x896xbf16>
    %c20 = arith.constant 20 : index
    %c0_17 = arith.constant 0 : index
    %17 = vector.load %arg7[%c20, %c0_17] : memref<100x896xbf16, #tpu.memory_space<vmem>>, vector<4x896xbf16>
    tpu.vector_store %arg7[%c20, %c0_17], %16 {strides = array<i32>} : memref<100x896xbf16, #tpu.memory_space<vmem>>, vector<4x896xbf16>,
    %c0_18 = arith.constant 0 : index
    %c0_19 = arith.constant 0 : index
    %c1356 = arith.constant 1356 : index
    %18 = vector.load %arg1[%c0_18, %c0_19, %c1356] : memref<1x4x2948xbf16, #tpu.memory_space<vmem>>, vector<1x4x896xbf16>
    %19 = vector.shape_cast %18 : vector<1x4x896xbf16> to vector<4x896xbf16>
    %c24 = arith.constant 24 : index
    %c0_20 = arith.constant 0 : index
    %20 = vector.load %arg7[%c24, %c0_20] : memref<100x896xbf16, #tpu.memory_space<vmem>>, vector<4x896xbf16>
    tpu.vector_store %arg7[%c24, %c0_20], %19 {strides = array<i32>} : memref<100x896xbf16, #tpu.memory_space<vmem>>, vector<4x896xbf16>,
    %c0_21 = arith.constant 0 : index
    %c0_22 = arith.constant 0 : index
    %c1362 = arith.constant 1362 : index
    %21 = vector.load %arg1[%c0_21, %c0_22, %c1362] : memref<1x4x2948xbf16, #tpu.memory_space<vmem>>, vector<1x4x896xbf16>
    %22 = vector.shape_cast %21 : vector<1x4x896xbf16> to vector<4x896xbf16>
    %c28 = arith.constant 28 : index
    %c0_23 = arith.constant 0 : index
    %23 = vector.load %arg7[%c28, %c0_23] : memref<100x896xbf16, #tpu.memory_space<vmem>>, vector<4x896xbf16>
    tpu.vector_store %arg7[%c28, %c0_23], %22 {strides = array<i32>} : memref<100x896xbf16, #tpu.memory_space<vmem>>, vector<4x896xbf16>,
    %c0_24 = arith.constant 0 : index
    %c0_25 = arith.constant 0 : index
    %c1368 = arith.constant 1368 : index
    %24 = vector.load %arg1[%c0_24, %c0_25, %c1368] : memref<1x4x2948xbf16, #tpu.memory_space<vmem>>, vector<1x4x896xbf16>
    %25 = vector.shape_cast %24 : vector<1x4x896xbf16> to vector<4x896xbf16>
    %c32 = arith.constant 32 : index
    %c0_26 = arith.constant 0 : index
    %26 = vector.load %arg7[%c32, %c0_26] : memref<100x896xbf16, #tpu.memory_space<vmem>>, vector<4x896xbf16>
    tpu.vector_store %arg7[%c32, %c0_26], %25 {strides = array<i32>} : memref<100x896xbf16, #tpu.memory_space<vmem>>, vector<4x896xbf16>,
    %c0_27 = arith.constant 0 : index
    %c0_28 = arith.constant 0 : index
    %c342 = arith.constant 342 : index
    %27 = vector.load %arg1[%c0_27, %c0_28, %c342] : memref<1x4x2948xbf16, #tpu.memory_space<vmem>>, vector<1x4x896xbf16>
    %28 = vector.shape_cast %27 : vector<1x4x896xbf16> to vector<4x896xbf16>
    %c36 = arith.constant 36 : index
    %c0_29 = arith.constant 0 : index
    %29 = vector.load %arg7[%c36, %c0_29] : memref<100x896xbf16, #tpu.memory_space<vmem>>, vector<4x896xbf16>
    tpu.vector_store %arg7[%c36, %c0_29], %28 {strides = array<i32>} : memref<100x896xbf16, #tpu.memory_space<vmem>>, vector<4x896xbf16>,
    %c0_30 = arith.constant 0 : index
    %c0_31 = arith.constant 0 : index
    %c354 = arith.constant 354 : index
    %30 = vector.load %arg1[%c0_30, %c0_31, %c354] : memref<1x4x2948xbf16, #tpu.memory_space<vmem>>, vector<1x4x896xbf16>
    %31 = vector.shape_cast %30 : vector<1x4x896xbf16> to vector<4x896xbf16>
    %c40 = arith.constant 40 : index
    %c0_32 = arith.constant 0 : index
    %32 = vector.load %arg7[%c40, %c0_32] : memref<100x896xbf16, #tpu.memory_space<vmem>>, vector<4x896xbf16>
    tpu.vector_store %arg7[%c40, %c0_32], %31 {strides = array<i32>} : memref<100x896xbf16, #tpu.memory_space<vmem>>, vector<4x896xbf16>,
    %c0_33 = arith.constant 0 : index
    %c0_34 = arith.constant 0 : index
    %c366 = arith.constant 366 : index
    %33 = vector.load %arg1[%c0_33, %c0_34, %c366] : memref<1x4x2948xbf16, #tpu.memory_space<vmem>>, vector<1x4x896xbf16>
    %34 = vector.shape_cast %33 : vector<1x4x896xbf16> to vector<4x896xbf16>
    %c44 = arith.constant 44 : index
    %c0_35 = arith.constant 0 : index
    %35 = vector.load %arg7[%c44, %c0_35] : memref<100x896xbf16, #tpu.memory_space<vmem>>, vector<4x896xbf16>
    tpu.vector_store %arg7[%c44, %c0_35], %34 {strides = array<i32>} : memref<100x896xbf16, #tpu.memory_space<vmem>>, vector<4x896xbf16>,
    %c0_36 = arith.constant 0 : index
    %c0_37 = arith.constant 0 : index
    %c1014 = arith.constant 1014 : index
    %36 = vector.load %arg1[%c0_36, %c0_37, %c1014] : memref<1x4x2948xbf16, #tpu.memory_space<vmem>>, vector<1x4x896xbf16>
    %37 = vector.shape_cast %36 : vector<1x4x896xbf16> to vector<4x896xbf16>
    %c48 = arith.constant 48 : index
    %c0_38 = arith.constant 0 : index
    %38 = vector.load %arg7[%c48, %c0_38] : memref<100x896xbf16, #tpu.memory_space<vmem>>, vector<4x896xbf16>
    tpu.vector_store %arg7[%c48, %c0_38], %37 {strides = array<i32>} : memref<100x896xbf16, #tpu.memory_space<vmem>>, vector<4x896xbf16>,
    %c0_39 = arith.constant 0 : index
    %c0_40 = arith.constant 0 : index
    %c1038 = arith.constant 1038 : index
    %39 = vector.load %arg1[%c0_39, %c0_40, %c1038] : memref<1x4x2948xbf16, #tpu.memory_space<vmem>>, vector<1x4x896xbf16>
    %40 = vector.shape_cast %39 : vector<1x4x896xbf16> to vector<4x896xbf16>
    %c52 = arith.constant 52 : index
    %c0_41 = arith.constant 0 : index
    %41 = vector.load %arg7[%c52, %c0_41] : memref<100x896xbf16, #tpu.memory_space<vmem>>, vector<4x896xbf16>
    tpu.vector_store %arg7[%c52, %c0_41], %40 {strides = array<i32>} : memref<100x896xbf16, #tpu.memory_space<vmem>>, vector<4x896xbf16>,
    %c0_42 = arith.constant 0 : index
    %c0_43 = arith.constant 0 : index
    %c1686 = arith.constant 1686 : index
    %42 = vector.load %arg1[%c0_42, %c0_43, %c1686] : memref<1x4x2948xbf16, #tpu.memory_space<vmem>>, vector<1x4x896xbf16>
    %43 = vector.shape_cast %42 : vector<1x4x896xbf16> to vector<4x896xbf16>
    %c56 = arith.constant 56 : index
    %c0_44 = arith.constant 0 : index
    %44 = vector.load %arg7[%c56, %c0_44] : memref<100x896xbf16, #tpu.memory_space<vmem>>, vector<4x896xbf16>
    tpu.vector_store %arg7[%c56, %c0_44], %43 {strides = array<i32>} : memref<100x896xbf16, #tpu.memory_space<vmem>>, vector<4x896xbf16>,
    %c0_45 = arith.constant 0 : index
    %c0_46 = arith.constant 0 : index
    %c1698 = arith.constant 1698 : index
    %45 = vector.load %arg1[%c0_45, %c0_46, %c1698] : memref<1x4x2948xbf16, #tpu.memory_space<vmem>>, vector<1x4x896xbf16>
    %46 = vector.shape_cast %45 : vector<1x4x896xbf16> to vector<4x896xbf16>
    %c60 = arith.constant 60 : index
    %c0_47 = arith.constant 0 : index
    %47 = vector.load %arg7[%c60, %c0_47] : memref<100x896xbf16, #tpu.memory_space<vmem>>, vector<4x896xbf16>
    tpu.vector_store %arg7[%c60, %c0_47], %46 {strides = array<i32>} : memref<100x896xbf16, #tpu.memory_space<vmem>>, vector<4x896xbf16>,
    %c0_48 = arith.constant 0 : index
    %c0_49 = arith.constant 0 : index
    %c1710 = arith.constant 1710 : index
    %48 = vector.load %arg1[%c0_48, %c0_49, %c1710] : memref<1x4x2948xbf16, #tpu.memory_space<vmem>>, vector<1x4x896xbf16>
    %49 = vector.shape_cast %48 : vector<1x4x896xbf16> to vector<4x896xbf16>
    %c64 = arith.constant 64 : index
    %c0_50 = arith.constant 0 : index
    %50 = vector.load %arg7[%c64, %c0_50] : memref<100x896xbf16, #tpu.memory_space<vmem>>, vector<4x896xbf16>
    tpu.vector_store %arg7[%c64, %c0_50], %49 {strides = array<i32>} : memref<100x896xbf16, #tpu.memory_space<vmem>>, vector<4x896xbf16>,
    %c0_51 = arith.constant 0 : index
    %c0_52 = arith.constant 0 : index
    %c0_53 = arith.constant 0 : index
    %51 = vector.load %arg1[%c0_51, %c0_52, %c0_53] : memref<1x4x2948xbf16, #tpu.memory_space<vmem>>, vector<1x4x896xbf16>
    %52 = vector.shape_cast %51 : vector<1x4x896xbf16> to vector<4x896xbf16>
    %c68 = arith.constant 68 : index
    %c0_54 = arith.constant 0 : index
    %53 = vector.load %arg7[%c68, %c0_54] : memref<100x896xbf16, #tpu.memory_space<vmem>>, vector<4x896xbf16>
    tpu.vector_store %arg7[%c68, %c0_54], %52 {strides = array<i32>} : memref<100x896xbf16, #tpu.memory_space<vmem>>, vector<4x896xbf16>,
    %c0_55 = arith.constant 0 : index
    %c0_56 = arith.constant 0 : index
    %c18 = arith.constant 18 : index
    %54 = vector.load %arg1[%c0_55, %c0_56, %c18] : memref<1x4x2948xbf16, #tpu.memory_space<vmem>>, vector<1x4x896xbf16>
    %55 = vector.shape_cast %54 : vector<1x4x896xbf16> to vector<4x896xbf16>
    %c72 = arith.constant 72 : index
    %c0_57 = arith.constant 0 : index
    %56 = vector.load %arg7[%c72, %c0_57] : memref<100x896xbf16, #tpu.memory_space<vmem>>, vector<4x896xbf16>
    tpu.vector_store %arg7[%c72, %c0_57], %55 {strides = array<i32>} : memref<100x896xbf16, #tpu.memory_space<vmem>>, vector<4x896xbf16>,
    %c0_58 = arith.constant 0 : index
    %c0_59 = arith.constant 0 : index
    %c36_60 = arith.constant 36 : index
    %57 = vector.load %arg1[%c0_58, %c0_59, %c36_60] : memref<1x4x2948xbf16, #tpu.memory_space<vmem>>, vector<1x4x896xbf16>
    %58 = vector.shape_cast %57 : vector<1x4x896xbf16> to vector<4x896xbf16>
    %c76 = arith.constant 76 : index
    %c0_61 = arith.constant 0 : index
    %59 = vector.load %arg7[%c76, %c0_61] : memref<100x896xbf16, #tpu.memory_space<vmem>>, vector<4x896xbf16>
    tpu.vector_store %arg7[%c76, %c0_61], %58 {strides = array<i32>} : memref<100x896xbf16, #tpu.memory_space<vmem>>, vector<4x896xbf16>,
    %c0_62 = arith.constant 0 : index
    %c0_63 = arith.constant 0 : index
    %c1008 = arith.constant 1008 : index
    %60 = vector.load %arg1[%c0_62, %c0_63, %c1008] : memref<1x4x2948xbf16, #tpu.memory_space<vmem>>, vector<1x4x896xbf16>
    %61 = vector.shape_cast %60 : vector<1x4x896xbf16> to vector<4x896xbf16>
    %c80 = arith.constant 80 : index
    %c0_64 = arith.constant 0 : index
    %62 = vector.load %arg7[%c80, %c0_64] : memref<100x896xbf16, #tpu.memory_space<vmem>>, vector<4x896xbf16>
    tpu.vector_store %arg7[%c80, %c0_64], %61 {strides = array<i32>} : memref<100x896xbf16, #tpu.memory_space<vmem>>, vector<4x896xbf16>,
    %c0_65 = arith.constant 0 : index
    %c0_66 = arith.constant 0 : index
    %c1044 = arith.constant 1044 : index
    %63 = vector.load %arg1[%c0_65, %c0_66, %c1044] : memref<1x4x2948xbf16, #tpu.memory_space<vmem>>, vector<1x4x896xbf16>
    %64 = vector.shape_cast %63 : vector<1x4x896xbf16> to vector<4x896xbf16>
    %c84 = arith.constant 84 : index
    %c0_67 = arith.constant 0 : index
    %65 = vector.load %arg7[%c84, %c0_67] : memref<100x896xbf16, #tpu.memory_space<vmem>>, vector<4x896xbf16>
    tpu.vector_store %arg7[%c84, %c0_67], %64 {strides = array<i32>} : memref<100x896xbf16, #tpu.memory_space<vmem>>, vector<4x896xbf16>,
    %c0_68 = arith.constant 0 : index
    %c0_69 = arith.constant 0 : index
    %c2016 = arith.constant 2016 : index
    %66 = vector.load %arg1[%c0_68, %c0_69, %c2016] : memref<1x4x2948xbf16, #tpu.memory_space<vmem>>, vector<1x4x896xbf16>
    %67 = vector.shape_cast %66 : vector<1x4x896xbf16> to vector<4x896xbf16>
    %c88 = arith.constant 88 : index
    %c0_70 = arith.constant 0 : index
    %68 = vector.load %arg7[%c88, %c0_70] : memref<100x896xbf16, #tpu.memory_space<vmem>>, vector<4x896xbf16>
    tpu.vector_store %arg7[%c88, %c0_70], %67 {strides = array<i32>} : memref<100x896xbf16, #tpu.memory_space<vmem>>, vector<4x896xbf16>,
    %c0_71 = arith.constant 0 : index
    %c0_72 = arith.constant 0 : index
    %c2034 = arith.constant 2034 : index
    %69 = vector.load %arg1[%c0_71, %c0_72, %c2034] : memref<1x4x2948xbf16, #tpu.memory_space<vmem>>, vector<1x4x896xbf16>
    %70 = vector.shape_cast %69 : vector<1x4x896xbf16> to vector<4x896xbf16>
    %c92 = arith.constant 92 : index
    %c0_73 = arith.constant 0 : index
    %71 = vector.load %arg7[%c92, %c0_73] : memref<100x896xbf16, #tpu.memory_space<vmem>>, vector<4x896xbf16>
    tpu.vector_store %arg7[%c92, %c0_73], %70 {strides = array<i32>} : memref<100x896xbf16, #tpu.memory_space<vmem>>, vector<4x896xbf16>,
    %c0_74 = arith.constant 0 : index
    %c0_75 = arith.constant 0 : index
    %c2052 = arith.constant 2052 : index
    %72 = vector.load %arg1[%c0_74, %c0_75, %c2052] : memref<1x4x2948xbf16, #tpu.memory_space<vmem>>, vector<1x4x896xbf16>
    %73 = vector.shape_cast %72 : vector<1x4x896xbf16> to vector<4x896xbf16>
    %c96 = arith.constant 96 : index
    %c0_76 = arith.constant 0 : index
    %74 = vector.load %arg7[%c96, %c0_76] : memref<100x896xbf16, #tpu.memory_space<vmem>>, vector<4x896xbf16>
    tpu.vector_store %arg7[%c96, %c0_76], %73 {strides = array<i32>} : memref<100x896xbf16, #tpu.memory_space<vmem>>, vector<4x896xbf16>,
    %c0_77 = arith.constant 0 : index
    %c0_78 = arith.constant 0 : index
    %75 = vector.load %arg3[%c0_77, %c0_78] : memref<128x100xbf16, #tpu.memory_space<vmem>>, vector<128x100xbf16>
    %c0_79 = arith.constant 0 : index
    %c0_80 = arith.constant 0 : index
    %76 = vector.load %arg4[%c0_79, %c0_80] : memref<128x1xf32, #tpu.memory_space<vmem>>, vector<128x1xf32>
    %c0_81 = arith.constant 0 : index
    %c0_82 = arith.constant 0 : index
    %77 = vector.load %arg5[%c0_81, %c0_82] : memref<32x128xbf16, #tpu.memory_space<vmem>>, vector<32x128xbf16>
    %c0_83 = arith.constant 0 : index
    %c0_84 = arith.constant 0 : index
    %c0_85 = arith.constant 0 : index
    %78 = vector.load %arg2[%c0_83, %c0_84, %c0_85] : memref<1x32x1xf32, #tpu.memory_space<vmem>>, vector<1x32x1xf32>
    %79 = vector.shape_cast %78 : vector<1x32x1xf32> to vector<32x1xf32>
    %c0_86 = arith.constant 0 : index
    %c0_87 = arith.constant 0 : index
    %80 = vector.load %arg7[%c0_86, %c0_87] : memref<100x896xbf16, #tpu.memory_space<vmem>>, vector<100x128xbf16>
    %cst = arith.constant dense<0.000000e+00> : vector<128x128xf32>
    %81 = tpu.matmul %75, %80, %cst {dimension_numbers = #tpu.dot_dimension_numbers<[1], [0], [0], [1], [0, 0, 1, 1], [], []>} : vector<128x100xbf16>, vector<100x128xbf16>, vector<128x128xf32> -> vector<128x128xf32>
    %82 = vector.broadcast %76 : vector<128x1xf32> to vector<128x128xf32>
    %83 = arith.addf %81, %82 : vector<128x128xf32>
    %cst_88 = arith.constant 0.000000e+00 : f32
    %84 = vector.broadcast %cst_88 : f32 to vector<128x128xf32>
    %85 = arith.maximumf %83, %84 : vector<128x128xf32>
    %86 = arith.truncf %85 : vector<128x128xf32> to vector<128x128xbf16>
    %cst_89 = arith.constant dense<0.000000e+00> : vector<32x128xf32>
    %87 = tpu.matmul %77, %86, %cst_89 {dimension_numbers = #tpu.dot_dimension_numbers<[1], [0], [0], [1], [0, 0, 1, 1], [], []>} : vector<32x128xbf16>, vector<128x128xbf16>, vector<32x128xf32> -> vector<32x128xf32>
    %88 = vector.broadcast %79 : vector<32x1xf32> to vector<32x128xf32>
    %89 = arith.addf %87, %88 : vector<32x128xf32>
    %cst_90 = arith.constant 0.000000e+00 : f32
    %90 = vector.broadcast %cst_90 : f32 to vector<32x128xf32>
    %91 = arith.maximumf %89, %90 : vector<32x128xf32>
    %c0_91 = arith.constant 0 : index
    %c0_92 = arith.constant 0 : index
    %c0_93 = arith.constant 0 : index
    %92 = vector.load %arg6[%c0_91, %c0_92, %c0_93] : memref<1x32x896xf32, #tpu.memory_space<vmem>>, vector<1x32x128xf32>
    %93 = vector.shape_cast %92 : vector<1x32x128xf32> to vector<32x128xf32>
    %94 = vector.shape_cast %91 : vector<32x128xf32> to vector<1x32x128xf32>
    tpu.vector_store %arg6[%c0_91, %c0_92, %c0_93], %94 {strides = array<i32>} : memref<1x32x896xf32, #tpu.memory_space<vmem>>, vector<1x32x128xf32>,
    %c0_94 = arith.constant 0 : index
    %c128 = arith.constant 128 : index
    %95 = vector.load %arg7[%c0_94, %c128] : memref<100x896xbf16, #tpu.memory_space<vmem>>, vector<100x128xbf16>
    %cst_95 = arith.constant dense<0.000000e+00> : vector<128x128xf32>
    %96 = tpu.matmul %75, %95, %cst_95 {dimension_numbers = #tpu.dot_dimension_numbers<[1], [0], [0], [1], [0, 0, 1, 1], [], []>} : vector<128x100xbf16>, vector<100x128xbf16>, vector<128x128xf32> -> vector<128x128xf32>
    %97 = vector.broadcast %76 : vector<128x1xf32> to vector<128x128xf32>
    %98 = arith.addf %96, %97 : vector<128x128xf32>
    %cst_96 = arith.constant 0.000000e+00 : f32
    %99 = vector.broadcast %cst_96 : f32 to vector<128x128xf32>
    %100 = arith.maximumf %98, %99 : vector<128x128xf32>
    %101 = arith.truncf %100 : vector<128x128xf32> to vector<128x128xbf16>
    %cst_97 = arith.constant dense<0.000000e+00> : vector<32x128xf32>
    %102 = tpu.matmul %77, %101, %cst_97 {dimension_numbers = #tpu.dot_dimension_numbers<[1], [0], [0], [1], [0, 0, 1, 1], [], []>} : vector<32x128xbf16>, vector<128x128xbf16>, vector<32x128xf32> -> vector<32x128xf32>
    %103 = vector.broadcast %79 : vector<32x1xf32> to vector<32x128xf32>
    %104 = arith.addf %102, %103 : vector<32x128xf32>
    %cst_98 = arith.constant 0.000000e+00 : f32
    %105 = vector.broadcast %cst_98 : f32 to vector<32x128xf32>
    %106 = arith.maximumf %104, %105 : vector<32x128xf32>
    %c0_99 = arith.constant 0 : index
    %c0_100 = arith.constant 0 : index
    %c128_101 = arith.constant 128 : index
    %107 = vector.load %arg6[%c0_99, %c0_100, %c128_101] : memref<1x32x896xf32, #tpu.memory_space<vmem>>, vector<1x32x128xf32>
    %108 = vector.shape_cast %107 : vector<1x32x128xf32> to vector<32x128xf32>
    %109 = vector.shape_cast %106 : vector<32x128xf32> to vector<1x32x128xf32>
    tpu.vector_store %arg6[%c0_99, %c0_100, %c128_101], %109 {strides = array<i32>} : memref<1x32x896xf32, #tpu.memory_space<vmem>>, vector<1x32x128xf32>,
    %c0_102 = arith.constant 0 : index
    %c256 = arith.constant 256 : index
    %110 = vector.load %arg7[%c0_102, %c256] : memref<100x896xbf16, #tpu.memory_space<vmem>>, vector<100x128xbf16>
    %cst_103 = arith.constant dense<0.000000e+00> : vector<128x128xf32>
    %111 = tpu.matmul %75, %110, %cst_103 {dimension_numbers = #tpu.dot_dimension_numbers<[1], [0], [0], [1], [0, 0, 1, 1], [], []>} : vector<128x100xbf16>, vector<100x128xbf16>, vector<128x128xf32> -> vector<128x128xf32>
    %112 = vector.broadcast %76 : vector<128x1xf32> to vector<128x128xf32>
    %113 = arith.addf %111, %112 : vector<128x128xf32>
    %cst_104 = arith.constant 0.000000e+00 : f32
    %114 = vector.broadcast %cst_104 : f32 to vector<128x128xf32>
    %115 = arith.maximumf %113, %114 : vector<128x128xf32>
    %116 = arith.truncf %115 : vector<128x128xf32> to vector<128x128xbf16>
    %cst_105 = arith.constant dense<0.000000e+00> : vector<32x128xf32>
    %117 = tpu.matmul %77, %116, %cst_105 {dimension_numbers = #tpu.dot_dimension_numbers<[1], [0], [0], [1], [0, 0, 1, 1], [], []>} : vector<32x128xbf16>, vector<128x128xbf16>, vector<32x128xf32> -> vector<32x128xf32>
    %118 = vector.broadcast %79 : vector<32x1xf32> to vector<32x128xf32>
    %119 = arith.addf %117, %118 : vector<32x128xf32>
    %cst_106 = arith.constant 0.000000e+00 : f32
    %120 = vector.broadcast %cst_106 : f32 to vector<32x128xf32>
    %121 = arith.maximumf %119, %120 : vector<32x128xf32>
    %c0_107 = arith.constant 0 : index
    %c0_108 = arith.constant 0 : index
    %c256_109 = arith.constant 256 : index
    %122 = vector.load %arg6[%c0_107, %c0_108, %c256_109] : memref<1x32x896xf32, #tpu.memory_space<vmem>>, vector<1x32x128xf32>
    %123 = vector.shape_cast %122 : vector<1x32x128xf32> to vector<32x128xf32>
    %124 = vector.shape_cast %121 : vector<32x128xf32> to vector<1x32x128xf32>
    tpu.vector_store %arg6[%c0_107, %c0_108, %c256_109], %124 {strides = array<i32>} : memref<1x32x896xf32, #tpu.memory_space<vmem>>, vector<1x32x128xf32>,
    %c0_110 = arith.constant 0 : index
    %c384 = arith.constant 384 : index
    %125 = vector.load %arg7[%c0_110, %c384] : memref<100x896xbf16, #tpu.memory_space<vmem>>, vector<100x128xbf16>
    %cst_111 = arith.constant dense<0.000000e+00> : vector<128x128xf32>
    %126 = tpu.matmul %75, %125, %cst_111 {dimension_numbers = #tpu.dot_dimension_numbers<[1], [0], [0], [1], [0, 0, 1, 1], [], []>} : vector<128x100xbf16>, vector<100x128xbf16>, vector<128x128xf32> -> vector<128x128xf32>
    %127 = vector.broadcast %76 : vector<128x1xf32> to vector<128x128xf32>
    %128 = arith.addf %126, %127 : vector<128x128xf32>
    %cst_112 = arith.constant 0.000000e+00 : f32
    %129 = vector.broadcast %cst_112 : f32 to vector<128x128xf32>
    %130 = arith.maximumf %128, %129 : vector<128x128xf32>
    %131 = arith.truncf %130 : vector<128x128xf32> to vector<128x128xbf16>
    %cst_113 = arith.constant dense<0.000000e+00> : vector<32x128xf32>
    %132 = tpu.matmul %77, %131, %cst_113 {dimension_numbers = #tpu.dot_dimension_numbers<[1], [0], [0], [1], [0, 0, 1, 1], [], []>} : vector<32x128xbf16>, vector<128x128xbf16>, vector<32x128xf32> -> vector<32x128xf32>
    %133 = vector.broadcast %79 : vector<32x1xf32> to vector<32x128xf32>
    %134 = arith.addf %132, %133 : vector<32x128xf32>
    %cst_114 = arith.constant 0.000000e+00 : f32
    %135 = vector.broadcast %cst_114 : f32 to vector<32x128xf32>
    %136 = arith.maximumf %134, %135 : vector<32x128xf32>
    %c0_115 = arith.constant 0 : index
    %c0_116 = arith.constant 0 : index
    %c384_117 = arith.constant 384 : index
    %137 = vector.load %arg6[%c0_115, %c0_116, %c384_117] : memref<1x32x896xf32, #tpu.memory_space<vmem>>, vector<1x32x128xf32>
    %138 = vector.shape_cast %137 : vector<1x32x128xf32> to vector<32x128xf32>
    %139 = vector.shape_cast %136 : vector<32x128xf32> to vector<1x32x128xf32>
    tpu.vector_store %arg6[%c0_115, %c0_116, %c384_117], %139 {strides = array<i32>} : memref<1x32x896xf32, #tpu.memory_space<vmem>>, vector<1x32x128xf32>,
    %c0_118 = arith.constant 0 : index
    %c512 = arith.constant 512 : index
    %140 = vector.load %arg7[%c0_118, %c512] : memref<100x896xbf16, #tpu.memory_space<vmem>>, vector<100x128xbf16>
    %cst_119 = arith.constant dense<0.000000e+00> : vector<128x128xf32>
    %141 = tpu.matmul %75, %140, %cst_119 {dimension_numbers = #tpu.dot_dimension_numbers<[1], [0], [0], [1], [0, 0, 1, 1], [], []>} : vector<128x100xbf16>, vector<100x128xbf16>, vector<128x128xf32> -> vector<128x128xf32>
    %142 = vector.broadcast %76 : vector<128x1xf32> to vector<128x128xf32>
    %143 = arith.addf %141, %142 : vector<128x128xf32>
    %cst_120 = arith.constant 0.000000e+00 : f32
    %144 = vector.broadcast %cst_120 : f32 to vector<128x128xf32>
    %145 = arith.maximumf %143, %144 : vector<128x128xf32>
    %146 = arith.truncf %145 : vector<128x128xf32> to vector<128x128xbf16>
    %cst_121 = arith.constant dense<0.000000e+00> : vector<32x128xf32>
    %147 = tpu.matmul %77, %146, %cst_121 {dimension_numbers = #tpu.dot_dimension_numbers<[1], [0], [0], [1], [0, 0, 1, 1], [], []>} : vector<32x128xbf16>, vector<128x128xbf16>, vector<32x128xf32> -> vector<32x128xf32>
    %148 = vector.broadcast %79 : vector<32x1xf32> to vector<32x128xf32>
    %149 = arith.addf %147, %148 : vector<32x128xf32>
    %cst_122 = arith.constant 0.000000e+00 : f32
    %150 = vector.broadcast %cst_122 : f32 to vector<32x128xf32>
    %151 = arith.maximumf %149, %150 : vector<32x128xf32>
    %c0_123 = arith.constant 0 : index
    %c0_124 = arith.constant 0 : index
    %c512_125 = arith.constant 512 : index
    %152 = vector.load %arg6[%c0_123, %c0_124, %c512_125] : memref<1x32x896xf32, #tpu.memory_space<vmem>>, vector<1x32x128xf32>
    %153 = vector.shape_cast %152 : vector<1x32x128xf32> to vector<32x128xf32>
    %154 = vector.shape_cast %151 : vector<32x128xf32> to vector<1x32x128xf32>
    tpu.vector_store %arg6[%c0_123, %c0_124, %c512_125], %154 {strides = array<i32>} : memref<1x32x896xf32, #tpu.memory_space<vmem>>, vector<1x32x128xf32>,
    %c0_126 = arith.constant 0 : index
    %c640 = arith.constant 640 : index
    %155 = vector.load %arg7[%c0_126, %c640] : memref<100x896xbf16, #tpu.memory_space<vmem>>, vector<100x128xbf16>
    %cst_127 = arith.constant dense<0.000000e+00> : vector<128x128xf32>
    %156 = tpu.matmul %75, %155, %cst_127 {dimension_numbers = #tpu.dot_dimension_numbers<[1], [0], [0], [1], [0, 0, 1, 1], [], []>} : vector<128x100xbf16>, vector<100x128xbf16>, vector<128x128xf32> -> vector<128x128xf32>
    %157 = vector.broadcast %76 : vector<128x1xf32> to vector<128x128xf32>
    %158 = arith.addf %156, %157 : vector<128x128xf32>
    %cst_128 = arith.constant 0.000000e+00 : f32
    %159 = vector.broadcast %cst_128 : f32 to vector<128x128xf32>
    %160 = arith.maximumf %158, %159 : vector<128x128xf32>
    %161 = arith.truncf %160 : vector<128x128xf32> to vector<128x128xbf16>
    %cst_129 = arith.constant dense<0.000000e+00> : vector<32x128xf32>
    %162 = tpu.matmul %77, %161, %cst_129 {dimension_numbers = #tpu.dot_dimension_numbers<[1], [0], [0], [1], [0, 0, 1, 1], [], []>} : vector<32x128xbf16>, vector<128x128xbf16>, vector<32x128xf32> -> vector<32x128xf32>
    %163 = vector.broadcast %79 : vector<32x1xf32> to vector<32x128xf32>
    %164 = arith.addf %162, %163 : vector<32x128xf32>
    %cst_130 = arith.constant 0.000000e+00 : f32
    %165 = vector.broadcast %cst_130 : f32 to vector<32x128xf32>
    %166 = arith.maximumf %164, %165 : vector<32x128xf32>
    %c0_131 = arith.constant 0 : index
    %c0_132 = arith.constant 0 : index
    %c640_133 = arith.constant 640 : index
    %167 = vector.load %arg6[%c0_131, %c0_132, %c640_133] : memref<1x32x896xf32, #tpu.memory_space<vmem>>, vector<1x32x128xf32>
    %168 = vector.shape_cast %167 : vector<1x32x128xf32> to vector<32x128xf32>
    %169 = vector.shape_cast %166 : vector<32x128xf32> to vector<1x32x128xf32>
    tpu.vector_store %arg6[%c0_131, %c0_132, %c640_133], %169 {strides = array<i32>} : memref<1x32x896xf32, #tpu.memory_space<vmem>>, vector<1x32x128xf32>,
    %c0_134 = arith.constant 0 : index
    %c768 = arith.constant 768 : index
    %170 = vector.load %arg7[%c0_134, %c768] : memref<100x896xbf16, #tpu.memory_space<vmem>>, vector<100x128xbf16>
    %cst_135 = arith.constant dense<0.000000e+00> : vector<128x128xf32>
    %171 = tpu.matmul %75, %170, %cst_135 {dimension_numbers = #tpu.dot_dimension_numbers<[1], [0], [0], [1], [0, 0, 1, 1], [], []>} : vector<128x100xbf16>, vector<100x128xbf16>, vector<128x128xf32> -> vector<128x128xf32>
    %172 = vector.broadcast %76 : vector<128x1xf32> to vector<128x128xf32>
    %173 = arith.addf %171, %172 : vector<128x128xf32>
    %cst_136 = arith.constant 0.000000e+00 : f32
    %174 = vector.broadcast %cst_136 : f32 to vector<128x128xf32>
    %175 = arith.maximumf %173, %174 : vector<128x128xf32>
    %176 = arith.truncf %175 : vector<128x128xf32> to vector<128x128xbf16>
    %cst_137 = arith.constant dense<0.000000e+00> : vector<32x128xf32>
    %177 = tpu.matmul %77, %176, %cst_137 {dimension_numbers = #tpu.dot_dimension_numbers<[1], [0], [0], [1], [0, 0, 1, 1], [], []>} : vector<32x128xbf16>, vector<128x128xbf16>, vector<32x128xf32> -> vector<32x128xf32>
    %178 = vector.broadcast %79 : vector<32x1xf32> to vector<32x128xf32>
    %179 = arith.addf %177, %178 : vector<32x128xf32>
    %cst_138 = arith.constant 0.000000e+00 : f32
    %180 = vector.broadcast %cst_138 : f32 to vector<32x128xf32>
    %181 = arith.maximumf %179, %180 : vector<32x128xf32>
    %c0_139 = arith.constant 0 : index
    %c0_140 = arith.constant 0 : index
    %c768_141 = arith.constant 768 : index
    %182 = vector.load %arg6[%c0_139, %c0_140, %c768_141] : memref<1x32x896xf32, #tpu.memory_space<vmem>>, vector<1x32x128xf32>
    %183 = vector.shape_cast %182 : vector<1x32x128xf32> to vector<32x128xf32>
    %184 = vector.shape_cast %181 : vector<32x128xf32> to vector<1x32x128xf32>
    tpu.vector_store %arg6[%c0_139, %c0_140, %c768_141], %184 {strides = array<i32>} : memref<1x32x896xf32, #tpu.memory_space<vmem>>, vector<1x32x128xf32>,
    return
  }
  func.func @transform_0(%arg0: i32) -> (i32, i32, i32) {
    %c0_i32 = arith.constant 0 : i32
    %c0_i32_0 = arith.constant 0 : i32
    %c0_i32_1 = arith.constant 0 : i32
    return %arg0, %c0_i32, %c0_i32_0 : i32, i32, i32
  }
  func.func @transform_1(%arg0: i32) -> (i32, i32, i32) {
    %c0_i32 = arith.constant 0 : i32
    %c0_i32_0 = arith.constant 0 : i32
    %c0_i32_1 = arith.constant 0 : i32
    return %arg0, %c0_i32, %c0_i32_0 : i32, i32, i32
  }
  func.func @transform_2(%arg0: i32) -> (i32, i32) {
    %c0_i32 = arith.constant 0 : i32
    %c0_i32_0 = arith.constant 0 : i32
    %c0_i32_1 = arith.constant 0 : i32
    return %c0_i32, %c0_i32_0 : i32, i32
  }
  func.func @transform_3(%arg0: i32) -> (i32, i32) {
    %c0_i32 = arith.constant 0 : i32
    %c0_i32_0 = arith.constant 0 : i32
    %c0_i32_1 = arith.constant 0 : i32
    return %c0_i32, %c0_i32_0 : i32, i32
  }
  func.func @transform_4(%arg0: i32) -> (i32, i32) {
    %c0_i32 = arith.constant 0 : i32
    %c0_i32_0 = arith.constant 0 : i32
    %c0_i32_1 = arith.constant 0 : i32
    return %c0_i32, %c0_i32_0 : i32, i32
  }
  func.func @transform_5(%arg0: i32) -> (i32, i32, i32) {
    %c0_i32 = arith.constant 0 : i32
    %c0_i32_0 = arith.constant 0 : i32
    %c0_i32_1 = arith.constant 0 : i32
    return %arg0, %c0_i32, %c0_i32_0 : i32, i32, i32
  }
}

</mosaic_0001>

<bundles_post_ra>
// kernel: aspp_forward_nchw.1
= control target key start
LH: loop header
LB: loop body
LE: loop exit
PB: predicated region body
PF: predicated region fallthrough
CT: control target
= control target key end

     0   :  { %s4554_s18 = smov 0   ;;  %s5902_s0 = inlined_call_operand.vmem [shape: bf16[2,4,2948], index: 0, kind: input, shape index: {}]   ;;  %s5903_s1 = inlined_call_operand.vmem [shape: f32[2,32,1], index: 1, kind: input, shape index: {}]   ;;  %s5904_s2 = inlined_call_operand.vmem [shape: bf16[128,100], index: 2, kind: input, shape index: {}]   ;;  %s5905_s3 = inlined_call_operand.vmem [shape: f32[128,1], index: 3, kind: input, shape index: {}]   ;;  %s5906_s4 = inlined_call_operand.vmem [shape: bf16[32,128], index: 4, kind: input, shape index: {}]   ;;  %s5907_s5 = inlined_call_operand.vmem [shape: f32[2,32,896], index: 5, kind: output, shape index: {}]  }
   0x1 LB: > { %s3693_s19 = sadd.s32 4294967295, %s4496_s18   ;;  %p3697_p0 = scmp.ge.s32.totalorder %s4496_s18, 1  ;;  %s4496_s18 = sphi %s4554_s18, %s15_s18  }
   0x2   : > { %p197_p1 = scmp.lt.s32.totalorder %s4496_s18, 3 }
   0x4   : > { %p198_p2 = pnand %p3697_p0, %p197_p1 }
   0x5   : > { %p230_p3 = scmp.lt.s32.totalorder (!%p198_p2), %s3693_s19, 1  ;;  %v254_v0 = vlaneseq (!%p198_p2)  ;;  %v4498_v1 = vmov (!%p198_p2), 1983009808   ;;  %s4499_s24 = smov (!%p198_p2), 84   ;;  %v4434_v61 = vld [vmem:[%s5904_s2] sm:$0xff] (!%p198_p2)   ;;  %vm1989_vm0 = vcmask (!%p198_p2), 818176  }
   0x6   : > { %201 = sbr.rel (%p198_p2) target bundleno = 909 (0x38d), region = 40  ;;  %v252_v2 = vunpack.c.l.s4 (!%p198_p2), %v4498_v1  ;;  %s4500_s25 = smov (!%p198_p2), 126   ;;  %4013 = vmatprep.mubr.msk.bf16.mxu0 (!%p198_p2), %vm1989_vm0, %v4434_v61  ;;  %vm292_vm1 = vcmask (!%p198_p2), 1043456   ;;  %vm356_vm2 = vcmask (!%p198_p2), 687104   ;;  %vm5928_vm3 = vcmask (!%p198_p2), 1031168  }
   0x7   : > { %v255_v3 = vshrl.u32 (!%p198_p2), %v254_v0, 7  ;;  %s4501_s26 = smov (!%p198_p2), 72   ;;  %s4502_s27 = smov (!%p198_p2), 78   ;;  %vm418_vm4 = vcmask (!%p198_p2), 637952   ;;  %vm480_vm5 = vcmask (!%p198_p2), 588800   ;;  %vm542_vm6 = vcmask (!%p198_p2), 31744  }
   0x8   : > { %v253_v4 = vunpack.c.0.s8 (!%p198_p2), %v252_v2  ;;  %s4503_s28 = smov (!%p198_p2), 4   ;;  %s4504_s29 = smov (!%p198_p2), 120   ;;  %vm604_vm7 = vcmask (!%p198_p2), 982016   ;;  %vm666_vm8 = vcmask (!%p198_p2), 424960   ;;  %vm728_vm9 = vcmask (!%p198_p2), 375808  }
   0x9   : > { %s4505_s30 = smov (!%p198_p2), 52   ;;  %s4506_s6 = smov (!%p198_p2), 46   ;;  %vm790_vm10 = vcmask (!%p198_p2), 326656   ;;  %vm852_vm11 = vcmask (!%p198_p2), 343040   ;;  %vm5930_vm12 = vcmask (!%p198_p2), 244736   ;;  %vm5931_vm13 = vcmask (!%p198_p2), 146432  }
   0xa   : > { %v4565_v5 = vsub.s32 (!%p198_p2), %v253_v4, %v255_v3  ;;  %s4507_s7 = smov (!%p198_p2), 40   ;;  %s4508_s8 = smov (!%p198_p2), 42   ;;  %vm5918_vm14 = vcmask (!%p198_p2), 80896   ;;  %vm5919_vm15 = vcmask (!%p198_p2), 932864  }
   0xb   : > { %s4509_s9 = smov (!%p198_p2), 30   ;;  %s4510_s10 = smov (!%p198_p2), 18  }
   0xc   : > { %s4511_s11 = smov (!%p198_p2), 10   ;;  %s4512_s12 = smov (!%p198_p2), 114  }
   0xd   : > { %s5986_s19 = smov (!%p230_p3, %s3693_s19), 1  ;;  %s4513_s13 = smov 106  }
   0xe   : > { %s4356_s20 = smul.u32 48, %s5986_s19  ;;  %s4514_s14 = smov 94  }
   0xf   : > { %s5917_s15 = smov 82   ;;  %s4516_s16 = smov 110  }
  0x10   : > { %s4570_s23 = scalar_lea.vmem %s5902_s0, %s4356_s20  ;;  %s5908_s17 = smov 92  }
  0x11   : > { %v309_v6 = vld [vmem:[%s4570_s23 + $0xa] sm:$0xff]  ;;  %v1343_v10 = vld [vmem:[%s4570_s23] sm:$0xff]  ;;  %v619_v26 = vld [vmem:[%s4570_s23 + $0x14] sm:$0xff]  ;;  %s5916_s20 = smov 16   ;;  %s5910_s21 = smov 108  }
  0x12   : > { %v246_v7 = vld [vmem:[%s4570_s23 + $0x10] sm:$0xff]  ;;  %v327_v8 = vrot.slane %v309_v6, %v4565_v5  ;;  %v313_v11 = vcombine.low %v309_v6, %v309_v6  ;;  %3703 = vst.sshfl [vmem:[#allocation2 + $0xe8] sm:$0xf0 pattern:$0x76325410] %v1343_v10  ;;  %v375_v13 = vcombine.high %v309_v6, %v309_v6  ;;  %v1347_v16 = vcombine.high %v1343_v10, %v1343_v10  ;;  %v805_v33 = vld [vmem:[%s4570_s23 + $0x4] sm:$0xff] }
  0x13   : > { %v4576_v9 = vrot.slane %v246_v7, %v4565_v5  ;;  %v250_v12 = vcombine.high %v246_v7, %v246_v7  ;;  %v495_v17 = vld [vmem:[%s4570_s23 + $0xe] sm:$0xff]  ;;  %v4588_v18 = vrot.slane %v1343_v10, %v4565_v5  ;;  %v4593_v20 = vcombine.low %v1343_v10, %v1343_v10  ;;  %v1115_v39 = vld [vmem:[%s4570_s23 + $0x1a] sm:$0xff]  ;;  %s5914_s22 = smov 32  }
  0x14   : > { %345 = vrot.lane.b32.xlu1 %v327_v8, %s4499_s24  ;;  %v320_v14 = vrot.slane %v313_v11, %v4565_v5  ;;  %v4591_v19 = vrot.slane %v1347_v16, %v4565_v5  ;;  %v389_v21 = vrot.slane %v375_v13, %v4565_v5  ;;  %v499_v22 = vcombine.high %v495_v17, %v495_v17  ;;  %v1591_v46 = vld [vmem:[%s4570_s23 + $0x1e] sm:$0xff]  ;;  %v4681_v54 = vld [vmem:[%s4570_s23 + $0x12] sm:$0xff] }
  0x15   : > { %280 = vrot.lane.b32.xlu0 %v4576_v9, %s4500_s25  ;;  %v264_v15 = vrot.slane %v250_v12, %v4565_v5  ;;  %3702 = vst.sshfl [vmem:[#allocation2 + $0xe0] sm:$0xf0 pattern:$0x76325410] %v4593_v20  ;;  %v4605_v24 = vrot.slane %v495_v17, %v4565_v5  ;;  %v561_v25 = vcombine.low %v246_v7, %v246_v7  ;;  %v1715_v51 = vld [vmem:[%s4570_s23 + $0x20] sm:$0xff]  ;;  %v4690_v58 = vld [vmem:[%s4570_s23 + $0x18] sm:$0xff] }
  0x16   : > { %v4602_v23 = vrot.slane %v499_v22, %v4565_v5  ;;  %v623_v28 = vcombine.high %v619_v26, %v619_v26  ;;  %v630_v30 = vrot.slane %v619_v26, %v4565_v5  ;;  %v685_v31 = vcombine.low %v619_v26, %v619_v26  ;;  %v4712_v0 = vld [vmem:[%s4570_s23 + $0x16] sm:$0xff]  ;;  %v4731_v6 = vld [vmem:[%s4570_s23 + $0xc] sm:$0xff]  ;;  %v4756_v12 = vld [vmem:[%s4570_s23 + $0x22] sm:$0xff] }
  0x17   : > { %v4613_v27 = vrot.slane %v561_v25, %v4565_v5  ;;  %v809_v34 = vcombine.low %v805_v33, %v805_v33  ;;  %v823_v35 = vrot.slane %v805_v33, %v4565_v5  ;;  %v871_v37 = vcombine.high %v805_v33, %v805_v33  ;;  %v4715_v1 = vld [vmem:[%s4570_s23 + $0x1c] sm:$0xff] }
  0x18   : > { %469 = vrot.lane.b32.xlu1 %v327_v8, %s4501_s26  ;;  %v637_v29 = vrot.slane %v623_v28, %v4565_v5  ;;  %v692_v32 = vrot.slane %v685_v31, %v4565_v5  ;;  %v1119_v40 = vcombine.high %v1115_v39, %v1115_v39  ;;  %v1126_v42 = vrot.slane %v1115_v39, %v4565_v5 }
  0x19   : > { %405 = vrot.lane.b32.xlu0 %v327_v8, %s4502_s27  ;;  %v816_v36 = vrot.slane %v809_v34, %v4565_v5  ;;  %v885_v38 = vrot.slane %v871_v37, %v4565_v5  ;;  %v1181_v43 = vcombine.low %v1115_v39, %v1115_v39  ;;  %v1416_v45 = vrot.slane %v4593_v20, %v4565_v5  ;;  %v4777_v20 = vld [vmem:[%s4570_s23 + $0x8] sm:$0xff] }
  0x1a   : > { %v1133_v41 = vrot.slane %v1119_v40, %v4565_v5  ;;  %v1595_v47 = vcombine.high %v1591_v46, %v1591_v46  ;;  %v1602_v49 = vrot.slane %v1591_v46, %v4565_v5  ;;  %v1657_v50 = vcombine.low %v1591_v46, %v1591_v46 }
  0x1b   : > { %v1188_v44 = vrot.slane %v1181_v43, %v4565_v5  ;;  %v1719_v53 = vcombine.high %v1715_v51, %v1715_v51  ;;  %v1726_v56 = vrot.slane %v1715_v51, %v4565_v5  ;;  %v328_v57 = vcombine.low %v4681_v54, %v4681_v54 }
  0x1c   : > { %343 = vrot.lane.b32.xlu1 %v320_v14, %s4499_s24  ;;  %v1609_v48 = vrot.slane %v1595_v47, %v4565_v5  ;;  %v1664_v52 = vrot.slane %v1657_v50, %v4565_v5  ;;  %v4697_v60 = vrot.slane %v4690_v58, %v4565_v5  ;;  %v4707_v62 = vrot.slane %v4681_v54, %v4565_v5 }
  0x1d   : > { %282 = vrot.lane.b32.xlu0 %v264_v15, %s4500_s25  ;;  %v1733_v55 = vrot.slane %v1719_v53, %v4565_v5  ;;  %v335_v59 = vrot.slane %v328_v57, %v4565_v5  ;;  %v576_v63 = vcombine.low %v4690_v58, %v4690_v58  ;;  %v4726_v3 = vrot.slane %v4712_v0, %v4565_v5 }
  0x1e   : > { %v700_v4 = vcombine.low %v4715_v1, %v4715_v1  ;;  %v4740_v8 = vrot.slane %v4715_v1, %v4565_v5  ;;  %v4753_v11 = vrot.slane %v4731_v6, %v4565_v5  ;;  %v1196_v15 = vcombine.low %v4756_v12, %v4756_v12 }
  0x1f   : > { %v4722_v2 = vrot.slane %v576_v63, %v4565_v5  ;;  %v1424_v28 = vcombine.low %v4777_v20, %v4777_v20 }
  0x20   : > { %407 = vrot.lane.b32.xlu1 %v389_v21, %s4502_s27  ;;  %v707_v7 = vrot.slane %v700_v4, %v4565_v5 }
  0x21   : > { %467 = vrot.lane.b32.xlu0 %v320_v14, %s4501_s26  ;;  %v1431_v39 = vrot.slane %v1424_v28, %v4565_v5 }
  0x24   : > { %531 = vrot.lane.b32.xlu1 %v4602_v23, %s4503_s28 }
  0x25   : > { %529 = vrot.lane.b32.xlu0 %v4605_v24, %s4503_s28 }
  0x28   : > { %593 = vrot.lane.b32.xlu1 %v4576_v9, %s4504_s29 }
  0x29   : > { %591 = vrot.lane.b32.xlu0 %v4613_v27, %s4504_s29 }
  0x2c   : > { %655 = vrot.lane.b32.xlu1 %v637_v29, %s4505_s30 }
  0x2d   : > { %653 = vrot.lane.b32.xlu0 %v630_v30, %s4505_s30 }
  0x30   : > { %717 = vrot.lane.b32.xlu1 %v630_v30, %s4506_s6 }
  0x31   : > { %715 = vrot.lane.b32.xlu0 %v692_v32, %s4506_s6 }
  0x34   : > { %779 = vrot.lane.b32.xlu1 %v637_v29, %s4507_s7 }
  0x35   : > { %777 = vrot.lane.b32.xlu0 %v630_v30, %s4507_s7 }
  0x38   : > { %841 = vrot.lane.b32.xlu1 %v823_v35, %s4508_s8 }
  0x39   : > { %839 = vrot.lane.b32.xlu0 %v816_v36, %s4508_s8 }
  0x3c   : > { %903 = vrot.lane.b32.xlu1 %v885_v38, %s4509_s9 }
  0x3d   : > { %901 = vrot.lane.b32.xlu0 %v823_v35, %s4509_s9 }
  0x40   : > { %965 = vrot.lane.b32.xlu1 %v823_v35, %s4510_s10 }
  0x41   : > { %963 = vrot.lane.b32.xlu0 %v816_v36, %s4510_s10 }
  0x44   : > { %1027 = vrot.lane.b32.xlu1 %v4602_v23, %s4511_s11 }
  0x45   : > { %1025 = vrot.lane.b32.xlu0 %v4605_v24, %s4511_s11 }
  0x48   : > { %1089 = vrot.lane.b32.xlu1 %v4576_v9, %s4512_s12 }
  0x49   : > { %1087 = vrot.lane.b32.xlu0 %v4613_v27, %s4512_s12 }
  0x4c   : > { %1151 = vrot.lane.b32.xlu1 %v1133_v41, %s4513_s13 }
  0x4d   : > { %1149 = vrot.lane.b32.xlu0 %v1126_v42, %s4513_s13 }
  0x50   : > { %1213 = vrot.lane.b32.xlu1 %v1126_v42, %s4514_s14 }
  0x51   : > { %1211 = vrot.lane.b32.xlu0 %v1188_v44, %s4514_s14 }
  0x54   : > { %1275 = vrot.lane.b32.xlu1 %v1133_v41, %s5917_s15 }
  0x55   : > { %1273 = vrot.lane.b32.xlu0 %v1126_v42, %s5917_s15  ;;  %v4816_v42 = vld [vmem:[%s4570_s23 + $0x26] sm:$0xff] }
  0x56   : > { %v1672_v50 = vcombine.low %v4816_v42, %v4816_v42 }
  0x58   : > { %1379 = vrot.lane.b32.xlu1 %v4591_v19, %s4516_s16  ;;  %v4774_v19 = vrot.slane %v4756_v12, %v4565_v5  ;;  %v1679_v63 = vrot.slane %v1672_v50, %v4565_v5 }
  0x59   : > { %1377 = vrot.lane.b32.xlu0 %v4588_v18, %s4516_s16 }
  0x5c   : > { %1441 = vrot.lane.b32.xlu1 %v4588_v18, %s5908_s17  ;;  %v1203_v18 = vrot.slane %v1196_v15, %v4565_v5 }
  0x5d   : > { %1439 = vrot.lane.b32.xlu0 %v1416_v45, %s5908_s17  ;;  %s5912_s17 = smov 14  }
  0x60   : > { %1503 = vrot.lane.b32.xlu1 %v4602_v23, %s5916_s20 }
  0x61   : > { %1501 = vrot.lane.b32.xlu0 %v4605_v24, %s5916_s20 }
  0x64   : > { %1565 = vrot.lane.b32.xlu1 %v4576_v9, %s5910_s21  ;;  %v824_v9 = vcombine.low %v4731_v6, %v4731_v6 }
  0x65   : > { %1563 = vrot.lane.b32.xlu0 %v4613_v27, %s5910_s21  ;;  %s4522_s21 = smov 124   ;;  %v4788_v27 = vrot.slane %v4777_v20, %v4565_v5 }
  0x66   : > { %v831_v10 = vrot.slane %v824_v9, %v4565_v5 }
  0x68   : > { %1627 = vrot.lane.b32.xlu1 %v1609_v48, %s5914_s22 }
  0x69   : > { %1625 = vrot.lane.b32.xlu0 %v1602_v49, %s5914_s22  ;;  %s5938_s22 = smov 32  }
  0x6c   : > { %1689 = vrot.lane.b32.xlu1 %v1602_v49, %s5912_s17  ;;  %v4828_v49 = vrot.slane %v4816_v42, %v4565_v5 }
  0x6d   : > { %1687 = vrot.lane.b32.xlu0 %v1664_v52, %s5912_s17  ;;  %s5937_s17 = smov 92   ;;  %v4836_v52 = vld [vmem:[%s4570_s23 + $0x28] sm:$0xff] }
  0x6e   : > { %v1741_v61 = vrot.slane %v4836_v52, %v4565_v5 }
  0x70   : > { %1751 = vrot.lane.b32.xlu1 %v1733_v55, %s4522_s21 }
  0x71   : > { %1749 = vrot.lane.b32.xlu0 %v1726_v56, %s4522_s21 }
  0x74   : > { %347 = vrot.lane.b32.xlu1 %v335_v59, %s4499_s24 }
  0x75   : > { %284 = vrot.lane.b32.xlu0 %v4697_v60, %s4500_s25 }
  0x78   : > { %471 = vrot.lane.b32.xlu1 %v335_v59, %s4501_s26 }
  0x79   : > { %409 = vrot.lane.b32.xlu0 %v4707_v62, %s4502_s27 }
  0x7c   : > { %595 = vrot.lane.b32.xlu1 %v4722_v2, %s4504_s29 }
  0x7d   : > { %533 = vrot.lane.b32.xlu0 %v4726_v3, %s4503_s28 }
  0x80   : > { %719 = vrot.lane.b32.xlu1 %v707_v7, %s4506_s6 }
  0x81   : > { %657 = vrot.lane.b32.xlu0 %v4740_v8, %s4505_s30 }
  0x84   : > { %843 = vrot.lane.b32.xlu1 %v831_v10, %s4508_s8 }
  0x85   : > { %781 = vrot.lane.b32.xlu0 %v4740_v8, %s4507_s7 }
  0x86   : > { %v4758_v13 = vpop.permute.xlu1 %345 }
  0x87   : > { %v281_v14 = vpop.permute.xlu0 %280  ;;  %v352_v23 = vrot.slane %v4758_v13, 4 }
  0x88   : > { %967 = vrot.lane.b32.xlu1 %v831_v10, %s4510_s10  ;;  %v288_v24 = vrot.slane %v281_v14, 4 }
  0x89   : > { %905 = vrot.lane.b32.xlu0 %v4753_v11, %s4509_s9 }
  0x8a   : > { %v4765_v16 = vpop.permute.xlu1 %469 }
  0x8b   : > { %v406_v17 = vpop.permute.xlu0 %405  ;;  %v476_v35 = vrot.slane %v4765_v16, 4 }
  0x8c   : > { %1091 = vrot.lane.b32.xlu1 %v4722_v2, %s4512_s12  ;;  %v413_v36 = vrot.slane %v406_v17, 4 }
  0x8d   : > { %1029 = vrot.lane.b32.xlu0 %v4726_v3, %s4511_s11 }
  0x8e   : > { %v344_v21 = vpop.permute.xlu1 %343 }
  0x8f   : > { %v4779_v22 = vpop.permute.xlu0 %282  ;;  %v351_v25 = vrot.slane %v344_v21, 4 }
  0x90   : > { %v289_v26 = vrot.slane %v4779_v22, 4  ;;  %1215 = vrot.lane.b32.xlu1 %v1203_v18, %s4514_s14 }
  0x91   : > { %1153 = vrot.lane.b32.xlu0 %v4774_v19, %s4513_s13  ;;  %v355_v29 = vsel %vm292_vm1, %v351_v25, %v352_v23 }
  0x92   : > { %v293_v30 = vsel %vm292_vm1, %v288_v24, %v289_v26  ;;  %v357_v31 = vsel %vm356_vm2, %v344_v21, %v355_v29  ;;  %v4800_v33 = vpop.permute.xlu1 %407 }
  0x93   : > { %v295_v32 = vsel %vm5928_vm3, %v281_v14, %v293_v30  ;;  %v468_v34 = vpop.permute.xlu0 %467  ;;  %367 = vst [vmem:[#allocation2] sm:$0xcc] %v357_v31  ;;  %v414_v37 = vrot.slane %v4800_v33, 4  ;;  %v514_v30 = vcombine.high %v4712_v0, %v4712_v0 }
  0x94   : > { %305 = vst [vmem:[#allocation2] sm:$0x33] %v295_v32  ;;  %v475_v38 = vrot.slane %v468_v34, 4  ;;  %1381 = vrot.lane.b32.xlu1 %v4788_v27, %s4516_s16 }
  0x95   : > { %1277 = vrot.lane.b32.xlu0 %v4774_v19, %s5917_s15  ;;  %v417_v40 = vsel %vm292_vm1, %v413_v36, %v414_v37  ;;  %s5940_s15 = smov 14   ;;  %v4887_v0 = vrot.slane %v514_v30, %v4565_v5  ;;  %v1134_v30 = vcombine.high %v4756_v12, %v4756_v12 }
  0x96   : > { %v479_v41 = vsel %vm292_vm1, %v475_v38, %v476_v35  ;;  %v419_v43 = vsel %vm418_vm4, %v406_v17, %v417_v40  ;;  %v4820_v45 = vpop.permute.xlu1 %531  ;;  %v390_v17 = vcombine.high %v4681_v54, %v4681_v54  ;;  %v638_v40 = vcombine.high %v4715_v1, %v4715_v1 }
  0x97   : > { %v481_v44 = vsel %vm480_vm5, %v468_v34, %v479_v41  ;;  %v530_v46 = vpop.permute.xlu0 %529  ;;  %429 = vst [vmem:[#allocation2 + $0x1c] sm:$0x33] %v419_v43  ;;  %v538_v47 = vrot.slane %v4820_v45, 4  ;;  %v4523_v43 = vmov 0   ;;  %v1148_v12 = vrot.slane %v1134_v30, %v4565_v5 }
  0x98   : > { %491 = vst [vmem:[#allocation2 + $0x1c] sm:$0xcc] %v481_v44  ;;  %v537_v48 = vrot.slane %v530_v46, 4  ;;  %1505 = vrot.lane.b32.xlu1 %v4726_v3, %s5916_s20  ;;  %s5939_s20 = smov 108   ;;  %v265_v3 = vcombine.high %v4690_v58, %v4690_v58  ;;  %v404_v54 = vrot.slane %v390_v17, %v4565_v5  ;;  %4392 = vset.pattern.permute.xlu0 %v4523_v43 }
  0x99   : > { %1443 = vrot.lane.b32.xlu0 %v1431_v39, %s5937_s17  ;;  %4393 = vset.pattern.permute.xlu1 %v4523_v43  ;;  %v652_v1 = vrot.slane %v638_v40, %v4565_v5  ;;  %v1362_v43 = vcombine.high %v4777_v20, %v4777_v20 }
  0x9a   : > { %v541_v51 = vsel %vm292_vm1, %v537_v48, %v538_v47  ;;  %v4839_v55 = vpop.permute.xlu1 %593  ;;  %v279_v58 = vrot.slane %v265_v3, %v4565_v5 }
  0x9b   : > { %v543_v53 = vsel %vm542_vm6, %v530_v46, %v541_v51  ;;  %v592_v56 = vpop.permute.xlu0 %591  ;;  %v600_v57 = vrot.slane %v4839_v55, 4  ;;  %v1376_v20 = vrot.slane %v1362_v43, %v4565_v5 }
  0x9c   : > { %553 = vst [vmem:[#allocation2 + $0x38] sm:$0x33] %v543_v53  ;;  %v599_v59 = vrot.slane %v592_v56, 4  ;;  %1629 = vrot.lane.b32.xlu1 %v4828_v49, %s5938_s22 }
  0x9d   : > { %1567 = vrot.lane.b32.xlu0 %v4722_v2, %s5939_s20 }
  0x9e   : > { %v603_v4 = vsel %vm292_vm1, %v599_v59, %v600_v57  ;;  %v4855_v9 = vpop.permute.xlu1 %655 }
  0x9f   : > { %v605_v7 = vsel %vm604_vm7, %v592_v56, %v603_v4  ;;  %v654_v10 = vpop.permute.xlu0 %653  ;;  %v4417_v14 = vld [vmem:[#allocation2] ss:$28 sps:$4 sm:$0xff]   ;;  %v662_v2 = vrot.slane %v4855_v9, 4  ;;  %v886_v4 = vcombine.high %v4731_v6, %v4731_v6 }
  0xa0   : > { %615 = vst [vmem:[#allocation2 + $0x38] sm:$0xcc] %v605_v7  ;;  %v661_v15 = vrot.slane %v654_v10, 4  ;;  %1753 = vrot.lane.b32.xlu1 %v1741_v61, %s4522_s21  ;;  %3999 = vmatprep.subr.bf16.mxu0 %v4417_v14 }
  0xa1   : > { %1691 = vrot.lane.b32.xlu0 %v1679_v63, %s5940_s15  ;;  %4000 = vmatpush3.bf16.msra.mxu0 %v4417_v14  ;;  %v900_v6 = vrot.slane %v886_v4, %v4565_v5 }
  0xa2   : > { %v665_v18 = vsel %vm292_vm1, %v661_v15, %v662_v2  ;;  %v4867_v24 = vpop.permute.xlu1 %717 }
  0xa3   : > { %v667_v21 = vsel %vm666_vm8, %v654_v10, %v665_v18  ;;  %v716_v25 = vpop.permute.xlu0 %715  ;;  %v724_v28 = vrot.slane %v4867_v24, 4 }
  0xa4   : > { %677 = vst [vmem:[#allocation2 + $0x54] sm:$0x33] %v667_v21  ;;  %v723_v29 = vrot.slane %v716_v25, 4  ;;  %349 = vrot.lane.b32.xlu1 %v4707_v62, %s4499_s24  ;;  %s5942_s24 = smov 16  }
  0xa5   : > { %286 = vrot.lane.b32.xlu0 %v279_v58, %s4500_s25 }
  0xa6   : > { %v727_v31 = vsel %vm292_vm1, %v723_v29, %v724_v28  ;;  %v4880_v34 = vpop.permute.xlu1 %779 }
  0xa7   : > { %v729_v32 = vsel %vm728_vm9, %v716_v25, %v727_v31  ;;  %v778_v36 = vpop.permute.xlu0 %777  ;;  %v786_v38 = vrot.slane %v4880_v34, 4 }
  0xa8   : > { %739 = vst [vmem:[#allocation2 + $0x54] sm:$0xcc] %v729_v32  ;;  %v785_v39 = vrot.slane %v778_v36, 4  ;;  %473 = vrot.lane.b32.xlu1 %v4707_v62, %s4501_s26 }
  0xa9   : > { %411 = vrot.lane.b32.xlu0 %v404_v54, %s4502_s27 }
  0xaa   : > { %v789_v41 = vsel %vm292_vm1, %v785_v39, %v786_v38  ;;  %v4895_v46 = vpop.permute.xlu1 %841 }
  0xab   : > { %v791_v44 = vsel %vm790_vm10, %v778_v36, %v789_v41  ;;  %v840_v62 = vpop.permute.xlu0 %839  ;;  %v848_v48 = vrot.slane %v4895_v46, 4 }
  0xac   : > { %801 = vst [vmem:[#allocation2 + $0x70] sm:$0x33] %v791_v44  ;;  %v847_v50 = vrot.slane %v840_v62, 4  ;;  %597 = vrot.lane.b32.xlu1 %v4697_v60, %s4504_s29 }
  0xad   : > { %535 = vrot.lane.b32.xlu0 %v4887_v0, %s4503_s28 }
  0xae   : > { %v851_v51 = vsel %vm292_vm1, %v847_v50, %v848_v48  ;;  %v4907_v56 = vpop.permute.xlu1 %903 }
  0xaf   : > { %v853_v53 = vsel %vm852_vm11, %v840_v62, %v851_v51  ;;  %v902_v59 = vpop.permute.xlu0 %901  ;;  %v4422_v61 = vld [vmem:[#allocation2 + $0x38] ss:$28 sps:$4 sm:$0xff]   ;;  %v910_v63 = vrot.slane %v4907_v56, 4 }
  0xb0   : > { %863 = vst [vmem:[#allocation2 + $0x70] sm:$0xcc] %v853_v53  ;;  %v909_v3 = vrot.slane %v902_v59, 4  ;;  %721 = vrot.lane.b32.xlu1 %v4740_v8, %s4506_s6  ;;  %4001 = vmatprep.subr.bf16.mxu0 %v4422_v61 }
  0xb1   : > { %659 = vrot.lane.b32.xlu0 %v652_v1, %s4505_s30  ;;  %4002 = vmatpush3.bf16.msra.mxu0 %v4422_v61  ;;  %s3823_s30 = sshll.u32 %s5986_s19, 5 }
  0xb2   : > { %v913_v7 = vsel %vm292_vm1, %v909_v3, %v910_v63  ;;  %v4919_v14 = vpop.permute.xlu1 %965 }
  0xb3   : > { %v915_v10 = vsel %vm5930_vm12, %v902_v59, %v913_v7  ;;  %v964_v15 = vpop.permute.xlu0 %963  ;;  %v972_v58 = vrot.slane %v4919_v14, 4 }
  0xb4   : > { %925 = vst [vmem:[#allocation2 + $0x8c] sm:$0x33] %v915_v10  ;;  %v971_v8 = vrot.slane %v964_v15, 4  ;;  %845 = vrot.lane.b32.xlu1 %v4753_v11, %s4508_s8 }
  0xb5   : > { %783 = vrot.lane.b32.xlu0 %v652_v1, %s4507_s7 }
  0xb6   : > { %v975_v17 = vsel %vm292_vm1, %v971_v8, %v972_v58  ;;  %v4930_v21 = vpop.permute.xlu1 %1027  ;;  %v1610_v8 = vcombine.high %v4816_v42, %v4816_v42 }
  0xb7   : > { %v977_v18 = vsel %vm5931_vm13, %v964_v15, %v975_v17  ;;  %v1026_v25 = vpop.permute.xlu0 %1025  ;;  %v1034_v29 = vrot.slane %v4930_v21, 4 }
  0xb8   : > { %987 = vst [vmem:[#allocation2 + $0x8c] sm:$0xcc] %v977_v18  ;;  %v1033_v54 = vrot.slane %v1026_v25, 4  ;;  %969 = vrot.lane.b32.xlu1 %v4753_v11, %s4510_s10  ;;  %v1302_v11 = vld [vmem:[%s4570_s23 + $0x8] sm:$0x3f]  ;;  %s5941_s23 = smov 82   ;;  %v1624_v42 = vrot.slane %v1610_v8, %v4565_v5 }
  0xb9   : > { %907 = vrot.lane.b32.xlu0 %v900_v6, %s4509_s9  ;;  %v1320_v44 = vcombine.low %v1302_v11, %v1302_v11  ;;  %3705 = vst.sshfl [vmem:[#allocation2 + $0xf8] sm:$0x30 pattern:$0x76325410] %v1302_v11  ;;  %v1795_v8 = vld [vmem:[%s5905_s3 + $0x10] sm:$0xff] }
  0xba   : > { %v1037_v31 = vsel %vm292_vm1, %v1033_v54, %v1034_v29  ;;  %v4942_v36 = vpop.permute.xlu1 %1089 }
  0xbb   : > { %v1039_v32 = vsel %vm5918_vm14, %v1026_v25, %v1037_v31  ;;  %v1088_v39 = vpop.permute.xlu0 %1087  ;;  %v1096_v40 = vrot.slane %v4942_v36, 4  ;;  %3704 = vst.sshfl [vmem:[#allocation2 + $0xf0] sm:$0xf0 pattern:$0x76325410] %v1320_v44  ;;  %vm5920_vm14 = vcmask 867328   ;;  %v1734_v31 = vcombine.high %v4836_v52, %v4836_v52 }
  0xbc   : > { %1049 = vst [vmem:[#allocation2 + $0xa8] sm:$0x33] %v1039_v32  ;;  %v1095_v41 = vrot.slane %v1088_v39, 4  ;;  %1093 = vrot.lane.b32.xlu1 %v4697_v60, %s4512_s12  ;;  %s5145_s12 = scalar_lea.vmem %s5903_s1, %s3823_s30 }
  0xbd   : > { %1031 = vrot.lane.b32.xlu0 %v4887_v0, %s4511_s11 }
  0xbe   : > { %v1099_v62 = vsel %vm292_vm1, %v1095_v41, %v1096_v40  ;;  %v4957_v1 = vpop.permute.xlu1 %1151 }
  0xbf   : > { %v1101_v50 = vsel %vm5919_vm15, %v1088_v39, %v1099_v62  ;;  %v1150_v51 = vpop.permute.xlu0 %1149  ;;  %v4425_v53 = vld [vmem:[#allocation2 + $0x70] ss:$28 sps:$4 sm:$0xff]   ;;  %v1158_v59 = vrot.slane %v4957_v1, 4  ;;  %vm5921_vm15 = vcmask 769024  }
  0xc0   : > { %1111 = vst [vmem:[#allocation2 + $0xa8] sm:$0xcc] %v1101_v50  ;;  %v1157_v61 = vrot.slane %v1150_v51, 4  ;;  %1217 = vrot.lane.b32.xlu1 %v4774_v19, %s4514_s14  ;;  %4003 = vmatprep.subr.bf16.mxu0 %v4425_v53 }
  0xc1   : > { %1155 = vrot.lane.b32.xlu0 %v1148_v12, %s4513_s13  ;;  %4004 = vmatpush3.bf16.msra.mxu0 %v4425_v53 }
  0xc2   : > { %v1161_v3 = vsel %vm292_vm1, %v1157_v61, %v1158_v59  ;;  %v4968_v7 = vpop.permute.xlu1 %1213  ;;  %v1793_v61 = vld [vmem:[%s5905_s3] sm:$0xff] }
  0xc3   : > { %v1163_v4 = vsel %vm5920_vm14, %v1150_v51, %v1161_v3  ;;  %v1212_v10 = vpop.permute.xlu0 %1211  ;;  %v1220_v15 = vrot.slane %v4968_v7, 4  ;;  %vm5922_vm14 = vcmask 670720  }
  0xc4   : > { %1173 = vst [vmem:[#allocation2 + $0xc4] sm:$0x33] %v1163_v4  ;;  %v1219_v19 = vrot.slane %v1212_v10, 4  ;;  %1383 = vrot.lane.b32.xlu1 %v1376_v20, %s4516_s16  ;;  %s4357_s16 = smul.u32 224, %s5986_s19 }
  0xc5   : > { %1279 = vrot.lane.b32.xlu0 %v1148_v12, %s5941_s23 }
  0xc6   : > { %v1223_v6 = vsel %vm292_vm1, %v1219_v19, %v1220_v15  ;;  %v4979_v18 = vpop.permute.xlu1 %1275 }
  0xc7   : > { %v1225_v17 = vsel %vm5921_vm15, %v1212_v10, %v1223_v6  ;;  %v1274_v25 = vpop.permute.xlu0 %1273  ;;  %v1282_v54 = vrot.slane %v4979_v18, 4  ;;  %vm5923_vm15 = vcmask 900096   ;;  %v1796_v6 = vld [vmem:[%s5905_s3 + $0x18] sm:$0xff] }
  0xc8   : > { %1235 = vst [vmem:[#allocation2 + $0xc4] sm:$0xcc] %v1225_v17  ;;  %v1281_v30 = vrot.slane %v1274_v25, 4  ;;  %1507 = vrot.lane.b32.xlu1 %v4887_v0, %s5942_s24 }
  0xc9   : > { %1445 = vrot.lane.b32.xlu0 %v4788_v27, %s5937_s17  ;;  %v1748_v27 = vrot.slane %v1734_v31, %v4565_v5  ;;  %s5842_s17 = scalar_lea.vmem %s5907_s5, %s4357_s16 }
  0xca   : > { %v1285_v32 = vsel %vm292_vm1, %v1281_v30, %v1282_v54  ;;  %v4993_v41 = vpop.permute.xlu1 %1379 }
  0xcb   : > { %v1287_v39 = vsel %vm5922_vm14, %v1274_v25, %v1285_v32  ;;  %v1378_v11 = vpop.permute.xlu0 %1377  ;;  %v1386_v0 = vrot.slane %v4993_v41, 4  ;;  %vm5924_vm14 = vcmask 752640  }
  0xcc   : > { %1297 = vst [vmem:[#allocation2 + $0xe0] sm:$0x33] %v1287_v39  ;;  %v1385_v12 = vrot.slane %v1378_v11, 4  ;;  %1631 = vrot.lane.b32.xlu1 %v1624_v42, %s5938_s22  ;;  %v1797_v39 = vld [vmem:[%s5905_s3 + $0x20] sm:$0xff] }
  0xcd   : > { %1569 = vrot.lane.b32.xlu0 %v4697_v60, %s5939_s20  ;;  %v1794_v60 = vld [vmem:[%s5905_s3 + $0x8] sm:$0xff] }
  0xce   : > { %v1389_v52 = vsel %vm292_vm1, %v1385_v12, %v1386_v0  ;;  %v5004_v44 = vpop.permute.xlu1 %1441 }
  0xcf   : > { %v1391_v43 = vsel %vm5923_vm15, %v1378_v11, %v1389_v52  ;;  %v1440_v62 = vpop.permute.xlu0 %1439  ;;  %v4429_v50 = vld [vmem:[#allocation2 + $0xa8] ss:$28 sps:$4 sm:$0xff]   ;;  %v1448_v51 = vrot.slane %v5004_v44, 4  ;;  %vm5925_vm15 = vcmask 130048  }
  0xd0   : > { %1401 = vst [vmem:[#allocation2 + $0xfc] sm:$0x33] %v1391_v43  ;;  %v1447_v53 = vrot.slane %v1440_v62, 4  ;;  %1755 = vrot.lane.b32.xlu1 %v1748_v27, %s4522_s21  ;;  %4005 = vmatprep.subr.bf16.mxu0 %v4429_v50  ;;  %v1798_v11 = vld [vmem:[%s5905_s3 + $0x28] sm:$0xff] }
  0xd1   : > { %1693 = vrot.lane.b32.xlu0 %v4828_v49, %s5940_s15  ;;  %4006 = vmatpush3.bf16.msra.mxu0 %v4429_v50 }
  0xd2   : > { %v1451_v5 = vsel %vm292_vm1, %v1447_v53, %v1448_v51  ;;  %v5020_v3 = vpop.permute.xlu1 %1503 }
  0xd3   : > { %v1453_v20 = vsel %vm5924_vm14, %v1440_v62, %v1451_v5  ;;  %v1502_v4 = vpop.permute.xlu0 %1501  ;;  %v1510_v49 = vrot.slane %v5020_v3, 4  ;;  %vm5926_vm14 = vcmask 883712   ;;  %v1799_v5 = vld [vmem:[%s5905_s3 + $0x30] sm:$0xff] }
  0xd4   : > { %1463 = vst [vmem:[#allocation2 + $0xfc] sm:$0xcc] %v1453_v20  ;;  %v1509_v10 = vrot.slane %v1502_v4, 4  ;;  %1837 = vperm.xlu1 %4393, %v1794_v60  }
  0xd5   : > { %1832 = vperm.xlu0 %4392, %v1793_v61  }
  0xd6   : > { %v1513_v19 = vsel %vm292_vm1, %v1509_v10, %v1510_v49  ;;  %v5033_v25 = vpop.permute.xlu1 %1565 }
  0xd7   : > { %v1515_v17 = vsel %vm5925_vm15, %v1502_v4, %v1513_v19  ;;  %v1564_v30 = vpop.permute.xlu0 %1563  ;;  %v1572_v42 = vrot.slane %v5033_v25, 4  ;;  %vm5927_vm15 = vcmask 261120   ;;  %v1800_v4 = vld [vmem:[%s5905_s3 + $0x38] sm:$0xff] }
  0xd8   : > { %1525 = vst [vmem:[#allocation2 + $0x118] sm:$0x33] %v1515_v17  ;;  %v1571_v31 = vrot.slane %v1564_v30, 4  ;;  %1842 = vperm.xlu1 %4393, %v1795_v8  }
  0xd9   : > { %1847 = vperm.xlu0 %4392, %v1796_v6   ;;  %v1801_v6 = vld [vmem:[%s5905_s3 + $0x40] sm:$0xff] }
  0xda   : > { %v1575_v32 = vsel %vm292_vm1, %v1571_v31, %v1572_v42  ;;  %v5046_v27 = vpop.permute.xlu1 %1627 }
  0xdb   : > { %v1577_v12 = vsel %vm5926_vm14, %v1564_v30, %v1575_v32  ;;  %v1626_v52 = vpop.permute.xlu0 %1625  ;;  %v4430_v43 = vld [vmem:[#allocation2 + $0xe0] ss:$28 sps:$4 sm:$0xff]   ;;  %v1634_v62 = vrot.slane %v5046_v27, 4  ;;  %vm1700_vm14 = vcmask 113664   ;;  %v1802_v32 = vld [vmem:[%s5905_s3 + $0x48] sm:$0xff] }
  0xdc   : > { %1587 = vst [vmem:[#allocation2 + $0x118] sm:$0xcc] %v1577_v12  ;;  %v1633_v50 = vrot.slane %v1626_v52, 4  ;;  %4007 = vmatprep.subr.bf16.mxu0 %v4430_v43  ;;  %1852 = vperm.xlu1 %4393, %v1797_v39  }
  0xdd   : > { %4008 = vmatpush3.bf16.msra.mxu0 %v4430_v43  ;;  %1857 = vperm.xlu0 %4392, %v1798_v11  }
  0xde   : > { %v1637_v53 = vsel %vm292_vm1, %v1633_v50, %v1634_v62  ;;  %v5056_v61 = vpop.permute.xlu1 %1689 }
  0xdf   : > { %v1639_v60 = vsel %vm5927_vm15, %v1626_v52, %v1637_v53  ;;  %v1688_v20 = vpop.permute.xlu0 %1687  ;;  %v1696_v10 = vrot.slane %v5056_v61, 4  ;;  %vm1762_vm15 = vcmask 1014784   ;;  %v1803_v52 = vld [vmem:[%s5905_s3 + $0x50] sm:$0xff] }
  0xe0   : > { %1649 = vst [vmem:[#allocation2 + $0x134] sm:$0x33] %v1639_v60  ;;  %v1695_v19 = vrot.slane %v1688_v20, 4  ;;  %1862 = vperm.xlu1 %4393, %v1799_v5   ;;  %v1804_v5 = vld [vmem:[%s5905_s3 + $0x58] sm:$0xff] }
  0xe1   : > { %1867 = vperm.xlu0 %4392, %v1800_v4  }
  0xe2   : > { %v1699_v8 = vsel %vm292_vm1, %v1695_v19, %v1696_v10  ;;  %v5069_v30 = vpop.permute.xlu1 %1751 }
  0xe3   : > { %v1701_v17 = vsel %vm1700_vm14, %v1688_v20, %v1699_v8  ;;  %v1750_v31 = vpop.permute.xlu0 %1749  ;;  %v1758_v39 = vrot.slane %v5069_v30, 4  ;;  %v1805_v8 = vld [vmem:[%s5905_s3 + $0x60] sm:$0xff] }
  0xe4   : > { %1711 = vst [vmem:[#allocation2 + $0x134] sm:$0xcc] %v1701_v17  ;;  %v1757_v11 = vrot.slane %v1750_v31, 4  ;;  %1872 = vperm.xlu1 %4393, %v1801_v6   ;;  %v1806_v6 = vld [vmem:[%s5905_s3 + $0x68] sm:$0xff] }
  0xe5   : > { %1877 = vperm.xlu0 %4392, %v1802_v32  }
  0xe6   : > { %v1761_v12 = vsel %vm292_vm1, %v1757_v11, %v1758_v39  ;;  %v5082_v50 = vpop.permute.xlu1 %347 }
  0xe7   : > { %v1763_v43 = vsel %vm1762_vm15, %v1750_v31, %v1761_v12  ;;  %v5084_v53 = vpop.permute.xlu0 %284  ;;  %v353_v60 = vrot.slane %v5082_v50, 4 }
  0xe8   : > { %1773 = vst [vmem:[#allocation2 + $0x150] sm:$0x33] %v1763_v43  ;;  %v290_v20 = vrot.slane %v5084_v53, 4  ;;  %1882 = vperm.xlu1 %4393, %v1803_v52   ;;  %v1807_v52 = vld [vmem:[%s5905_s3 + $0x70] sm:$0xff] }
  0xe9   : > { %v358_v4 = vsel %vm292_vm1, %v352_v23, %v353_v60  ;;  %1887 = vperm.xlu0 %4392, %v1804_v5  }
  0xea   : > { %v296_v19 = vsel %vm292_vm1, %v289_v26, %v290_v20  ;;  %v359_v17 = vsel %vm356_vm2, %v4758_v13, %v358_v4  ;;  %v5111_v31 = vpop.permute.xlu1 %471 }
  0xeb   : > { %v297_v23 = vsel %vm5928_vm3, %v4779_v22, %v296_v19  ;;  %v5113_v32 = vpop.permute.xlu0 %409  ;;  %v4431_v26 = vld [vmem:[#allocation2 + $0x118] ss:$28 sps:$4 sm:$0xff]   ;;  %368 = vst [vmem:[#allocation2 + $0x8] sm:$0xcc] %v359_v17  ;;  %v477_v11 = vrot.slane %v5111_v31, 4  ;;  %vm2014_vm3 = vcmask 1041408  }
  0xec   : > { %306 = vst [vmem:[#allocation2 + $0x8] sm:$0x33] %v297_v23  ;;  %v415_v12 = vrot.slane %v5113_v32, 4  ;;  %4009 = vmatprep.subr.bf16.mxu0 %v4431_v26  ;;  %1892 = vperm.xlu1 %4393, %v1805_v8   ;;  %v5154_v17 = vld [vmem:[%s5904_s2 + $0x8] sm:$0xff]  }
  0xed   : > { %v482_v13 = vsel %vm292_vm1, %v476_v35, %v477_v11  ;;  %4010 = vmatpush3.bf16.msra.mxu0 %v4431_v26  ;;  %1897 = vperm.xlu0 %4392, %v1806_v6   ;;  %v4433_v6 = vld [vmem:[#allocation2 + $0x4] ss:$28 sps:$4 sm:$0xff]  }
  0xee   : > { %v420_v22 = vsel %vm292_vm1, %v414_v37, %v415_v12  ;;  %v483_v43 = vsel %vm480_vm5, %v4765_v16, %v482_v13  ;;  %v5135_v35 = vpop.permute.xlu1 %595  ;;  %v1808_v37 = vld [vmem:[%s5905_s3 + $0x78] sm:$0xff]  ;;  %v5169_v13 = vld [vmem:[%s5904_s2 + $0x10] sm:$0xff]  }
  0xef   : > { %v421_v5 = vsel %vm418_vm4, %v4800_v33, %v420_v22  ;;  %v5137_v4 = vpop.permute.xlu0 %533  ;;  %v4432_v19 = vld [vmem:[#allocation2 + $0x150] ss:$0 sps:$4 sm:$0x33]   ;;  %492 = vst [vmem:[#allocation2 + $0x24] sm:$0xcc] %v483_v43  ;;  %v601_v16 = vrot.slane %v5135_v35, 4 }
  0xf0   : > { %430 = vst [vmem:[#allocation2 + $0x24] sm:$0x33] %v421_v5  ;;  %v539_v33 = vrot.slane %v5137_v4, 4  ;;  %4349 = vmatprep.subr.msk.bf16.mxu0 %vm2014_vm3, %v4432_v19  ;;  %v2016_v8 = vsel %vm2014_vm3, %v4432_v19, 0  ;;  %1902 = vperm.xlu1 %4393, %v1807_v52   ;;  %v1813_v22 = vld [vmem:[%s5145_s12] sm:$0xff] }
  0xf1   : > { %v606_v23 = vsel %vm292_vm1, %v600_v57, %v601_v16  ;;  %4012 = vmatpush3.bf16.msra.mxu0 %v2016_v8  ;;  %1907 = vperm.xlu0 %4392, %v1808_v37   ;;  %v1814_v37 = vld [vmem:[%s5145_s12 + $0x8] sm:$0xff] }
  0xf2   : > { %v544_v26 = vsel %vm292_vm1, %v538_v47, %v539_v33  ;;  %v607_v52 = vsel %vm604_vm7, %v4839_v55, %v606_v23  ;;  %v5176_v43 = vpop.permute.xlu1 %719  ;;  %4049 = vmatprep.subr.bf16.mxu0 %v4433_v6  ;;  %v4436_v55 = vld [vmem:[#allocation2 + $0x3c] ss:$28 sps:$4 sm:$0xff]   ;;  %v1815_v23 = vld [vmem:[%s5145_s12 + $0x10] sm:$0xff] }
  0xf3   : > { %v545_v57 = vsel %vm542_vm6, %v4820_v45, %v544_v26  ;;  %v5178_v5 = vpop.permute.xlu0 %657  ;;  %616 = vst [vmem:[#allocation2 + $0x40] sm:$0xcc] %v607_v52  ;;  %v725_v47 = vrot.slane %v5176_v43, 4 }
  0xf4   : > { %554 = vst [vmem:[#allocation2 + $0x40] sm:$0x33] %v545_v57  ;;  %v5929_v19 = vrot.slane %v5178_v5, 4  ;;  %4014 = vmatmul.mubr.msk.bf16.vlgmr.msra.gmra.mrb[0].mxu0 %vm1989_vm0, %v5154_v17  ;;  %2141 = vperm.xlu1 %4393, %v1813_v22   ;;  %v1816_v57 = vld [vmem:[%s5145_s12 + $0x18] sm:$0xff] }
  0xf5   : > { %v730_v45 = vsel %vm292_vm1, %v724_v28, %v725_v47  ;;  %4050 = vmatpush3.bf16.msra.mxu0 %v4433_v6  ;;  %4017 = vmatprep.mubr.msk.bf16.mxu0 %vm1989_vm0, %v5169_v13 }
  0xf6   : > { %v668_v8 = vsel %vm292_vm1, %v662_v2, %v5929_v19  ;;  %v731_v26 = vsel %vm728_vm9, %v4867_v24, %v730_v45  ;;  %v5202_v52 = vpop.permute.xlu1 %843  ;;  %4051 = vmatprep.subr.bf16.mxu0 %v4436_v55  ;;  %2146 = vperm.xlu0 %4392, %v1814_v37   ;;  %v4437_v19 = vld [vmem:[#allocation2 + $0x74] ss:$28 sps:$4 sm:$0xff]   ;;  %v5212_v24 = vld [vmem:[%s5904_s2 + $0x18] sm:$0xff]   ;;  %v5227_v45 = vld [vmem:[%s5904_s2 + $0x20] sm:$0xff]  }
  0xf7   : > { %v669_v22 = vsel %vm666_vm8, %v4855_v9, %v668_v8  ;;  %v5204_v28 = vpop.permute.xlu0 %781  ;;  %740 = vst [vmem:[#allocation2 + $0x5c] sm:$0xcc] %v731_v26  ;;  %v849_v2 = vrot.slane %v5202_v52, 4 }
  0xf8   : > { %678 = vst [vmem:[#allocation2 + $0x5c] sm:$0x33] %v669_v22  ;;  %v787_v6 = vrot.slane %v5204_v28, 4  ;;  %2151 = vperm.xlu1 %4393, %v1815_v23   ;;  %v4440_v22 = vld [vmem:[#allocation2 + $0xac] ss:$28 sps:$4 sm:$0xff]  }
  0xf9   : > { %v854_v9 = vsel %vm292_vm1, %v848_v48, %v849_v2  ;;  %4052 = vmatpush3.bf16.msra.mxu0 %v4436_v55 }
  0xfa   : > { %v792_v37 = vsel %vm292_vm1, %v786_v38, %v787_v6  ;;  %v855_v8 = vsel %vm852_vm11, %v4895_v46, %v854_v9  ;;  %v5233_v26 = vpop.permute.xlu1 %967  ;;  %4053 = vmatprep.subr.bf16.mxu0 %v4437_v19  ;;  %2156 = vperm.xlu0 %4392, %v1816_v57  }
  0xfb   : > { %v793_v23 = vsel %vm790_vm10, %v4880_v34, %v792_v37  ;;  %v5235_v48 = vpop.permute.xlu0 %905  ;;  %864 = vst [vmem:[#allocation2 + $0x78] sm:$0xcc] %v855_v8  ;;  %v973_v38 = vrot.slane %v5233_v26, 4 }
  0xfc   : > { %802 = vst [vmem:[#allocation2 + $0x78] sm:$0x33] %v793_v23  ;;  %v911_v55 = vrot.slane %v5235_v48, 4  ;;  %4018 = vmatmul.mubr.msk.bf16.gmra.mrb[4].mxu0 %vm1989_vm0, %v5212_v24  ;;  %v5266_v23 = vld [vmem:[%s5904_s2 + $0x28] sm:$0xff]  }
  0xfd   : > { %v978_v34 = vsel %vm292_vm1, %v972_v58, %v973_v38  ;;  %4054 = vmatpush3.bf16.msra.mxu0 %v4437_v19  ;;  %4021 = vmatprep.mubr.msk.bf16.mxu0 %vm1989_vm0, %v5227_v45  ;;  %v4441_v19 = vld [vmem:[#allocation2 + $0xe4] ss:$28 sps:$4 sm:$0xff]  }
  0xfe   : > { %v916_v46 = vsel %vm292_vm1, %v910_v63, %v911_v55  ;;  %v979_v57 = vsel %vm5931_vm13, %v4919_v14, %v978_v34  ;;  %v5257_v37 = vpop.permute.xlu1 %1091  ;;  %4055 = vmatprep.subr.bf16.mxu0 %v4440_v22  ;;  %v5281_v34 = vld [vmem:[%s5904_s2 + $0x30] sm:$0xff]   ;;  %vm5944_vm13 = vcmask 80896  }
  0xff   : > { %v917_v9 = vsel %vm5930_vm12, %v4907_v56, %v916_v46  ;;  %v5259_v8 = vpop.permute.xlu0 %1029  ;;  %988 = vst [vmem:[#allocation2 + $0x94] sm:$0xcc] %v979_v57  ;;  %v1097_v58 = vrot.slane %v5257_v37, 4  ;;  %vm5943_vm12 = vcmask 932864  }
 0x100   : > { %926 = vst [vmem:[#allocation2 + $0x94] sm:$0x33] %v917_v9  ;;  %v5932_v63 = vrot.slane %v5259_v8, 4 }
 0x101   : > { %v1102_v56 = vsel %vm292_vm1, %v1096_v40, %v1097_v58  ;;  %4056 = vmatpush3.bf16.msra.mxu0 %v4440_v22 }
 0x102   : > { %v1040_v14 = vsel %vm292_vm1, %v1034_v29, %v5932_v63  ;;  %v1103_v46 = vsel %vm5943_vm12, %v4942_v36, %v1102_v56  ;;  %v5287_v9 = vpop.permute.xlu1 %1215  ;;  %4057 = vmatprep.subr.bf16.mxu0 %v4441_v19  ;;  %v4444_v63 = vld [vmem:[#allocation2 + $0x11c] ss:$28 sps:$4 sm:$0xff]   ;;  %vm5945_vm12 = vcmask 769024  }
 0x103   : > { %v1041_v57 = vsel %vm5944_vm13, %v4930_v21, %v1040_v14  ;;  %v5289_v40 = vpop.permute.xlu0 %1153  ;;  %1112 = vst [vmem:[#allocation2 + $0xb0] sm:$0xcc] %v1103_v46  ;;  %v1221_v29 = vrot.slane %v5287_v9, 4  ;;  %vm5946_vm13 = vcmask 867328  }
 0x104   : > { %1050 = vst [vmem:[#allocation2 + $0xb0] sm:$0x33] %v1041_v57  ;;  %v5933_v22 = vrot.slane %v5289_v40, 4  ;;  %4022 = vmatmul.mubr.msk.bf16.gmra.mrb[8].mxu0 %vm1989_vm0, %v5266_v23 }
 0x105   : > { %v1226_v21 = vsel %vm292_vm1, %v1220_v15, %v1221_v29  ;;  %4058 = vmatpush3.bf16.msra.mxu0 %v4441_v19  ;;  %4025 = vmatprep.mubr.msk.bf16.mxu0 %vm1989_vm0, %v5281_v34  ;;  %v4445_v19 = vld [vmem:[#allocation2 + $0x154] ss:$0 sps:$4 sm:$0x33]  }
 0x106   : > { %v1164_v36 = vsel %vm292_vm1, %v1158_v59, %v5933_v22  ;;  %v1227_v56 = vsel %vm5945_vm12, %v4968_v7, %v1226_v21  ;;  %v5311_v46 = vpop.permute.xlu1 %1381  ;;  %4059 = vmatprep.subr.bf16.mxu0 %v4444_v63  ;;  %v5320_v22 = vld [vmem:[%s5904_s2 + $0x38] sm:$0xff]   ;;  %vm5947_vm12 = vcmask 900096  }
 0x107   : > { %v1165_v14 = vsel %vm5946_vm13, %v4957_v1, %v1164_v36  ;;  %v5313_v57 = vpop.permute.xlu0 %1277  ;;  %1236 = vst [vmem:[#allocation2 + $0xcc] sm:$0xcc] %v1227_v56  ;;  %v5934_v15 = vrot.slane %v5311_v46, 4  ;;  %vm5948_vm13 = vcmask 670720  }
 0x108   : > { %1174 = vst [vmem:[#allocation2 + $0xcc] sm:$0x33] %v1165_v14  ;;  %v1283_v59 = vrot.slane %v5313_v57, 4 }
 0x109   : > { %v1392_v1 = vsel %vm292_vm1, %v1386_v0, %v5934_v15  ;;  %4060 = vmatpush3.bf16.msra.mxu0 %v4444_v63 }
 0x10a   : > { %v1288_v7 = vsel %vm292_vm1, %v1282_v54, %v1283_v59  ;;  %v1393_v21 = vsel %vm5947_vm12, %v4993_v41, %v1392_v1  ;;  %v5336_v56 = vpop.permute.xlu1 %1505  ;;  %4350 = vmatprep.subr.msk.bf16.mxu0 %vm2014_vm3, %v4445_v19  ;;  %v2281_v54 = vsel %vm2014_vm3, %v4445_v19, 0  ;;  %v4448_v41 = vld [vmem:[#allocation2 + $0x8] ss:$28 sps:$4 sm:$0xff]   ;;  %vm5949_vm12 = vcmask 130048  }
 0x10b   : > { %v1289_v36 = vsel %vm5948_vm13, %v4979_v18, %v1288_v7  ;;  %v5338_v14 = vpop.permute.xlu0 %1443  ;;  %1402 = vst [vmem:[#allocation2 + $0x104] sm:$0x33] %v1393_v21  ;;  %v1511_v0 = vrot.slane %v5336_v56, 4  ;;  %v5359_v1 = vld [vmem:[%s5904_s2] sm:$0xff]   ;;  %vm5950_vm13 = vcmask 752640  }
 0x10c   : > { %1298 = vst [vmem:[#allocation2 + $0xe8] sm:$0x33] %v1289_v36  ;;  %v1449_v15 = vrot.slane %v5338_v14, 4  ;;  %4026 = vmatmul.mubr.msk.bf16.gmra.mrb[12].mxu0 %vm1989_vm0, %v5320_v22 }
 0x10d   : > { %v1516_v18 = vsel %vm292_vm1, %v1510_v49, %v1511_v0  ;;  %4062 = vmatpush3.bf16.msra.mxu0 %v2281_v54  ;;  %4063 = vmatprep.mubr.msk.bf16.mxu0 %vm1989_vm0, %v5359_v1 }
 0x10e   : > { %v1454_v63 = vsel %vm292_vm1, %v1448_v51, %v1449_v15  ;;  %v1517_v19 = vsel %vm5949_vm12, %v5020_v3, %v1516_v18  ;;  %v5367_v7 = vpop.permute.xlu1 %1629  ;;  %4099 = vmatprep.subr.bf16.mxu0 %v4448_v41  ;;  %vm5951_vm12 = vcmask 261120  }
 0x10f   : > { %v1455_v49 = vsel %vm5950_vm13, %v5004_v44, %v1454_v63  ;;  %v5369_v21 = vpop.permute.xlu0 %1567  ;;  %1526 = vst [vmem:[#allocation2 + $0x120] sm:$0x33] %v1517_v19  ;;  %v1635_v51 = vrot.slane %v5367_v7, 4  ;;  %vm5952_vm13 = vcmask 883712  }
 0x110   : > { %1464 = vst [vmem:[#allocation2 + $0x104] sm:$0xcc] %v1455_v49  ;;  %v5936_v36 = vrot.slane %v5369_v21, 4 }
 0x111   : > { %v1640_v3 = vsel %vm292_vm1, %v1634_v62, %v1635_v51 }
 0x112   : > { %v1578_v44 = vsel %vm292_vm1, %v1572_v42, %v5936_v36  ;;  %v1641_v54 = vsel %vm5951_vm12, %v5046_v27, %v1640_v3  ;;  %v5387_v63 = vpop.permute.xlu1 %1753  ;;  %v4449_v42 = vld [vmem:[#allocation2 + $0x40] ss:$28 sps:$4 sm:$0xff]   ;;  %v4450_v36 = vld [vmem:[#allocation2 + $0x78] ss:$28 sps:$4 sm:$0xff]   ;;  %vm5953_vm12 = vcmask 1031168  }
 0x113   : > { %v1579_v18 = vsel %vm5952_vm13, %v5033_v25, %v1578_v44  ;;  %v5389_v19 = vpop.permute.xlu0 %1691  ;;  %1650 = vst [vmem:[#allocation2 + $0x13c] sm:$0x33] %v1641_v54  ;;  %v5935_v62 = vrot.slane %v5387_v63, 4  ;;  %vm5954_vm13 = vmmov %vm5953_vm12 }
 0x114   : > { %1588 = vst [vmem:[#allocation2 + $0x120] sm:$0xcc] %v1579_v18  ;;  %v1697_v49 = vrot.slane %v5389_v19, 4  ;;  %4064 = vmatmul.mubr.msk.bf16.vlgmr.msra.gmra.mrb[16].mxu0 %vm1989_vm0, %v5154_v17 }
 0x115   : > { %v1764_v25 = vsel %vm292_vm1, %v1758_v39, %v5935_v62  ;;  %4100 = vmatpush3.bf16.msra.mxu0 %v4448_v41  ;;  %4067 = vmatprep.mubr.msk.bf16.mxu0 %vm1989_vm0, %v5169_v13 }
 0x116   : > { %v1702_v27 = vsel %vm292_vm1, %v1696_v10, %v1697_v49  ;;  %v1765_v3 = vsel %vm1762_vm15, %v5069_v30, %v1764_v25  ;;  %v350_v54 = vpop.permute.xlu1 %349  ;;  %4101 = vmatprep.subr.bf16.mxu0 %v4449_v42 }
 0x117   : > { %v1703_v44 = vsel %vm1700_vm14, %v5056_v61, %v1702_v27  ;;  %v287_v18 = vpop.permute.xlu0 %286  ;;  %1774 = vst [vmem:[#allocation2 + $0x158] sm:$0x33] %v1765_v3  ;;  %v354_v39 = vrot.slane %v350_v54, 4 }
 0x118   : > { %1712 = vst [vmem:[#allocation2 + $0x13c] sm:$0xcc] %v1703_v44  ;;  %v291_v62 = vrot.slane %v287_v18, 4 }
 0x119   : > { %v360_v10 = vsel %vm292_vm1, %v353_v60, %v354_v39  ;;  %v362_v41 = vsel %vm356_vm2, %v350_v54, %v354_v39  ;;  %4102 = vmatpush3.bf16.msra.mxu0 %v4449_v42 }
 0x11a   : > { %v298_v30 = vsel %vm292_vm1, %v290_v20, %v291_v62  ;;  %v300_v61 = vsel %vm5953_vm12, %v287_v18, %v291_v62  ;;  %v361_v25 = vsel %vm356_vm2, %v5082_v50, %v360_v10  ;;  %370 = vst [vmem:[#allocation2 + $0x18] sm:$0xc] %v362_v41  ;;  %v474_v3 = vpop.permute.xlu1 %473  ;;  %4103 = vmatprep.subr.bf16.mxu0 %v4450_v36  ;;  %v4451_v20 = vld [vmem:[#allocation2 + $0xb0] ss:$28 sps:$4 sm:$0xff]   ;;  %vm5956_vm2 = vcmask 146432  }
 0x11b   : > { %v299_v27 = vsel %vm5954_vm13, %v5084_v53, %v298_v30  ;;  %308 = vst [vmem:[#allocation2 + $0x18] sm:$0x3] %v300_v61  ;;  %v412_v60 = vpop.permute.xlu0 %411  ;;  %369 = vst [vmem:[#allocation2 + $0x10] sm:$0xcc] %v361_v25  ;;  %v478_v44 = vrot.slane %v474_v3, 4  ;;  %vm5967_vm12 = vcmask 867328  }
 0x11c   : > { %307 = vst [vmem:[#allocation2 + $0x10] sm:$0x33] %v299_v27  ;;  %v416_v54 = vrot.slane %v412_v60, 4  ;;  %4068 = vmatmul.mubr.msk.bf16.gmra.mrb[20].mxu0 %vm1989_vm0, %v5212_v24  ;;  %v4452_v30 = vld [vmem:[#allocation2 + $0xe8] ss:$28 sps:$4 sm:$0xff]  }
 0x11d   : > { %v484_v50 = vsel %vm292_vm1, %v477_v11, %v478_v44  ;;  %v486_v62 = vsel %vm480_vm5, %v474_v3, %v478_v44  ;;  %4104 = vmatpush3.bf16.msra.mxu0 %v4450_v36  ;;  %4071 = vmatprep.mubr.msk.bf16.mxu0 %vm1989_vm0, %v5227_v45 }
 0x11e   : > { %v422_v53 = vsel %vm292_vm1, %v415_v12, %v416_v54  ;;  %v424_v42 = vsel %vm418_vm4, %v412_v60, %v416_v54  ;;  %v485_v18 = vsel %vm480_vm5, %v5111_v31, %v484_v50  ;;  %494 = vst [vmem:[#allocation2 + $0x34] sm:$0xc] %v486_v62  ;;  %v598_v10 = vpop.permute.xlu1 %597  ;;  %4105 = vmatprep.subr.bf16.mxu0 %v4451_v20  ;;  %vm5958_vm5 = vmmov %vm5956_vm2 }
 0x11f   : > { %v423_v39 = vsel %vm418_vm4, %v5113_v32, %v422_v53  ;;  %432 = vst [vmem:[#allocation2 + $0x34] sm:$0x3] %v424_v42  ;;  %v536_v11 = vpop.permute.xlu0 %535  ;;  %493 = vst [vmem:[#allocation2 + $0x2c] sm:$0xcc] %v485_v18  ;;  %v602_v12 = vrot.slane %v598_v10, 4  ;;  %vm5957_vm4 = vcmask 244736  }
 0x120   : > { %431 = vst [vmem:[#allocation2 + $0x2c] sm:$0x33] %v423_v39  ;;  %v540_v41 = vrot.slane %v536_v11, 4 }
 0x121   : > { %v608_v31 = vsel %vm292_vm1, %v601_v16, %v602_v12  ;;  %v610_v36 = vsel %vm604_vm7, %v598_v10, %v602_v12  ;;  %4106 = vmatpush3.bf16.msra.mxu0 %v4451_v20  ;;  %v4454_v10 = vld [vmem:[#allocation2 + $0x158] ss:$0 sps:$4 sm:$0x33]  }
 0x122   : > { %v546_v32 = vsel %vm292_vm1, %v539_v33, %v540_v41  ;;  %v548_v61 = vsel %vm542_vm6, %v536_v11, %v540_v41  ;;  %v609_v25 = vsel %vm604_vm7, %v5135_v35, %v608_v31  ;;  %618 = vst [vmem:[#allocation2 + $0x50] sm:$0xc] %v610_v36  ;;  %v722_v3 = vpop.permute.xlu1 %721  ;;  %4107 = vmatprep.subr.bf16.mxu0 %v4452_v30  ;;  %v4453_v33 = vld [vmem:[#allocation2 + $0x120] ss:$28 sps:$4 sm:$0xff]   ;;  %vm5960_vm7 = vcmask 932864  }
 0x123   : > { %v547_v27 = vsel %vm542_vm6, %v5137_v4, %v546_v32  ;;  %556 = vst [vmem:[#allocation2 + $0x50] sm:$0x3] %v548_v61  ;;  %v660_v16 = vpop.permute.xlu0 %659  ;;  %617 = vst [vmem:[#allocation2 + $0x48] sm:$0xcc] %v609_v25  ;;  %v726_v60 = vrot.slane %v722_v3, 4  ;;  %v5955_v4 = vrot.slane %v5178_v5, 4 }
 0x124   : > { %555 = vst [vmem:[#allocation2 + $0x48] sm:$0x33] %v547_v27  ;;  %v664_v44 = vrot.slane %v660_v16, 4  ;;  %4072 = vmatmul.mubr.msk.bf16.gmra.mrb[24].mxu0 %vm1989_vm0, %v5266_v23  ;;  %v4455_v61 = vld [vmem:[#allocation2 + $0xc] ss:$28 sps:$4 sm:$0xff]   ;;  %vm5959_vm6 = vmmov %vm5957_vm4 }
 0x125   : > { %v732_v35 = vsel %vm292_vm1, %v725_v47, %v726_v60  ;;  %v734_v54 = vsel %vm728_vm9, %v722_v3, %v726_v60  ;;  %4108 = vmatpush3.bf16.msra.mxu0 %v4452_v30  ;;  %4075 = vmatprep.mubr.msk.bf16.mxu0 %vm1989_vm0, %v5281_v34 }
 0x126   : > { %v670_v20 = vsel %vm292_vm1, %v5955_v4, %v664_v44  ;;  %v672_v50 = vsel %vm666_vm8, %v660_v16, %v664_v44  ;;  %v733_v62 = vsel %vm728_vm9, %v5176_v43, %v732_v35  ;;  %742 = vst [vmem:[#allocation2 + $0x6c] sm:$0xc] %v734_v54  ;;  %v846_v42 = vpop.permute.xlu1 %845  ;;  %4109 = vmatprep.subr.bf16.mxu0 %v4453_v33  ;;  %v5961_v35 = vrot.slane %v5259_v8, 4  ;;  %vm5963_vm9 = vmmov %vm5960_vm7 }
 0x127   : > { %v671_v53 = vsel %vm666_vm8, %v5178_v5, %v670_v20  ;;  %680 = vst [vmem:[#allocation2 + $0x6c] sm:$0x3] %v672_v50  ;;  %v784_v47 = vpop.permute.xlu0 %783  ;;  %741 = vst [vmem:[#allocation2 + $0x64] sm:$0xcc] %v733_v62  ;;  %v850_v18 = vrot.slane %v846_v42, 4  ;;  %vm5962_vm8 = vcmask 80896  }
 0x128   : > { %679 = vst [vmem:[#allocation2 + $0x64] sm:$0x33] %v671_v53  ;;  %v788_v39 = vrot.slane %v784_v47, 4 }
 0x129   : > { %v856_v43 = vsel %vm292_vm1, %v849_v2, %v850_v18  ;;  %v858_v11 = vsel %vm852_vm11, %v846_v42, %v850_v18  ;;  %4110 = vmatpush3.bf16.msra.mxu0 %v4453_v33  ;;  %v4456_v42 = vld [vmem:[#allocation2 + $0x44] ss:$28 sps:$4 sm:$0xff]   ;;  %v5966_v18 = vrot.slane %v5289_v40, 4 }
 0x12a   : > { %v794_v5 = vsel %vm292_vm1, %v787_v6, %v788_v39  ;;  %v796_v12 = vsel %vm790_vm10, %v784_v47, %v788_v39  ;;  %v857_v41 = vsel %vm852_vm11, %v5202_v52, %v856_v43  ;;  %866 = vst [vmem:[#allocation2 + $0x88] sm:$0xc] %v858_v11  ;;  %v970_v31 = vpop.permute.xlu1 %969  ;;  %4351 = vmatprep.subr.msk.bf16.mxu0 %vm2014_vm3, %v4454_v10  ;;  %v2514_v6 = vsel %vm2014_vm3, %v4454_v10, 0 }
 0x12b   : > { %v795_v30 = vsel %vm790_vm10, %v5204_v28, %v794_v5  ;;  %804 = vst [vmem:[#allocation2 + $0x88] sm:$0x3] %v796_v12  ;;  %v908_v2 = vpop.permute.xlu0 %907  ;;  %865 = vst [vmem:[#allocation2 + $0x80] sm:$0xcc] %v857_v41  ;;  %v974_v36 = vrot.slane %v970_v31, 4  ;;  %vm5965_vm11 = vcmask 769024  }
 0x12c   : > { %803 = vst [vmem:[#allocation2 + $0x80] sm:$0x33] %v795_v30  ;;  %v912_v32 = vrot.slane %v908_v2, 4  ;;  %4076 = vmatmul.mubr.msk.bf16.gmra.mrb[28].mxu0 %vm1989_vm0, %v5320_v22  ;;  %vm5964_vm10 = vmmov %vm5962_vm8  ;;  %v4457_v41 = vld [vmem:[#allocation2 + $0x7c] ss:$28 sps:$4 sm:$0xff]   ;;  %v5970_v30 = vrot.slane %v5311_v46, 4 }
 0x12d   : > { %v980_v52 = vsel %vm292_vm1, %v973_v38, %v974_v36  ;;  %v982_v28 = vsel %vm5956_vm2, %v970_v31, %v974_v36  ;;  %4112 = vmatpush3.bf16.msra.mxu0 %v2514_v6  ;;  %4113 = vmatprep.mubr.msk.bf16.mxu0 %vm1989_vm0, %v5359_v1  ;;  %vm5968_vm13 = vmmov %vm5965_vm11 }
 0x12e   : > { %v918_v25 = vsel %vm292_vm1, %v911_v55, %v912_v32  ;;  %v920_v27 = vsel %vm5957_vm4, %v908_v2, %v912_v32  ;;  %v981_v3 = vsel %vm5958_vm5, %v5233_v26, %v980_v52  ;;  %990 = vst [vmem:[#allocation2 + $0xa4] sm:$0xc] %v982_v28  ;;  %v1094_v60 = vpop.permute.xlu1 %1093  ;;  %4149 = vmatprep.subr.bf16.mxu0 %v4455_v61  ;;  %vm5969_vm2 = vmmov %vm5967_vm12  ;;  %vm5971_vm4 = vcmask 900096  }
 0x12f   : > { %v919_v16 = vsel %vm5959_vm6, %v5235_v48, %v918_v25  ;;  %928 = vst [vmem:[#allocation2 + $0xa4] sm:$0x3] %v920_v27  ;;  %v1032_v38 = vpop.permute.xlu0 %1031  ;;  %989 = vst [vmem:[#allocation2 + $0x9c] sm:$0xcc] %v981_v3  ;;  %v1098_v55 = vrot.slane %v1094_v60, 4  ;;  %vm5972_vm5 = vcmask 670720  }
 0x130   : > { %927 = vst [vmem:[#allocation2 + $0x9c] sm:$0x33] %v919_v16  ;;  %v1036_v44 = vrot.slane %v1032_v38, 4  ;;  %vm5973_vm6 = vmmov %vm5971_vm4 }
 0x131   : > { %v1104_v33 = vsel %vm292_vm1, %v1097_v58, %v1098_v55  ;;  %v1106_v26 = vsel %vm5960_vm7, %v1094_v60, %v1098_v55  ;;  %vm5974_vm7 = vmmov %vm5972_vm5  ;;  %v4459_v55 = vld [vmem:[#allocation2 + $0xec] ss:$28 sps:$4 sm:$0xff]  }
 0x132   : > { %v1042_v48 = vsel %vm292_vm1, %v5961_v35, %v1036_v44  ;;  %v1044_v54 = vsel %vm5962_vm8, %v1032_v38, %v1036_v44  ;;  %v1105_v4 = vsel %vm5963_vm9, %v5257_v37, %v1104_v33  ;;  %1114 = vst [vmem:[#allocation2 + $0xc0] sm:$0xc] %v1106_v26  ;;  %v1218_v50 = vpop.permute.xlu1 %1217  ;;  %vm5975_vm8 = vcmask 130048  }
 0x133   : > { %v1043_v20 = vsel %vm5964_vm10, %v5259_v8, %v1042_v48  ;;  %1052 = vst [vmem:[#allocation2 + $0xc0] sm:$0x3] %v1044_v54  ;;  %v1156_v62 = vpop.permute.xlu0 %1155  ;;  %1113 = vst [vmem:[#allocation2 + $0xb8] sm:$0xcc] %v1105_v4  ;;  %v1222_v58 = vrot.slane %v1218_v50, 4  ;;  %vm5976_vm9 = vcmask 752640  }
 0x134   : > { %1051 = vst [vmem:[#allocation2 + $0xb8] sm:$0x33] %v1043_v20  ;;  %v1160_v53 = vrot.slane %v1156_v62, 4  ;;  %4114 = vmatmul.mubr.msk.bf16.vlgmr.msra.gmra.mrb[32].mxu0 %vm1989_vm0, %v5154_v17  ;;  %vm5977_vm10 = vmmov %vm5975_vm8 }
 0x135   : > { %v1228_v47 = vsel %vm292_vm1, %v1221_v29, %v1222_v58  ;;  %v1230_v37 = vsel %vm5965_vm11, %v1218_v50, %v1222_v58  ;;  %4150 = vmatpush3.bf16.msra.mxu0 %v4455_v61  ;;  %4117 = vmatprep.mubr.msk.bf16.mxu0 %vm1989_vm0, %v5169_v13  ;;  %vm5978_vm11 = vmmov %vm5976_vm9  ;;  %v4460_v50 = vld [vmem:[#allocation2 + $0x124] ss:$28 sps:$4 sm:$0xff]  }
 0x136   : > { %v1166_v8 = vsel %vm292_vm1, %v5966_v18, %v1160_v53  ;;  %v1168_v39 = vsel %vm5967_vm12, %v1156_v62, %v1160_v53  ;;  %v1229_v10 = vsel %vm5968_vm13, %v5287_v9, %v1228_v47  ;;  %1238 = vst [vmem:[#allocation2 + $0xdc] sm:$0xc] %v1230_v37  ;;  %v1384_v11 = vpop.permute.xlu1 %1383  ;;  %4151 = vmatprep.subr.bf16.mxu0 %v4456_v42  ;;  %vm5979_vm12 = vcmask 261120   ;;  %v4461_v37 = vld [vmem:[#allocation2 + $0x15c] ss:$0 sps:$4 sm:$0x33]  }
 0x137   : > { %v1167_v43 = vsel %vm5969_vm2, %v5289_v40, %v1166_v8  ;;  %1176 = vst [vmem:[#allocation2 + $0xdc] sm:$0x3] %v1168_v39  ;;  %v1280_v29 = vpop.permute.xlu0 %1279  ;;  %1237 = vst [vmem:[#allocation2 + $0xd4] sm:$0xcc] %v1229_v10  ;;  %v1388_v5 = vrot.slane %v1384_v11, 4  ;;  %vm5981_vm13 = vcmask 883712  }
 0x138   : > { %1175 = vst [vmem:[#allocation2 + $0xd4] sm:$0x33] %v1167_v43  ;;  %v1284_v12 = vrot.slane %v1280_v29, 4  ;;  %vm5982_vm2 = vmmov %vm5979_vm12  ;;  %v5984_v62 = vrot.slane %v5387_v63, 4  ;;  %v4464_v18 = vld [vmem:[#allocation2 + $0x80] ss:$28 sps:$4 sm:$0xff]  }
 0x139   : > { %v1394_v9 = vsel %vm292_vm1, %v5970_v30, %v1388_v5  ;;  %v1396_v31 = vsel %vm5971_vm4, %v1384_v11, %v1388_v5  ;;  %4152 = vmatpush3.bf16.msra.mxu0 %v4456_v42  ;;  %vm5983_vm4 = vmmov %vm5981_vm13  ;;  %v5608_v5 = vld [vmem:[%s5906_s4] sm:$0xff]  }
 0x13a   : > { %v1290_v40 = vsel %vm292_vm1, %v1283_v59, %v1284_v12  ;;  %v1292_v2 = vsel %vm5972_vm5, %v1280_v29, %v1284_v12  ;;  %v1395_v36 = vsel %vm5973_vm6, %v5311_v46, %v1394_v9  ;;  %1404 = vst [vmem:[#allocation2 + $0x114] sm:$0x3] %v1396_v31  ;;  %v1508_v6 = vpop.permute.xlu1 %1507  ;;  %4153 = vmatprep.subr.bf16.mxu0 %v4457_v41  ;;  %v4458_v59 = vld [vmem:[#allocation2 + $0xb4] ss:$28 sps:$4 sm:$0xff]   ;;  %v4471_v12 = vld [vmem:[#allocation2 + $0x4c] ss:$28 sps:$4 sm:$0xff]  }
 0x13b   : > { %v1291_v32 = vsel %vm5974_vm7, %v5313_v57, %v1290_v40  ;;  %1300 = vst [vmem:[#allocation2 + $0xf8] sm:$0x3] %v1292_v2  ;;  %v1446_v61 = vpop.permute.xlu0 %1445  ;;  %1403 = vst [vmem:[#allocation2 + $0x10c] sm:$0x33] %v1395_v36  ;;  %v1512_v52 = vrot.slane %v1508_v6, 4  ;;  %4045 = vmatprep.mubr.bf16.mxu1 %v5608_v5 }
 0x13c   : > { %1299 = vst [vmem:[#allocation2 + $0xf0] sm:$0x33] %v1291_v32  ;;  %v1450_v28 = vrot.slane %v1446_v61, 4  ;;  %4118 = vmatmul.mubr.msk.bf16.gmra.mrb[36].mxu0 %vm1989_vm0, %v5212_v24  ;;  %v4470_v29 = vld [vmem:[#allocation2 + $0x14] ss:$28 sps:$4 sm:$0xff]  }
 0x13d   : > { %v1518_v46 = vsel %vm292_vm1, %v1511_v0, %v1512_v52  ;;  %v1520_v25 = vsel %vm5975_vm8, %v1508_v6, %v1512_v52  ;;  %4154 = vmatpush3.bf16.msra.mxu0 %v4457_v41  ;;  %4121 = vmatprep.mubr.msk.bf16.mxu0 %vm1989_vm0, %v5227_v45  ;;  %v4472_v41 = vld [vmem:[#allocation2 + $0x84] ss:$28 sps:$4 sm:$0xff]   ;;  %v4477_v36 = vld [vmem:[#allocation2 + $0x18] ss:$28 sps:$4 sm:$0xff]   ;;  %v4478_v32 = vld [vmem:[#allocation2 + $0x50] ss:$28 sps:$4 sm:$0xff]  }
 0x13e   : > { %v1456_v57 = vsel %vm292_vm1, %v1449_v15, %v1450_v28  ;;  %v1458_v27 = vsel %vm5976_vm9, %v1446_v61, %v1450_v28  ;;  %v1519_v3 = vsel %vm5977_vm10, %v5336_v56, %v1518_v46  ;;  %1528 = vst [vmem:[#allocation2 + $0x130] sm:$0x3] %v1520_v25  ;;  %v1632_v60 = vpop.permute.xlu1 %1631  ;;  %4155 = vmatprep.subr.bf16.mxu0 %v4458_v59  ;;  %v4479_v6 = vld [vmem:[#allocation2 + $0x88] ss:$28 sps:$4 sm:$0xff]   ;;  %v4480_v61 = vld [vmem:[#allocation2 + $0xc0] ss:$28 sps:$4 sm:$0xff]  }
 0x13f   : > { %v1457_v16 = vsel %vm5978_vm11, %v5338_v14, %v1456_v57  ;;  %1466 = vst [vmem:[#allocation2 + $0x114] sm:$0xc] %v1458_v27  ;;  %v1570_v0 = vpop.permute.xlu0 %1569  ;;  %1527 = vst [vmem:[#allocation2 + $0x128] sm:$0x33] %v1519_v3  ;;  %v1636_v15 = vrot.slane %v1632_v60, 4  ;;  %v5980_v14 = vrot.slane %v5369_v21, 4 }
 0x140   : > { %1465 = vst [vmem:[#allocation2 + $0x10c] sm:$0xcc] %v1457_v16  ;;  %v1574_v38 = vrot.slane %v1570_v0, 4  ;;  %v4465_v8 = vld [vmem:[#allocation2 + $0xb8] ss:$28 sps:$4 sm:$0xff]  }
 0x141   : > { %v1642_v56 = vsel %vm292_vm1, %v1635_v51, %v1636_v15  ;;  %v1644_v44 = vsel %vm5979_vm12, %v1632_v60, %v1636_v15  ;;  %4156 = vmatpush3.bf16.msra.mxu0 %v4458_v59  ;;  %v4473_v30 = vld [vmem:[#allocation2 + $0xbc] ss:$28 sps:$4 sm:$0xff]   ;;  %v4487_v59 = vld [vmem:[%s5904_s2 + $0x8] sm:$0xff]   ;;  %v4488_v25 = vld [vmem:[%s5904_s2 + $0x10] sm:$0xff]  }
 0x142   : > { %v1580_v33 = vsel %vm292_vm1, %v5980_v14, %v1574_v38  ;;  %v1582_v26 = vsel %vm5981_vm13, %v1570_v0, %v1574_v38  ;;  %v1643_v35 = vsel %vm5982_vm2, %v5367_v7, %v1642_v56  ;;  %1652 = vst [vmem:[#allocation2 + $0x14c] sm:$0x3] %v1644_v44  ;;  %v1756_v54 = vpop.permute.xlu1 %1755  ;;  %4157 = vmatprep.subr.bf16.mxu0 %v4459_v55 }
 0x143   : > { %v1581_v48 = vsel %vm5983_vm4, %v5369_v21, %v1580_v33  ;;  %1590 = vst [vmem:[#allocation2 + $0x130] sm:$0xc] %v1582_v26  ;;  %v1694_v51 = vpop.permute.xlu0 %1693  ;;  %1651 = vst [vmem:[#allocation2 + $0x144] sm:$0x33] %v1643_v35  ;;  %v1760_v4 = vrot.slane %v1756_v54, 4 }
 0x144   : > { %1589 = vst [vmem:[#allocation2 + $0x128] sm:$0xcc] %v1581_v48  ;;  %v1698_v20 = vrot.slane %v1694_v51, 4  ;;  %4122 = vmatmul.mubr.msk.bf16.gmra.mrb[40].mxu0 %vm1989_vm0, %v5266_v23 }
 0x145   : > { %v1766_v7 = vsel %vm292_vm1, %v5984_v62, %v1760_v4  ;;  %v1768_v58 = vsel %vm1762_vm15, %v1756_v54, %v1760_v4  ;;  %4158 = vmatpush3.bf16.msra.mxu0 %v4459_v55  ;;  %4125 = vmatprep.mubr.msk.bf16.mxu0 %vm1989_vm0, %v5281_v34 }
 0x146   : > { %v1704_v21 = vsel %vm292_vm1, %v1697_v49, %v1698_v20  ;;  %v1706_v53 = vsel %vm1700_vm14, %v1694_v51, %v1698_v20  ;;  %v1767_v42 = vsel %vm1762_vm15, %v5387_v63, %v1766_v7  ;;  %1776 = vst [vmem:[#allocation2 + $0x168] sm:$0x3] %v1768_v58  ;;  %4159 = vmatprep.subr.bf16.mxu0 %v4460_v50  ;;  %v2747_v63 = vsel %vm2014_vm3, %v4461_v37, 0  ;;  %v4462_v49 = vld [vmem:[#allocation2 + $0x10] ss:$28 sps:$4 sm:$0xff]  }
 0x147   : > { %v1705_v47 = vsel %vm1700_vm14, %v5389_v19, %v1704_v21  ;;  %1714 = vst [vmem:[#allocation2 + $0x14c] sm:$0xc] %v1706_v53  ;;  %1775 = vst [vmem:[#allocation2 + $0x160] sm:$0x33] %v1767_v42  ;;  %v4463_v19 = vld [vmem:[#allocation2 + $0x48] ss:$28 sps:$4 sm:$0xff]  }
 0x148   : > { %1713 = vst [vmem:[#allocation2 + $0x144] sm:$0xcc] %v1705_v47  ;;  %v4467_v39 = vld [vmem:[#allocation2 + $0xf0] ss:$28 sps:$4 sm:$0xff]   ;;  %v4481_v52 = vld [vmem:[#allocation2 + $0xf8] ss:$28 sps:$4 sm:$0xff]  }
 0x149   : > { %4160 = vmatpush3.bf16.msra.mxu0 %v4460_v50  ;;  %v4474_v9 = vld [vmem:[#allocation2 + $0xf4] ss:$28 sps:$4 sm:$0xff]  }
 0x14a   : > { %4352 = vmatprep.subr.msk.bf16.mxu0 %vm2014_vm3, %v4461_v37 }
 0x14c   : > { %4126 = vmatmul.mubr.msk.bf16.gmra.mrb[44].mxu0 %vm1989_vm0, %v5320_v22 }
 0x14d   : > { %4162 = vmatpush3.bf16.msra.mxu0 %v2747_v63  ;;  %4163 = vmatprep.mubr.msk.bf16.mxu0 %vm1989_vm0, %v5359_v1 }
 0x14e   : > { %4199 = vmatprep.subr.bf16.mxu0 %v4462_v49  ;;  %v4469_v43 = vld [vmem:[#allocation2 + $0x160] ss:$0 sps:$4 sm:$0x33]   ;;  %v4476_v40 = vld [vmem:[#allocation2 + $0x164] ss:$0 sps:$4 sm:$0x33]  }
 0x14f   : > { %v4468_v10 = vld [vmem:[#allocation2 + $0x128] ss:$28 sps:$4 sm:$0xff]   ;;  %v2980_v11 = vsel %vm2014_vm3, %v4469_v43, 0  ;;  %v3213_v2 = vsel %vm2014_vm3, %v4476_v40, 0 }
 0x150   : > { %v4475_v31 = vld [vmem:[#allocation2 + $0x12c] ss:$28 sps:$4 sm:$0xff]  }
 0x153   : > { %v5651_v46 = vpop.permute.xlu1 %1837 }
 0x154   : > { %4164 = vmatmul.mubr.msk.bf16.vlgmr.msra.gmra.mrb[48].mxu0 %vm1989_vm0, %v5154_v17  ;;  %v5657_v57 = vpop.permute.xlu0 %1832 }
 0x155   : > { %4200 = vmatpush3.bf16.msra.mxu0 %v4462_v49  ;;  %4167 = vmatprep.mubr.msk.bf16.mxu0 %vm1989_vm0, %v5169_v13 }
 0x156   : > { %4201 = vmatprep.subr.bf16.mxu0 %v4463_v19 }
 0x157   : > { %v5659_v27 = vpop.permute.xlu1 %1842 }
 0x159   : > { %4202 = vmatpush3.bf16.msra.mxu0 %v4463_v19 }
 0x15a   : > { %4203 = vmatprep.subr.bf16.mxu0 %v4464_v18 }
 0x15b   : > { %v5667_v3 = vpop.permute.xlu1 %1852 }
 0x15c   : > { %4168 = vmatmul.mubr.msk.bf16.gmra.mrb[52].mxu0 %vm1989_vm0, %v5212_v24 }
 0x15d   : > { %4204 = vmatpush3.bf16.msra.mxu0 %v4464_v18  ;;  %4171 = vmatprep.mubr.msk.bf16.mxu0 %vm1989_vm0, %v5227_v45 }
 0x15e   : > { %4205 = vmatprep.subr.bf16.mxu0 %v4465_v8 }
 0x15f   : > { %v5675_v60 = vpop.permute.xlu1 %1862 }
 0x161   : > { %4206 = vmatpush3.bf16.msra.mxu0 %v4465_v8 }
 0x162   : > { %4207 = vmatprep.subr.bf16.mxu0 %v4467_v39 }
 0x164   : > { %4172 = vmatmul.mubr.msk.bf16.gmra.mrb[56].mxu0 %vm1989_vm0, %v5266_v23 }
 0x165   : > { %4208 = vmatpush3.bf16.msra.mxu0 %v4467_v39  ;;  %4175 = vmatprep.mubr.msk.bf16.mxu0 %vm1989_vm0, %v5281_v34 }
 0x166   : > { %4209 = vmatprep.subr.bf16.mxu0 %v4468_v10 }
 0x169   : > { %4210 = vmatpush3.bf16.msra.mxu0 %v4468_v10 }
 0x16a   : > { %4353 = vmatprep.subr.msk.bf16.mxu0 %vm2014_vm3, %v4469_v43 }
 0x16c   : > { %4176 = vmatmul.mubr.msk.bf16.gmra.mrb[60].mxu0 %vm1989_vm0, %v5320_v22 }
 0x16d   : > { %4212 = vmatpush3.bf16.msra.mxu0 %v2980_v11  ;;  %4213 = vmatprep.mubr.msk.bf16.mxu0 %vm1989_vm0, %v5359_v1 }
 0x16e   : > { %4249 = vmatprep.subr.bf16.mxu0 %v4470_v29 }
 0x174   : > { %4214 = vmatmul.mubr.msk.bf16.vlgmr.msra.gmra.mrb[64].mxu0 %vm1989_vm0, %v5154_v17 }
 0x175   : > { %4250 = vmatpush3.bf16.msra.mxu0 %v4470_v29  ;;  %4217 = vmatprep.mubr.msk.bf16.mxu0 %vm1989_vm0, %v5169_v13 }
 0x176   : > { %4251 = vmatprep.subr.bf16.mxu0 %v4471_v12 }
 0x179   : > { %4252 = vmatpush3.bf16.msra.mxu0 %v4471_v12 }
 0x17a   : > { %4253 = vmatprep.subr.bf16.mxu0 %v4472_v41 }
 0x17c   : > { %4218 = vmatmul.mubr.msk.bf16.gmra.mrb[68].mxu0 %vm1989_vm0, %v5212_v24 }
 0x17d   : > { %4254 = vmatpush3.bf16.msra.mxu0 %v4472_v41  ;;  %4221 = vmatprep.mubr.msk.bf16.mxu0 %vm1989_vm0, %v5227_v45 }
 0x17e   : > { %4255 = vmatprep.subr.bf16.mxu0 %v4473_v30 }
 0x181   : > { %4256 = vmatpush3.bf16.msra.mxu0 %v4473_v30 }
 0x182   : > { %4257 = vmatprep.subr.bf16.mxu0 %v4474_v9 }
 0x184   : > { %4222 = vmatmul.mubr.msk.bf16.gmra.mrb[72].mxu0 %vm1989_vm0, %v5266_v23 }
 0x185   : > { %4258 = vmatpush3.bf16.msra.mxu0 %v4474_v9  ;;  %4225 = vmatprep.mubr.msk.bf16.mxu0 %vm1989_vm0, %v5281_v34 }
 0x186   : > { %4259 = vmatprep.subr.bf16.mxu0 %v4475_v31 }
 0x189   : > { %4260 = vmatpush3.bf16.msra.mxu0 %v4475_v31 }
 0x18a   : > { %4354 = vmatprep.subr.msk.bf16.mxu0 %vm2014_vm3, %v4476_v40 }
 0x18c   : > { %4226 = vmatmul.mubr.msk.bf16.gmra.mrb[76].mxu0 %vm1989_vm0, %v5320_v22 }
 0x18d   : > { %4262 = vmatpush3.bf16.msra.mxu0 %v3213_v2  ;;  %4263 = vmatprep.mubr.msk.bf16.mxu0 %vm1989_vm0, %v5359_v1 }
 0x18e   : > { %4299 = vmatprep.subr.bf16.mxu0 %v4477_v36 }
 0x194   : > { %4264 = vmatmul.mubr.msk.bf16.vlgmr.msra.gmra.mrb[80].mxu0 %vm1989_vm0, %v5154_v17  ;;  %v4482_v17 = vld [vmem:[#allocation2 + $0x130] ss:$28 sps:$4 sm:$0xff]  }
 0x195   : > { %4300 = vmatpush3.bf16.msra.mxu0 %v4477_v36  ;;  %4267 = vmatprep.mubr.msk.bf16.mxu0 %vm1989_vm0, %v5169_v13  ;;  %v4483_v13 = vld [vmem:[#allocation2 + $0x168] ss:$0 sps:$4 sm:$0x33]  }
 0x196   : > { %4301 = vmatprep.subr.bf16.mxu0 %v4478_v32  ;;  %v3446_v28 = vsel %vm2014_vm3, %v4483_v13, 0 }
 0x199   : > { %4302 = vmatpush3.bf16.msra.mxu0 %v4478_v32 }
 0x19a   : > { %4303 = vmatprep.subr.bf16.mxu0 %v4479_v6 }
 0x19c   : > { %4268 = vmatmul.mubr.msk.bf16.gmra.mrb[84].mxu0 %vm1989_vm0, %v5212_v24 }
 0x19d   : > { %4304 = vmatpush3.bf16.msra.mxu0 %v4479_v6  ;;  %4271 = vmatprep.mubr.msk.bf16.mxu0 %vm1989_vm0, %v5227_v45 }
 0x19e   : > { %4305 = vmatprep.subr.bf16.mxu0 %v4480_v61 }
 0x1a1   : > { %4306 = vmatpush3.bf16.msra.mxu0 %v4480_v61 }
 0x1a2   : > { %4307 = vmatprep.subr.bf16.mxu0 %v4481_v52 }
 0x1a4   : > { %4272 = vmatmul.mubr.msk.bf16.gmra.mrb[88].mxu0 %vm1989_vm0, %v5266_v23 }
 0x1a5   : > { %4308 = vmatpush3.bf16.msra.mxu0 %v4481_v52  ;;  %4275 = vmatprep.mubr.msk.bf16.mxu0 %vm1989_vm0, %v5281_v34 }
 0x1a6   : > { %4309 = vmatprep.subr.bf16.mxu0 %v4482_v17 }
 0x1a9   : > { %4310 = vmatpush3.bf16.msra.mxu0 %v4482_v17 }
 0x1aa   : > { %4355 = vmatprep.subr.msk.bf16.mxu0 %vm2014_vm3, %v4483_v13 }
 0x1ac   : > { %4276 = vmatmul.mubr.msk.bf16.gmra.mrb[92].mxu0 %vm1989_vm0, %v5320_v22 }
 0x1ad   : > { %4312 = vmatpush3.bf16.msra.mxu0 %v3446_v28  ;;  %4313 = vmatprep.mubr.msk.bf16.mxu0 %vm1989_vm0, %v5359_v1  ;;  %v5663_v1 = vpop.permute.xlu0 %1847 }
 0x1b1   : > { %v5669_v16 = vpop.permute.xlu0 %1857 }
 0x1b4   : > { %4314 = vmatmul.mubr.msk.bf16.vlgmr.msra.gmra.mrb[96].mxu0 %vm1989_vm0, %v4487_v59 }
 0x1b5   : > { %4317 = vmatprep.mubr.msk.bf16.mxu0 %vm1989_vm0, %v4488_v25  ;;  %v5678_v38 = vpop.permute.xlu0 %1867 }
 0x1b9   : > { %v5687_v54 = vpop.permute.xlu0 %1877 }
 0x1bc   : > { %4318 = vmatmul.mubr.msk.bf16.gmra.mrb[100].mxu0 %vm1989_vm0, %v5212_v24 }
 0x1bd   : > { %4321 = vmatprep.mubr.msk.bf16.mxu0 %vm1989_vm0, %v5227_v45  ;;  %v5695_v37 = vpop.permute.xlu0 %1887 }
 0x1c1   : > { %v5702_v30 = vpop.permute.xlu0 %1897 }
 0x1c4   : > { %4322 = vmatmul.mubr.msk.bf16.gmra.mrb[104].mxu0 %vm1989_vm0, %v5266_v23 }
 0x1c5   : > { %4325 = vmatprep.mubr.msk.bf16.mxu0 %vm1989_vm0, %v5281_v34  ;;  %v5685_v34 = vpop.permute.xlu1 %1872  ;;  %v5708_v28 = vpop.permute.xlu0 %1907 }
 0x1c7   : > { %v4015_v0 = vpop.f32.mrb[0].mxu0 }
 0x1c8   : > { %v2061_v24 = vadd.f32 %v4015_v0, %v5659_v27  ;;  %v2052_v15 = vpop.f32.mrb[1].mxu0 }
 0x1c9   : > { %v2053_v45 = vadd.f32 %v2052_v15, %v5657_v57  ;;  %v4016_v55 = vpop.f32.mrb[2].mxu0 }
 0x1ca   : > { %v2064_v56 = vadd.f32 %v4016_v55, %v5663_v1  ;;  %v2055_v44 = vpop.f32.mrb[3].mxu0  ;;  %v2117_v23 = vmax.f32 %v2061_v24, 0.0 }
 0x1cb   : > { %v2056_v14 = vadd.f32 %v2055_v44, %v5651_v46  ;;  %v2115_v26 = vmax.f32 %v2053_v45, 0.0 }
 0x1cc   : > { %v2118_v33 = vmax.f32 %v2064_v56, 0.0  ;;  %4326 = vmatmul.mubr.msk.bf16.gmra.mrb[108].mxu0 %vm1989_vm0, %v5320_v22  ;;  %v5692_v22 = vpop.permute.xlu1 %1882 }
 0x1cd   : > { %v2116_v35 = vmax.f32 %v2056_v14, 0.0 }
 0x1ce   : > { %v2132_v48 = vpack.c.bf16 %v2118_v33, %v2117_v23 }
 0x1cf   : > { %v4019_v51 = vpop.f32.mrb[4].mxu0  ;;  %v2131_v4 = vpack.c.bf16 %v2116_v35, %v2115_v26 }
 0x1d0   : > { %v2077_v20 = vadd.f32 %v4019_v51, %v5675_v60  ;;  %v2068_v50 = vpop.f32.mrb[5].mxu0  ;;  %v5698_v43 = vpop.permute.xlu1 %1892 }
 0x1d1   : > { %v2069_v62 = vadd.f32 %v2068_v50, %v5667_v3  ;;  %v4020_v7 = vpop.f32.mrb[6].mxu0  ;;  %4029 = vmatprep.subr.bf16.mxu1 %v2131_v4 }
 0x1d2   : > { %v2080_v58 = vadd.f32 %v4020_v7, %v5678_v38  ;;  %v2071_v21 = vpop.f32.mrb[7].mxu0  ;;  %4030 = vmatpush3.bf16.msra.mxu1 %v2131_v4  ;;  %v2121_v42 = vmax.f32 %v2077_v20, 0.0 }
 0x1d3   : > { %v2072_v53 = vadd.f32 %v2071_v21, %v5669_v16  ;;  %4031 = vmatprep.subr.bf16.mxu1 %v2132_v48  ;;  %v2119_v63 = vmax.f32 %v2069_v62, 0.0 }
 0x1d4   : > { %v2122_v47 = vmax.f32 %v2080_v58, 0.0  ;;  %v5705_v6 = vpop.permute.xlu1 %1902 }
 0x1d5   : > { %v2120_v49 = vmax.f32 %v2072_v53, 0.0  ;;  %v5720_v53 = vld [vmem:[%s5906_s4 + $0x8] sm:$0xff]  }
 0x1d6   : > { %v2134_v19 = vpack.c.bf16 %v2122_v47, %v2121_v42  ;;  %4032 = vmatpush3.bf16.msra.mxu1 %v2132_v48 }
 0x1d7   : > { %v2133_v18 = vpack.c.bf16 %v2120_v49, %v2119_v63  ;;  %v4023_v8 = vpop.f32.mrb[8].mxu0 }
 0x1d8   : > { %v2093_v39 = vadd.f32 %v4023_v8, %v5692_v22  ;;  %v2084_v10 = vpop.f32.mrb[9].mxu0 }
 0x1d9   : > { %v2085_v11 = vadd.f32 %v2084_v10, %v5685_v34  ;;  %v4024_v29 = vpop.f32.mrb[10].mxu0  ;;  %4033 = vmatprep.subr.bf16.mxu1 %v2133_v18 }
 0x1da   : > { %v2096_v12 = vadd.f32 %v4024_v29, %v5695_v37  ;;  %v2087_v41 = vpop.f32.mrb[11].mxu0  ;;  %4034 = vmatpush3.bf16.msra.mxu1 %v2133_v18  ;;  %v2125_v31 = vmax.f32 %v2093_v39, 0.0 }
 0x1db   : > { %v2088_v9 = vadd.f32 %v2087_v41, %v5687_v54  ;;  %4035 = vmatprep.subr.bf16.mxu1 %v2134_v19  ;;  %v2123_v2 = vmax.f32 %v2085_v11, 0.0 }
 0x1dc   : > { %v2126_v40 = vmax.f32 %v2096_v12, 0.0 }
 0x1dd   : > { %v2124_v36 = vmax.f32 %v2088_v9, 0.0 }
 0x1de   : > { %v2136_v32 = vpack.c.bf16 %v2126_v40, %v2125_v31  ;;  %4036 = vmatpush3.bf16.msra.mxu1 %v2134_v19 }
 0x1df   : > { %v2135_v61 = vpack.c.bf16 %v2124_v36, %v2123_v2  ;;  %v4027_v52 = vpop.f32.mrb[12].mxu0 }
 0x1e0   : > { %v2109_v17 = vadd.f32 %v4027_v52, %v5705_v6  ;;  %v2100_v13 = vpop.f32.mrb[13].mxu0 }
 0x1e1   : > { %v2101_v59 = vadd.f32 %v2100_v13, %v5698_v43  ;;  %v4028_v25 = vpop.f32.mrb[14].mxu0  ;;  %4037 = vmatprep.subr.bf16.mxu1 %v2135_v61 }
 0x1e2   : > { %v2112_v0 = vadd.f32 %v4028_v25, %v5708_v28  ;;  %v2103_v24 = vpop.f32.mrb[15].mxu0  ;;  %4038 = vmatpush3.bf16.msra.mxu1 %v2135_v61  ;;  %v2129_v45 = vmax.f32 %v2109_v17, 0.0 }
 0x1e3   : > { %v2104_v15 = vadd.f32 %v2103_v24, %v5702_v30  ;;  %4039 = vmatprep.subr.bf16.mxu1 %v2136_v32  ;;  %v2127_v56 = vmax.f32 %v2101_v59, 0.0 }
 0x1e4   : > { %v2130_v55 = vmax.f32 %v2112_v0, 0.0 }
 0x1e5   : > { %v2128_v44 = vmax.f32 %v2104_v15, 0.0 }
 0x1e6   : > { %v2138_v14 = vpack.c.bf16 %v2130_v55, %v2129_v45  ;;  %4040 = vmatpush3.bf16.msra.mxu1 %v2136_v32 }
 0x1e7   : > { %v2137_v23 = vpack.c.bf16 %v2128_v44, %v2127_v56  ;;  %v4065_v33 = vpop.f32.mrb[16].mxu0 }
 0x1e8   : > { %v2326_v26 = vadd.f32 %v4065_v33, %v5659_v27  ;;  %v2317_v35 = vpop.f32.mrb[17].mxu0 }
 0x1e9   : > { %v2318_v48 = vadd.f32 %v2317_v35, %v5657_v57  ;;  %4041 = vmatprep.subr.bf16.mxu1 %v2137_v23  ;;  %v4066_v51 = vpop.f32.mrb[18].mxu0 }
 0x1ea   : > { %v2329_v4 = vadd.f32 %v4066_v51, %v5663_v1  ;;  %4042 = vmatpush3.bf16.msra.mxu1 %v2137_v23  ;;  %v2320_v20 = vpop.f32.mrb[19].mxu0  ;;  %v2382_v62 = vmax.f32 %v2326_v26, 0.0 }
 0x1eb   : > { %v2321_v50 = vadd.f32 %v2320_v20, %v5651_v46  ;;  %4043 = vmatprep.subr.bf16.mxu1 %v2138_v14  ;;  %v2380_v58 = vmax.f32 %v2318_v48, 0.0 }
 0x1ec   : > { %v2383_v7 = vmax.f32 %v2329_v4, 0.0 }
 0x1ed   : > { %v2381_v21 = vmax.f32 %v2321_v50, 0.0 }
 0x1ee   : > { %v2397_v42 = vpack.c.bf16 %v2383_v7, %v2382_v62  ;;  %4044 = vmatpush3.bf16.msra.mxu1 %v2138_v14 }
 0x1ef   : > { %v2396_v47 = vpack.c.bf16 %v2381_v21, %v2380_v58  ;;  %v4069_v63 = vpop.f32.mrb[20].mxu0 }
 0x1f0   : > { %v2342_v49 = vadd.f32 %v4069_v63, %v5675_v60  ;;  %v2333_v19 = vpop.f32.mrb[21].mxu0 }
 0x1f1   : > { %v2334_v18 = vadd.f32 %v2333_v19, %v5667_v3  ;;  %4046 = vmatmul.mubr.bf16.vlgmr.msra.gmra.mrb[0].mxu1 %v5720_v53  ;;  %v4070_v8 = vpop.f32.mrb[22].mxu0  ;;  %4079 = vmatprep.subr.bf16.mxu1 %v2396_v47 }
 0x1f2   : > { %v2345_v39 = vadd.f32 %v4070_v8, %v5678_v38  ;;  %v2336_v10 = vpop.f32.mrb[23].mxu0  ;;  %4080 = vmatpush3.bf16.msra.mxu1 %v2396_v47  ;;  %4095 = vmatprep.mubr.bf16.mxu1 %v5608_v5  ;;  %v2386_v29 = vmax.f32 %v2342_v49, 0.0 }
 0x1f3   : > { %v2337_v11 = vadd.f32 %v2336_v10, %v5669_v16  ;;  %4081 = vmatprep.subr.bf16.mxu1 %v2397_v42  ;;  %v2384_v41 = vmax.f32 %v2334_v18, 0.0 }
 0x1f4   : > { %v2387_v12 = vmax.f32 %v2345_v39, 0.0 }
 0x1f5   : > { %v2385_v9 = vmax.f32 %v2337_v11, 0.0 }
 0x1f6   : > { %v2399_v31 = vpack.c.bf16 %v2387_v12, %v2386_v29  ;;  %4082 = vmatpush3.bf16.msra.mxu1 %v2397_v42 }
 0x1f7   : > { %v2398_v40 = vpack.c.bf16 %v2385_v9, %v2384_v41  ;;  %v4073_v2 = vpop.f32.mrb[24].mxu0 }
 0x1f8   : > { %v2358_v36 = vadd.f32 %v4073_v2, %v5692_v22  ;;  %v2349_v32 = vpop.f32.mrb[25].mxu0 }
 0x1f9   : > { %v2350_v61 = vadd.f32 %v2349_v32, %v5685_v34  ;;  %v4074_v52 = vpop.f32.mrb[26].mxu0  ;;  %4083 = vmatprep.subr.bf16.mxu1 %v2398_v40 }
 0x1fa   : > { %v2361_v17 = vadd.f32 %v4074_v52, %v5695_v37  ;;  %v2352_v13 = vpop.f32.mrb[27].mxu0  ;;  %4084 = vmatpush3.bf16.msra.mxu1 %v2398_v40  ;;  %v2390_v25 = vmax.f32 %v2358_v36, 0.0 }
 0x1fb   : > { %v2353_v59 = vadd.f32 %v2352_v13, %v5687_v54  ;;  %4085 = vmatprep.subr.bf16.mxu1 %v2399_v31  ;;  %v2388_v24 = vmax.f32 %v2350_v61, 0.0 }
 0x1fc   : > { %v2391_v0 = vmax.f32 %v2361_v17, 0.0 }
 0x1fd   : > { %v2389_v15 = vmax.f32 %v2353_v59, 0.0 }
 0x1fe   : > { %v2401_v45 = vpack.c.bf16 %v2391_v0, %v2390_v25  ;;  %4086 = vmatpush3.bf16.msra.mxu1 %v2399_v31 }
 0x1ff   : > { %v2400_v55 = vpack.c.bf16 %v2389_v15, %v2388_v24  ;;  %v4077_v56 = vpop.f32.mrb[28].mxu0 }
 0x200   : > { %v2374_v44 = vadd.f32 %v4077_v56, %v5705_v6  ;;  %v2365_v14 = vpop.f32.mrb[29].mxu0 }
 0x201   : > { %v2366_v23 = vadd.f32 %v2365_v14, %v5698_v43  ;;  %v4078_v33 = vpop.f32.mrb[30].mxu0  ;;  %4087 = vmatprep.subr.bf16.mxu1 %v2400_v55 }
 0x202   : > { %v2377_v26 = vadd.f32 %v4078_v33, %v5708_v28  ;;  %v2368_v35 = vpop.f32.mrb[31].mxu0  ;;  %4088 = vmatpush3.bf16.msra.mxu1 %v2400_v55  ;;  %v2394_v51 = vmax.f32 %v2374_v44, 0.0 }
 0x203   : > { %v2369_v48 = vadd.f32 %v2368_v35, %v5702_v30  ;;  %4089 = vmatprep.subr.bf16.mxu1 %v2401_v45  ;;  %v2392_v20 = vmax.f32 %v2366_v23, 0.0 }
 0x204   : > { %v2395_v4 = vmax.f32 %v2377_v26, 0.0 }
 0x205   : > { %v2393_v50 = vmax.f32 %v2369_v48, 0.0 }
 0x206   : > { %v2403_v62 = vpack.c.bf16 %v2395_v4, %v2394_v51  ;;  %4090 = vmatpush3.bf16.msra.mxu1 %v2401_v45 }
 0x207   : > { %v2402_v7 = vpack.c.bf16 %v2393_v50, %v2392_v20  ;;  %v4115_v58 = vpop.f32.mrb[32].mxu0 }
 0x208   : > { %v2559_v21 = vadd.f32 %v4115_v58, %v5659_v27  ;;  %v2550_v42 = vpop.f32.mrb[33].mxu0 }
 0x209   : > { %v2551_v47 = vadd.f32 %v2550_v42, %v5657_v57  ;;  %4091 = vmatprep.subr.bf16.mxu1 %v2402_v7  ;;  %v4116_v63 = vpop.f32.mrb[34].mxu0 }
 0x20a   : > { %v2562_v49 = vadd.f32 %v4116_v63, %v5663_v1  ;;  %4092 = vmatpush3.bf16.msra.mxu1 %v2402_v7  ;;  %v2553_v19 = vpop.f32.mrb[35].mxu0  ;;  %v2615_v8 = vmax.f32 %v2559_v21, 0.0 }
 0x20b   : > { %v2554_v18 = vadd.f32 %v2553_v19, %v5651_v46  ;;  %4093 = vmatprep.subr.bf16.mxu1 %v2403_v62  ;;  %v2613_v10 = vmax.f32 %v2551_v47, 0.0 }
 0x20c   : > { %v2616_v39 = vmax.f32 %v2562_v49, 0.0 }
 0x20d   : > { %v2614_v11 = vmax.f32 %v2554_v18, 0.0 }
 0x20e   : > { %v2630_v29 = vpack.c.bf16 %v2616_v39, %v2615_v8  ;;  %4094 = vmatpush3.bf16.msra.mxu1 %v2403_v62 }
 0x20f   : > { %v2629_v12 = vpack.c.bf16 %v2614_v11, %v2613_v10  ;;  %v4119_v41 = vpop.f32.mrb[36].mxu0 }
 0x210   : > { %v2575_v9 = vadd.f32 %v4119_v41, %v5675_v60  ;;  %v2566_v31 = vpop.f32.mrb[37].mxu0 }
 0x211   : > { %v2567_v40 = vadd.f32 %v2566_v31, %v5667_v3  ;;  %4096 = vmatmul.mubr.bf16.vlgmr.msra.gmra.mrb[4].mxu1 %v5720_v53  ;;  %v4120_v2 = vpop.f32.mrb[38].mxu0  ;;  %4129 = vmatprep.subr.bf16.mxu1 %v2629_v12 }
 0x212   : > { %v2578_v36 = vadd.f32 %v4120_v2, %v5678_v38  ;;  %v2569_v32 = vpop.f32.mrb[39].mxu0  ;;  %4130 = vmatpush3.bf16.msra.mxu1 %v2629_v12  ;;  %4145 = vmatprep.mubr.bf16.mxu1 %v5608_v5  ;;  %v2619_v52 = vmax.f32 %v2575_v9, 0.0 }
 0x213   : > { %v2570_v61 = vadd.f32 %v2569_v32, %v5669_v16  ;;  %4131 = vmatprep.subr.bf16.mxu1 %v2630_v29  ;;  %v2617_v13 = vmax.f32 %v2567_v40, 0.0 }
 0x214   : > { %v2620_v17 = vmax.f32 %v2578_v36, 0.0 }
 0x215   : > { %v2618_v59 = vmax.f32 %v2570_v61, 0.0 }
 0x216   : > { %v2632_v25 = vpack.c.bf16 %v2620_v17, %v2619_v52  ;;  %4132 = vmatpush3.bf16.msra.mxu1 %v2630_v29 }
 0x217   : > { %v2631_v0 = vpack.c.bf16 %v2618_v59, %v2617_v13  ;;  %v4123_v24 = vpop.f32.mrb[40].mxu0 }
 0x218   : > { %v2591_v15 = vadd.f32 %v4123_v24, %v5692_v22  ;;  %v2582_v45 = vpop.f32.mrb[41].mxu0 }
 0x219   : > { %v2583_v55 = vadd.f32 %v2582_v45, %v5685_v34  ;;  %v4124_v56 = vpop.f32.mrb[42].mxu0  ;;  %4133 = vmatprep.subr.bf16.mxu1 %v2631_v0 }
 0x21a   : > { %v2594_v44 = vadd.f32 %v4124_v56, %v5695_v37  ;;  %v2585_v14 = vpop.f32.mrb[43].mxu0  ;;  %4134 = vmatpush3.bf16.msra.mxu1 %v2631_v0  ;;  %v2623_v33 = vmax.f32 %v2591_v15, 0.0 }
 0x21b   : > { %v2586_v23 = vadd.f32 %v2585_v14, %v5687_v54  ;;  %4135 = vmatprep.subr.bf16.mxu1 %v2632_v25  ;;  %v2621_v35 = vmax.f32 %v2583_v55, 0.0 }
 0x21c   : > { %v2624_v26 = vmax.f32 %v2594_v44, 0.0 }
 0x21d   : > { %v2622_v48 = vmax.f32 %v2586_v23, 0.0 }
 0x21e   : > { %v2634_v51 = vpack.c.bf16 %v2624_v26, %v2623_v33  ;;  %4136 = vmatpush3.bf16.msra.mxu1 %v2632_v25 }
 0x21f   : > { %v2633_v4 = vpack.c.bf16 %v2622_v48, %v2621_v35  ;;  %v4127_v20 = vpop.f32.mrb[44].mxu0 }
 0x220   : > { %v2607_v50 = vadd.f32 %v4127_v20, %v5705_v6  ;;  %v2598_v62 = vpop.f32.mrb[45].mxu0 }
 0x221   : > { %v2599_v7 = vadd.f32 %v2598_v62, %v5698_v43  ;;  %v4128_v58 = vpop.f32.mrb[46].mxu0  ;;  %4137 = vmatprep.subr.bf16.mxu1 %v2633_v4 }
 0x222   : > { %v2610_v21 = vadd.f32 %v4128_v58, %v5708_v28  ;;  %v2601_v42 = vpop.f32.mrb[47].mxu0  ;;  %4138 = vmatpush3.bf16.msra.mxu1 %v2633_v4  ;;  %v2627_v63 = vmax.f32 %v2607_v50, 0.0 }
 0x223   : > { %v2602_v47 = vadd.f32 %v2601_v42, %v5702_v30  ;;  %4139 = vmatprep.subr.bf16.mxu1 %v2634_v51  ;;  %v2625_v19 = vmax.f32 %v2599_v7, 0.0 }
 0x224   : > { %v2628_v49 = vmax.f32 %v2610_v21, 0.0 }
 0x225   : > { %v2626_v18 = vmax.f32 %v2602_v47, 0.0 }
 0x226   : > { %v2636_v8 = vpack.c.bf16 %v2628_v49, %v2627_v63  ;;  %4140 = vmatpush3.bf16.msra.mxu1 %v2634_v51 }
 0x227   : > { %v2635_v39 = vpack.c.bf16 %v2626_v18, %v2625_v19  ;;  %v4165_v10 = vpop.f32.mrb[48].mxu0 }
 0x228   : > { %v2792_v11 = vadd.f32 %v4165_v10, %v5659_v27  ;;  %v2783_v29 = vpop.f32.mrb[49].mxu0 }
 0x229   : > { %v2784_v12 = vadd.f32 %v2783_v29, %v5657_v57  ;;  %4141 = vmatprep.subr.bf16.mxu1 %v2635_v39  ;;  %v4166_v41 = vpop.f32.mrb[50].mxu0 }
 0x22a   : > { %v2795_v9 = vadd.f32 %v4166_v41, %v5663_v1  ;;  %4142 = vmatpush3.bf16.msra.mxu1 %v2635_v39  ;;  %v2786_v31 = vpop.f32.mrb[51].mxu0  ;;  %v2848_v2 = vmax.f32 %v2792_v11, 0.0 }
 0x22b   : > { %v2787_v40 = vadd.f32 %v2786_v31, %v5651_v46  ;;  %4143 = vmatprep.subr.bf16.mxu1 %v2636_v8  ;;  %v2846_v32 = vmax.f32 %v2784_v12, 0.0 }
 0x22c   : > { %v2849_v36 = vmax.f32 %v2795_v9, 0.0 }
 0x22d   : > { %v2847_v61 = vmax.f32 %v2787_v40, 0.0 }
 0x22e   : > { %v2863_v52 = vpack.c.bf16 %v2849_v36, %v2848_v2  ;;  %4144 = vmatpush3.bf16.msra.mxu1 %v2636_v8 }
 0x22f   : > { %v2862_v17 = vpack.c.bf16 %v2847_v61, %v2846_v32  ;;  %v4169_v13 = vpop.f32.mrb[52].mxu0 }
 0x230   : > { %v2808_v59 = vadd.f32 %v4169_v13, %v5675_v60  ;;  %v2799_v25 = vpop.f32.mrb[53].mxu0 }
 0x231   : > { %v2800_v0 = vadd.f32 %v2799_v25, %v5667_v3  ;;  %4146 = vmatmul.mubr.bf16.vlgmr.msra.gmra.mrb[8].mxu1 %v5720_v53  ;;  %v4170_v24 = vpop.f32.mrb[54].mxu0  ;;  %4179 = vmatprep.subr.bf16.mxu1 %v2862_v17 }
 0x232   : > { %v2811_v15 = vadd.f32 %v4170_v24, %v5678_v38  ;;  %v2802_v45 = vpop.f32.mrb[55].mxu0  ;;  %4180 = vmatpush3.bf16.msra.mxu1 %v2862_v17  ;;  %4195 = vmatprep.mubr.bf16.mxu1 %v5608_v5  ;;  %v2852_v56 = vmax.f32 %v2808_v59, 0.0 }
 0x233   : > { %v2803_v55 = vadd.f32 %v2802_v45, %v5669_v16  ;;  %4181 = vmatprep.subr.bf16.mxu1 %v2863_v52  ;;  %v2850_v14 = vmax.f32 %v2800_v0, 0.0 }
 0x234   : > { %v2853_v44 = vmax.f32 %v2811_v15, 0.0 }
 0x235   : > { %v2851_v23 = vmax.f32 %v2803_v55, 0.0 }
 0x236   : > { %v2865_v33 = vpack.c.bf16 %v2853_v44, %v2852_v56  ;;  %4182 = vmatpush3.bf16.msra.mxu1 %v2863_v52 }
 0x237   : > { %v2864_v26 = vpack.c.bf16 %v2851_v23, %v2850_v14  ;;  %v4173_v35 = vpop.f32.mrb[56].mxu0 }
 0x238   : > { %v2824_v48 = vadd.f32 %v4173_v35, %v5692_v22  ;;  %v2815_v51 = vpop.f32.mrb[57].mxu0 }
 0x239   : > { %v2816_v4 = vadd.f32 %v2815_v51, %v5685_v34  ;;  %v4174_v20 = vpop.f32.mrb[58].mxu0  ;;  %4183 = vmatprep.subr.bf16.mxu1 %v2864_v26 }
 0x23a   : > { %v2827_v50 = vadd.f32 %v4174_v20, %v5695_v37  ;;  %v2818_v62 = vpop.f32.mrb[59].mxu0  ;;  %4184 = vmatpush3.bf16.msra.mxu1 %v2864_v26  ;;  %v2856_v58 = vmax.f32 %v2824_v48, 0.0 }
 0x23b   : > { %v2819_v7 = vadd.f32 %v2818_v62, %v5687_v54  ;;  %4185 = vmatprep.subr.bf16.mxu1 %v2865_v33  ;;  %v2854_v42 = vmax.f32 %v2816_v4, 0.0 }
 0x23c   : > { %v2857_v21 = vmax.f32 %v2827_v50, 0.0 }
 0x23d   : > { %v2855_v47 = vmax.f32 %v2819_v7, 0.0 }
 0x23e   : > { %v2867_v63 = vpack.c.bf16 %v2857_v21, %v2856_v58  ;;  %4186 = vmatpush3.bf16.msra.mxu1 %v2865_v33 }
 0x23f   : > { %v2866_v49 = vpack.c.bf16 %v2855_v47, %v2854_v42  ;;  %v4177_v19 = vpop.f32.mrb[60].mxu0 }
 0x240   : > { %v2840_v18 = vadd.f32 %v4177_v19, %v5705_v6  ;;  %v2831_v8 = vpop.f32.mrb[61].mxu0 }
 0x241   : > { %v2832_v39 = vadd.f32 %v2831_v8, %v5698_v43  ;;  %v4178_v10 = vpop.f32.mrb[62].mxu0  ;;  %4187 = vmatprep.subr.bf16.mxu1 %v2866_v49 }
 0x242   : > { %v2843_v11 = vadd.f32 %v4178_v10, %v5708_v28  ;;  %v2834_v29 = vpop.f32.mrb[63].mxu0  ;;  %4188 = vmatpush3.bf16.msra.mxu1 %v2866_v49  ;;  %v2860_v41 = vmax.f32 %v2840_v18, 0.0 }
 0x243   : > { %v2835_v12 = vadd.f32 %v2834_v29, %v5702_v30  ;;  %4189 = vmatprep.subr.bf16.mxu1 %v2867_v63  ;;  %v2858_v31 = vmax.f32 %v2832_v39, 0.0 }
 0x244   : > { %v2861_v9 = vmax.f32 %v2843_v11, 0.0 }
 0x245   : > { %v2859_v40 = vmax.f32 %v2835_v12, 0.0 }
 0x246   : > { %v2869_v2 = vpack.c.bf16 %v2861_v9, %v2860_v41  ;;  %4190 = vmatpush3.bf16.msra.mxu1 %v2867_v63 }
 0x247   : > { %v2868_v36 = vpack.c.bf16 %v2859_v40, %v2858_v31  ;;  %v4215_v32 = vpop.f32.mrb[64].mxu0 }
 0x248   : > { %v3025_v61 = vadd.f32 %v4215_v32, %v5659_v27  ;;  %v3016_v52 = vpop.f32.mrb[65].mxu0 }
 0x249   : > { %v3017_v17 = vadd.f32 %v3016_v52, %v5657_v57  ;;  %4191 = vmatprep.subr.bf16.mxu1 %v2868_v36  ;;  %v4216_v13 = vpop.f32.mrb[66].mxu0 }
 0x24a   : > { %v3028_v59 = vadd.f32 %v4216_v13, %v5663_v1  ;;  %4192 = vmatpush3.bf16.msra.mxu1 %v2868_v36  ;;  %v3019_v25 = vpop.f32.mrb[67].mxu0  ;;  %v3081_v24 = vmax.f32 %v3025_v61, 0.0 }
 0x24b   : > { %v3020_v0 = vadd.f32 %v3019_v25, %v5651_v46  ;;  %4193 = vmatprep.subr.bf16.mxu1 %v2869_v2  ;;  %v3079_v45 = vmax.f32 %v3017_v17, 0.0 }
 0x24c   : > { %v3082_v15 = vmax.f32 %v3028_v59, 0.0 }
 0x24d   : > { %v3080_v55 = vmax.f32 %v3020_v0, 0.0 }
 0x24e   : > { %v3096_v56 = vpack.c.bf16 %v3082_v15, %v3081_v24  ;;  %4194 = vmatpush3.bf16.msra.mxu1 %v2869_v2 }
 0x24f   : > { %v3095_v44 = vpack.c.bf16 %v3080_v55, %v3079_v45  ;;  %v4219_v14 = vpop.f32.mrb[68].mxu0 }
 0x250   : > { %v3041_v23 = vadd.f32 %v4219_v14, %v5675_v60  ;;  %v3032_v33 = vpop.f32.mrb[69].mxu0 }
 0x251   : > { %v3033_v26 = vadd.f32 %v3032_v33, %v5667_v3  ;;  %4196 = vmatmul.mubr.bf16.vlgmr.msra.gmra.mrb[12].mxu1 %v5720_v53  ;;  %v4220_v35 = vpop.f32.mrb[70].mxu0  ;;  %4229 = vmatprep.subr.bf16.mxu1 %v3095_v44 }
 0x252   : > { %v3044_v48 = vadd.f32 %v4220_v35, %v5678_v38  ;;  %v3035_v51 = vpop.f32.mrb[71].mxu0  ;;  %4230 = vmatpush3.bf16.msra.mxu1 %v3095_v44  ;;  %4245 = vmatprep.mubr.bf16.mxu1 %v5608_v5  ;;  %v3085_v20 = vmax.f32 %v3041_v23, 0.0 }
 0x253   : > { %v3036_v4 = vadd.f32 %v3035_v51, %v5669_v16  ;;  %4231 = vmatprep.subr.bf16.mxu1 %v3096_v56  ;;  %v3083_v62 = vmax.f32 %v3033_v26, 0.0 }
 0x254   : > { %v3086_v50 = vmax.f32 %v3044_v48, 0.0 }
 0x255   : > { %v3084_v7 = vmax.f32 %v3036_v4, 0.0 }
 0x256   : > { %v3098_v58 = vpack.c.bf16 %v3086_v50, %v3085_v20  ;;  %4232 = vmatpush3.bf16.msra.mxu1 %v3096_v56 }
 0x257   : > { %v3097_v21 = vpack.c.bf16 %v3084_v7, %v3083_v62  ;;  %v4223_v42 = vpop.f32.mrb[72].mxu0 }
 0x258   : > { %v3057_v47 = vadd.f32 %v4223_v42, %v5692_v22  ;;  %v3048_v63 = vpop.f32.mrb[73].mxu0 }
 0x259   : > { %v3049_v49 = vadd.f32 %v3048_v63, %v5685_v34  ;;  %v4224_v19 = vpop.f32.mrb[74].mxu0  ;;  %4233 = vmatprep.subr.bf16.mxu1 %v3097_v21 }
 0x25a   : > { %v3060_v18 = vadd.f32 %v4224_v19, %v5695_v37  ;;  %v3051_v8 = vpop.f32.mrb[75].mxu0  ;;  %4234 = vmatpush3.bf16.msra.mxu1 %v3097_v21  ;;  %v3089_v10 = vmax.f32 %v3057_v47, 0.0 }
 0x25b   : > { %v3052_v39 = vadd.f32 %v3051_v8, %v5687_v54  ;;  %4235 = vmatprep.subr.bf16.mxu1 %v3098_v58  ;;  %v3087_v29 = vmax.f32 %v3049_v49, 0.0 }
 0x25c   : > { %v3090_v11 = vmax.f32 %v3060_v18, 0.0 }
 0x25d   : > { %v3088_v12 = vmax.f32 %v3052_v39, 0.0 }
 0x25e   : > { %v3100_v41 = vpack.c.bf16 %v3090_v11, %v3089_v10  ;;  %4236 = vmatpush3.bf16.msra.mxu1 %v3098_v58 }
 0x25f   : > { %v3099_v9 = vpack.c.bf16 %v3088_v12, %v3087_v29  ;;  %v4227_v31 = vpop.f32.mrb[76].mxu0 }
 0x260   : > { %v3073_v40 = vadd.f32 %v4227_v31, %v5705_v6  ;;  %v3064_v2 = vpop.f32.mrb[77].mxu0 }
 0x261   : > { %v3065_v36 = vadd.f32 %v3064_v2, %v5698_v43  ;;  %v4228_v32 = vpop.f32.mrb[78].mxu0  ;;  %4237 = vmatprep.subr.bf16.mxu1 %v3099_v9 }
 0x262   : > { %v3076_v61 = vadd.f32 %v4228_v32, %v5708_v28  ;;  %v3067_v52 = vpop.f32.mrb[79].mxu0  ;;  %4238 = vmatpush3.bf16.msra.mxu1 %v3099_v9  ;;  %v3093_v13 = vmax.f32 %v3073_v40, 0.0 }
 0x263   : > { %v3068_v17 = vadd.f32 %v3067_v52, %v5702_v30  ;;  %4239 = vmatprep.subr.bf16.mxu1 %v3100_v41  ;;  %v3091_v25 = vmax.f32 %v3065_v36, 0.0 }
 0x264   : > { %v3094_v59 = vmax.f32 %v3076_v61, 0.0 }
 0x265   : > { %v3092_v0 = vmax.f32 %v3068_v17, 0.0 }
 0x266   : > { %v3102_v24 = vpack.c.bf16 %v3094_v59, %v3093_v13  ;;  %4240 = vmatpush3.bf16.msra.mxu1 %v3100_v41 }
 0x267   : > { %v3101_v15 = vpack.c.bf16 %v3092_v0, %v3091_v25  ;;  %v4265_v45 = vpop.f32.mrb[80].mxu0 }
 0x268   : > { %v3258_v55 = vadd.f32 %v4265_v45, %v5659_v27  ;;  %v3249_v56 = vpop.f32.mrb[81].mxu0 }
 0x269   : > { %v3250_v44 = vadd.f32 %v3249_v56, %v5657_v57  ;;  %4241 = vmatprep.subr.bf16.mxu1 %v3101_v15  ;;  %v4266_v14 = vpop.f32.mrb[82].mxu0 }
 0x26a   : > { %v3261_v23 = vadd.f32 %v4266_v14, %v5663_v1  ;;  %4242 = vmatpush3.bf16.msra.mxu1 %v3101_v15  ;;  %v3252_v33 = vpop.f32.mrb[83].mxu0  ;;  %v3314_v35 = vmax.f32 %v3258_v55, 0.0 }
 0x26b   : > { %v3253_v26 = vadd.f32 %v3252_v33, %v5651_v46  ;;  %4243 = vmatprep.subr.bf16.mxu1 %v3102_v24  ;;  %v3312_v51 = vmax.f32 %v3250_v44, 0.0 }
 0x26c   : > { %v3315_v48 = vmax.f32 %v3261_v23, 0.0 }
 0x26d   : > { %v3313_v4 = vmax.f32 %v3253_v26, 0.0 }
 0x26e   : > { %v3329_v20 = vpack.c.bf16 %v3315_v48, %v3314_v35  ;;  %4244 = vmatpush3.bf16.msra.mxu1 %v3102_v24 }
 0x26f   : > { %v3328_v50 = vpack.c.bf16 %v3313_v4, %v3312_v51  ;;  %v4269_v62 = vpop.f32.mrb[84].mxu0 }
 0x270   : > { %v3274_v7 = vadd.f32 %v4269_v62, %v5675_v60  ;;  %v3265_v58 = vpop.f32.mrb[85].mxu0 }
 0x271   : > { %v3266_v21 = vadd.f32 %v3265_v58, %v5667_v3  ;;  %4246 = vmatmul.mubr.bf16.vlgmr.msra.gmra.mrb[16].mxu1 %v5720_v53  ;;  %v4270_v42 = vpop.f32.mrb[86].mxu0  ;;  %4279 = vmatprep.subr.bf16.mxu1 %v3328_v50 }
 0x272   : > { %v3277_v47 = vadd.f32 %v4270_v42, %v5678_v38  ;;  %v3268_v63 = vpop.f32.mrb[87].mxu0  ;;  %4280 = vmatpush3.bf16.msra.mxu1 %v3328_v50  ;;  %4295 = vmatprep.mubr.bf16.mxu1 %v5608_v5  ;;  %v3318_v19 = vmax.f32 %v3274_v7, 0.0 }
 0x273   : > { %v3269_v49 = vadd.f32 %v3268_v63, %v5669_v16  ;;  %4281 = vmatprep.subr.bf16.mxu1 %v3329_v20  ;;  %v3316_v8 = vmax.f32 %v3266_v21, 0.0 }
 0x274   : > { %v3319_v18 = vmax.f32 %v3277_v47, 0.0 }
 0x275   : > { %v3317_v39 = vmax.f32 %v3269_v49, 0.0 }
 0x276   : > { %v3331_v10 = vpack.c.bf16 %v3319_v18, %v3318_v19  ;;  %4282 = vmatpush3.bf16.msra.mxu1 %v3329_v20 }
 0x277   : > { %v3330_v11 = vpack.c.bf16 %v3317_v39, %v3316_v8  ;;  %v4273_v29 = vpop.f32.mrb[88].mxu0 }
 0x278   : > { %v3290_v12 = vadd.f32 %v4273_v29, %v5692_v22  ;;  %v3281_v41 = vpop.f32.mrb[89].mxu0 }
 0x279   : > { %v3282_v9 = vadd.f32 %v3281_v41, %v5685_v34  ;;  %v4274_v31 = vpop.f32.mrb[90].mxu0  ;;  %4283 = vmatprep.subr.bf16.mxu1 %v3330_v11 }
 0x27a   : > { %v3293_v5 = vadd.f32 %v4274_v31, %v5695_v37  ;;  %v3284_v40 = vpop.f32.mrb[91].mxu0  ;;  %4284 = vmatpush3.bf16.msra.mxu1 %v3330_v11  ;;  %v3322_v36 = vmax.f32 %v3290_v12, 0.0 }
 0x27b   : > { %v3285_v2 = vadd.f32 %v3284_v40, %v5687_v54  ;;  %4285 = vmatprep.subr.bf16.mxu1 %v3331_v10  ;;  %v3320_v61 = vmax.f32 %v3282_v9, 0.0 }
 0x27c   : > { %v3323_v32 = vmax.f32 %v3293_v5, 0.0 }
 0x27d   : > { %v3321_v52 = vmax.f32 %v3285_v2, 0.0 }
 0x27e   : > { %v3333_v17 = vpack.c.bf16 %v3323_v32, %v3322_v36  ;;  %4286 = vmatpush3.bf16.msra.mxu1 %v3331_v10  ;;  %v4489_v10 = vld [vmem:[%s5906_s4] sm:$0xff]  }
 0x27f   : > { %v3332_v13 = vpack.c.bf16 %v3321_v52, %v3320_v61  ;;  %v4277_v59 = vpop.f32.mrb[92].mxu0 }
 0x280   : > { %v3306_v25 = vadd.f32 %v4277_v59, %v5705_v6  ;;  %v3297_v0 = vpop.f32.mrb[93].mxu0 }
 0x281   : > { %v3298_v24 = vadd.f32 %v3297_v0, %v5698_v43  ;;  %v4278_v15 = vpop.f32.mrb[94].mxu0  ;;  %4287 = vmatprep.subr.bf16.mxu1 %v3332_v13 }
 0x282   : > { %v3309_v45 = vadd.f32 %v4278_v15, %v5708_v28  ;;  %v3300_v55 = vpop.f32.mrb[95].mxu0  ;;  %4288 = vmatpush3.bf16.msra.mxu1 %v3332_v13  ;;  %v3326_v44 = vmax.f32 %v3306_v25, 0.0 }
 0x283   : > { %v3301_v56 = vadd.f32 %v3300_v55, %v5702_v30  ;;  %4289 = vmatprep.subr.bf16.mxu1 %v3333_v17  ;;  %v3324_v23 = vmax.f32 %v3298_v24, 0.0 }
 0x284   : > { %v3327_v14 = vmax.f32 %v3309_v45, 0.0 }
 0x285   : > { %v3325_v33 = vmax.f32 %v3301_v56, 0.0 }
 0x286   : > { %v3335_v26 = vpack.c.bf16 %v3327_v14, %v3326_v44  ;;  %4290 = vmatpush3.bf16.msra.mxu1 %v3333_v17 }
 0x287   : > { %v3334_v35 = vpack.c.bf16 %v3325_v33, %v3324_v23  ;;  %v4315_v48 = vpop.f32.mrb[96].mxu0 }
 0x288   : > { %v3491_v51 = vadd.f32 %v4315_v48, %v5659_v27  ;;  %v3482_v4 = vpop.f32.mrb[97].mxu0 }
 0x289   : > { %v3483_v20 = vadd.f32 %v3482_v4, %v5657_v57  ;;  %4291 = vmatprep.subr.bf16.mxu1 %v3334_v35  ;;  %v4316_v50 = vpop.f32.mrb[98].mxu0 }
 0x28a   : > { %v3494_v62 = vadd.f32 %v4316_v50, %v5663_v1  ;;  %4292 = vmatpush3.bf16.msra.mxu1 %v3334_v35  ;;  %v3485_v7 = vpop.f32.mrb[99].mxu0  ;;  %v3547_v21 = vmax.f32 %v3491_v51, 0.0 }
 0x28b   : > { %v3486_v58 = vadd.f32 %v3485_v7, %v5651_v46  ;;  %4293 = vmatprep.subr.bf16.mxu1 %v3335_v26  ;;  %v3545_v47 = vmax.f32 %v3483_v20, 0.0 }
 0x28c   : > { %v3548_v42 = vmax.f32 %v3494_v62, 0.0 }
 0x28d   : > { %v3546_v63 = vmax.f32 %v3486_v58, 0.0 }
 0x28e   : > { %v3562_v49 = vpack.c.bf16 %v3548_v42, %v3547_v21  ;;  %4294 = vmatpush3.bf16.msra.mxu1 %v3335_v26 }
 0x28f   : > { %v3561_v19 = vpack.c.bf16 %v3546_v63, %v3545_v47  ;;  %v4319_v27 = vpop.f32.mrb[100].mxu0 }
 0x290   : > { %v3507_v18 = vadd.f32 %v4319_v27, %v5675_v60  ;;  %v3498_v57 = vpop.f32.mrb[101].mxu0 }
 0x291   : > { %v3499_v8 = vadd.f32 %v3498_v57, %v5667_v3  ;;  %4296 = vmatmul.mubr.bf16.vlgmr.msra.gmra.mrb[20].mxu1 %v5720_v53  ;;  %v4320_v1 = vpop.f32.mrb[102].mxu0  ;;  %4329 = vmatprep.subr.bf16.mxu1 %v3561_v19 }
 0x292   : > { %v3510_v46 = vadd.f32 %v4320_v1, %v5678_v38  ;;  %v3501_v39 = vpop.f32.mrb[103].mxu0  ;;  %4330 = vmatpush3.bf16.msra.mxu1 %v3561_v19  ;;  %4345 = vmatprep.mubr.bf16.mxu1 %v4489_v10  ;;  %v3551_v60 = vmax.f32 %v3507_v18, 0.0 }
 0x293   : > { %v3502_v11 = vadd.f32 %v3501_v39, %v5669_v16  ;;  %4331 = vmatprep.subr.bf16.mxu1 %v3562_v49  ;;  %v3549_v12 = vmax.f32 %v3499_v8, 0.0 }
 0x294   : > { %v3552_v29 = vmax.f32 %v3510_v46, 0.0 }
 0x295   : > { %v3550_v3 = vmax.f32 %v3502_v11, 0.0 }
 0x296   : > { %v3564_v41 = vpack.c.bf16 %v3552_v29, %v3551_v60  ;;  %4332 = vmatpush3.bf16.msra.mxu1 %v3562_v49 }
 0x297   : > { %v3563_v9 = vpack.c.bf16 %v3550_v3, %v3549_v12  ;;  %v4323_v31 = vpop.f32.mrb[104].mxu0 }
 0x298   : > { %v3523_v38 = vadd.f32 %v4323_v31, %v5692_v22  ;;  %v3514_v5 = vpop.f32.mrb[105].mxu0 }
 0x299   : > { %v3515_v40 = vadd.f32 %v3514_v5, %v5685_v34  ;;  %v4324_v2 = vpop.f32.mrb[106].mxu0  ;;  %4333 = vmatprep.subr.bf16.mxu1 %v3563_v9 }
 0x29a   : > { %v3526_v36 = vadd.f32 %v4324_v2, %v5695_v37  ;;  %v3517_v32 = vpop.f32.mrb[107].mxu0  ;;  %4334 = vmatpush3.bf16.msra.mxu1 %v3563_v9  ;;  %v3555_v61 = vmax.f32 %v3523_v38, 0.0 }
 0x29b   : > { %v3518_v16 = vadd.f32 %v3517_v32, %v5687_v54  ;;  %4335 = vmatprep.subr.bf16.mxu1 %v3564_v41  ;;  %v3553_v17 = vmax.f32 %v3515_v40, 0.0 }
 0x29c   : > { %v3556_v52 = vmax.f32 %v3526_v36, 0.0 }
 0x29d   : > { %v3554_v13 = vmax.f32 %v3518_v16, 0.0 }
 0x29e   : > { %v3566_v59 = vpack.c.bf16 %v3556_v52, %v3555_v61  ;;  %4336 = vmatpush3.bf16.msra.mxu1 %v3564_v41 }
 0x29f   : > { %v3565_v25 = vpack.c.bf16 %v3554_v13, %v3553_v17  ;;  %v4327_v22 = vpop.f32.mrb[108].mxu0 }
 0x2a0   : > { %v3539_v0 = vadd.f32 %v4327_v22, %v5705_v6  ;;  %v3530_v34 = vpop.f32.mrb[109].mxu0 }
 0x2a1   : > { %v3531_v24 = vadd.f32 %v3530_v34, %v5698_v43  ;;  %v4328_v15 = vpop.f32.mrb[110].mxu0  ;;  %4337 = vmatprep.subr.bf16.mxu1 %v3565_v25  ;;  %v5829_v43 = vpop.permute.xlu1 %2141 }
 0x2a2   : > { %v3542_v37 = vadd.f32 %v4328_v15, %v5708_v28  ;;  %v3533_v45 = vpop.f32.mrb[111].mxu0  ;;  %4338 = vmatpush3.bf16.msra.mxu1 %v3565_v25  ;;  %v3559_v55 = vmax.f32 %v3539_v0, 0.0  ;;  %v5831_v28 = vpop.permute.xlu0 %2146 }
 0x2a3   : > { %v3534_v54 = vadd.f32 %v3533_v45, %v5702_v30  ;;  %4339 = vmatprep.subr.bf16.mxu1 %v3566_v59  ;;  %v3557_v44 = vmax.f32 %v3531_v24, 0.0 }
 0x2a4   : > { %v3560_v56 = vmax.f32 %v3542_v37, 0.0 }
 0x2a5   : > { %v3558_v14 = vmax.f32 %v3534_v54, 0.0  ;;  %v5834_v30 = vpop.permute.xlu1 %2151 }
 0x2a6   : > { %v3568_v23 = vpack.c.bf16 %v3560_v56, %v3559_v55  ;;  %4340 = vmatpush3.bf16.msra.mxu1 %v3566_v59  ;;  %v5837_v48 = vpop.permute.xlu0 %2156 }
 0x2a7   : > { %v3567_v6 = vpack.c.bf16 %v3558_v14, %v3557_v44 }
 0x2a9   : > { %4341 = vmatprep.subr.bf16.mxu1 %v3567_v6 }
 0x2aa   : > { %4342 = vmatpush3.bf16.msra.mxu1 %v3567_v6 }
 0x2ab   : > { %4343 = vmatprep.subr.bf16.mxu1 %v3568_v23 }
 0x2ae   : > { %4344 = vmatpush3.bf16.msra.mxu1 %v3568_v23 }
 0x2b1   : > { %4346 = vmatmul.mubr.bf16.vlgmr.msra.gmra.mrb[24].mxu1 %v5720_v53 }
 0x2c4   : > { %v4047_v33 = vpop.f32.mrb[0].mxu1 }
 0x2c5   : > { %v2214_v26 = vadd.f32 %v4047_v33, %v5834_v30  ;;  %v2205_v35 = vpop.f32.mrb[1].mxu1 }
 0x2c6   : > { %v2206_v53 = vadd.f32 %v2205_v35, %v5829_v43  ;;  %v4048_v51 = vpop.f32.mrb[2].mxu1 }
 0x2c7   : > { %v2222_v4 = vmax.f32 %v2214_v26, 0.0  ;;  %v2217_v20 = vadd.f32 %v4048_v51, %v5837_v48  ;;  %v2208_v50 = vpop.f32.mrb[3].mxu1 }
 0x2c8   : > { %v2220_v62 = vmax.f32 %v2206_v53, 0.0  ;;  %v2209_v7 = vadd.f32 %v2208_v50, %v5831_v28 }
 0x2c9   : > { %2226 = vst [vmem:[%s5842_s17 + $0x70] sm:$0xff] %v2222_v4  ;;  %v2223_v58 = vmax.f32 %v2217_v20, 0.0 }
 0x2ca   : > { %2224 = vst [vmem:[%s5842_s17] sm:$0xff] %v2220_v62  ;;  %v2221_v21 = vmax.f32 %v2209_v7, 0.0 }
 0x2cb   : > { %2227 = vst [vmem:[%s5842_s17 + $0xa8] sm:$0xff] %v2223_v58 }
 0x2cc   : > { %2225 = vst [vmem:[%s5842_s17 + $0x38] sm:$0xff] %v2221_v21 }
 0x2e4   : > { %v4097_v42 = vpop.f32.mrb[4].mxu1 }
 0x2e5   : > { %v2447_v47 = vadd.f32 %v4097_v42, %v5834_v30  ;;  %v2438_v63 = vpop.f32.mrb[5].mxu1 }
 0x2e6   : > { %v2439_v49 = vadd.f32 %v2438_v63, %v5829_v43  ;;  %v4098_v19 = vpop.f32.mrb[6].mxu1 }
 0x2e7   : > { %v2455_v27 = vmax.f32 %v2447_v47, 0.0  ;;  %v2450_v18 = vadd.f32 %v4098_v19, %v5837_v48  ;;  %v2441_v57 = vpop.f32.mrb[7].mxu1 }
 0x2e8   : > { %v2453_v8 = vmax.f32 %v2439_v49, 0.0  ;;  %v2442_v1 = vadd.f32 %v2441_v57, %v5831_v28 }
 0x2e9   : > { %2459 = vst [vmem:[%s5842_s17 + $0x78] sm:$0xff] %v2455_v27  ;;  %v2456_v46 = vmax.f32 %v2450_v18, 0.0 }
 0x2ea   : > { %2457 = vst [vmem:[%s5842_s17 + $0x8] sm:$0xff] %v2453_v8  ;;  %v2454_v39 = vmax.f32 %v2442_v1, 0.0 }
 0x2eb   : > { %2460 = vst [vmem:[%s5842_s17 + $0xb0] sm:$0xff] %v2456_v46 }
 0x2ec   : > { %2458 = vst [vmem:[%s5842_s17 + $0x40] sm:$0xff] %v2454_v39 }
 0x304   : > { %v4147_v10 = vpop.f32.mrb[8].mxu1 }
 0x305   : > { %v2680_v11 = vadd.f32 %v4147_v10, %v5834_v30  ;;  %v2671_v60 = vpop.f32.mrb[9].mxu1 }
 0x306   : > { %v2672_v29 = vadd.f32 %v2671_v60, %v5829_v43  ;;  %v4148_v12 = vpop.f32.mrb[10].mxu1 }
 0x307   : > { %v2688_v3 = vmax.f32 %v2680_v11, 0.0  ;;  %v2683_v41 = vadd.f32 %v4148_v12, %v5837_v48  ;;  %v2674_v9 = vpop.f32.mrb[11].mxu1 }
 0x308   : > { %v2686_v31 = vmax.f32 %v2672_v29, 0.0  ;;  %v2675_v38 = vadd.f32 %v2674_v9, %v5831_v28 }
 0x309   : > { %2692 = vst [vmem:[%s5842_s17 + $0x80] sm:$0xff] %v2688_v3  ;;  %v2689_v5 = vmax.f32 %v2683_v41, 0.0 }
 0x30a   : > { %2690 = vst [vmem:[%s5842_s17 + $0x10] sm:$0xff] %v2686_v31  ;;  %v2687_v40 = vmax.f32 %v2675_v38, 0.0 }
 0x30b   : > { %2693 = vst [vmem:[%s5842_s17 + $0xb8] sm:$0xff] %v2689_v5 }
 0x30c   : > { %2691 = vst [vmem:[%s5842_s17 + $0x48] sm:$0xff] %v2687_v40 }
 0x324   : > { %v4197_v2 = vpop.f32.mrb[12].mxu1 }
 0x325   : > { %v2913_v36 = vadd.f32 %v4197_v2, %v5834_v30  ;;  %v2904_v32 = vpop.f32.mrb[13].mxu1 }
 0x326   : > { %v2905_v16 = vadd.f32 %v2904_v32, %v5829_v43  ;;  %v4198_v61 = vpop.f32.mrb[14].mxu1 }
 0x327   : > { %v2921_v52 = vmax.f32 %v2913_v36, 0.0  ;;  %v2916_v17 = vadd.f32 %v4198_v61, %v5837_v48  ;;  %v2907_v13 = vpop.f32.mrb[15].mxu1 }
 0x328   : > { %v2919_v59 = vmax.f32 %v2905_v16, 0.0  ;;  %v2908_v25 = vadd.f32 %v2907_v13, %v5831_v28 }
 0x329   : > { %2925 = vst [vmem:[%s5842_s17 + $0x88] sm:$0xff] %v2921_v52  ;;  %v2922_v22 = vmax.f32 %v2916_v17, 0.0 }
 0x32a   : > { %2923 = vst [vmem:[%s5842_s17 + $0x18] sm:$0xff] %v2919_v59  ;;  %v2920_v0 = vmax.f32 %v2908_v25, 0.0 }
 0x32b   : > { %2926 = vst [vmem:[%s5842_s17 + $0xc0] sm:$0xff] %v2922_v22 }
 0x32c   : > { %2924 = vst [vmem:[%s5842_s17 + $0x50] sm:$0xff] %v2920_v0 }
 0x344   : > { %v4247_v34 = vpop.f32.mrb[16].mxu1 }
 0x345   : > { %v3146_v24 = vadd.f32 %v4247_v34, %v5834_v30  ;;  %v3137_v15 = vpop.f32.mrb[17].mxu1 }
 0x346   : > { %v3138_v37 = vadd.f32 %v3137_v15, %v5829_v43  ;;  %v4248_v45 = vpop.f32.mrb[18].mxu1 }
 0x347   : > { %v3154_v54 = vmax.f32 %v3146_v24, 0.0  ;;  %v3149_v55 = vadd.f32 %v4248_v45, %v5837_v48  ;;  %v3140_v56 = vpop.f32.mrb[19].mxu1 }
 0x348   : > { %v3152_v44 = vmax.f32 %v3138_v37, 0.0  ;;  %v3141_v14 = vadd.f32 %v3140_v56, %v5831_v28 }
 0x349   : > { %3158 = vst [vmem:[%s5842_s17 + $0x90] sm:$0xff] %v3154_v54  ;;  %v3155_v23 = vmax.f32 %v3149_v55, 0.0 }
 0x34a   : > { %3156 = vst [vmem:[%s5842_s17 + $0x20] sm:$0xff] %v3152_v44  ;;  %v3153_v6 = vmax.f32 %v3141_v14, 0.0 }
 0x34b   : > { %3159 = vst [vmem:[%s5842_s17 + $0xc8] sm:$0xff] %v3155_v23 }
 0x34c   : > { %3157 = vst [vmem:[%s5842_s17 + $0x58] sm:$0xff] %v3153_v6 }
 0x364   : > { %v4297_v33 = vpop.f32.mrb[20].mxu1 }
 0x365   : > { %v3379_v26 = vadd.f32 %v4297_v33, %v5834_v30  ;;  %v3370_v35 = vpop.f32.mrb[21].mxu1 }
 0x366   : > { %v3371_v53 = vadd.f32 %v3370_v35, %v5829_v43  ;;  %v4298_v51 = vpop.f32.mrb[22].mxu1 }
 0x367   : > { %v3387_v4 = vmax.f32 %v3379_v26, 0.0  ;;  %v3382_v20 = vadd.f32 %v4298_v51, %v5837_v48  ;;  %v3373_v50 = vpop.f32.mrb[23].mxu1 }
 0x368   : > { %v3385_v62 = vmax.f32 %v3371_v53, 0.0  ;;  %v3374_v7 = vadd.f32 %v3373_v50, %v5831_v28 }
 0x369   : > { %3391 = vst [vmem:[%s5842_s17 + $0x98] sm:$0xff] %v3387_v4  ;;  %v3388_v58 = vmax.f32 %v3382_v20, 0.0 }
 0x36a   : > { %3389 = vst [vmem:[%s5842_s17 + $0x28] sm:$0xff] %v3385_v62  ;;  %v3386_v21 = vmax.f32 %v3374_v7, 0.0 }
 0x36b   : > { %3392 = vst [vmem:[%s5842_s17 + $0xd0] sm:$0xff] %v3388_v58 }
 0x36c   : > { %3390 = vst [vmem:[%s5842_s17 + $0x60] sm:$0xff] %v3386_v21 }
 0x384   : > { %v4347_v42 = vpop.f32.mrb[24].mxu1 }
 0x385   : > { %v3612_v47 = vadd.f32 %v4347_v42, %v5834_v30  ;;  %v3603_v63 = vpop.f32.mrb[25].mxu1 }
 0x386   : > { %v3604_v49 = vadd.f32 %v3603_v63, %v5829_v43  ;;  %v4348_v19 = vpop.f32.mrb[26].mxu1 }
 0x387   : > { %v3620_v27 = vmax.f32 %v3612_v47, 0.0  ;;  %v3615_v18 = vadd.f32 %v4348_v19, %v5837_v48  ;;  %v3606_v57 = vpop.f32.mrb[27].mxu1 }
 0x388   : > { %v3618_v8 = vmax.f32 %v3604_v49, 0.0  ;;  %v3607_v1 = vadd.f32 %v3606_v57, %v5831_v28 }
 0x389   : > { %3624 = vst [vmem:[%s5842_s17 + $0xa0] sm:$0xff] %v3620_v27  ;;  %v3621_v46 = vmax.f32 %v3615_v18, 0.0 }
 0x38a   : > { %3622 = vst [vmem:[%s5842_s17 + $0x30] sm:$0xff] %v3618_v8  ;;  %v3619_v39 = vmax.f32 %v3607_v1, 0.0 }
 0x38b   : > { %3625 = vst [vmem:[%s5842_s17 + $0xd8] sm:$0xff] %v3621_v46 }
 0x38c   : > { %3623 = vst [vmem:[%s5842_s17 + $0x68] sm:$0xff] %v3619_v39 }
 0x38d PF: > { %s15_s18 = sadd.s32 1, %s4496_s18  }
 0x38e   : > { %p12_p4 = scmp.ge.s32.totalorder %s15_s18, 4  }
 0x390   :  { %14 = sbr.rel (!%p12_p4) target bundleno = 1 (0x1), region = 73 }

</bundles_post_ra>
